<compile_context>
chip_gen: v6e
topology: v6e:2x2x1
jax: 0.10.0
libtpu: 0.0.40
codegen_flags: <defaults>
</compile_context>

<pallas_src>
import functools
import math

import jax
import jax.numpy as jnp
from jax.experimental import pallas as pl
from jax.experimental.pallas import tpu as pltpu

LEAKY_SLOPE = 0.01  # torch.nn.LeakyReLU default negative_slope


def _act(y, kind):
    if kind == "leaky_relu":
        return jnp.where(y >= 0.0, y, LEAKY_SLOPE * y)
    if kind == "sigmoid":
        return 1.0 / (1.0 + jnp.exp(-y))  # exact divide keeps result in [0, 1]
    return y


def _full_spec(shape):
    nd = len(shape)
    return pl.BlockSpec(tuple(shape), lambda i, _nd=nd: (0,) * _nd)


def _conv_to_toeplitz(w_tap, W, p):
    """Fold (K, K, Cin, Cout) conv taps into K block-Toeplitz (Wp*Cin, W*Cout) mats.

    Row index = padded-pixel*Cin + ci, col index = out-pixel*Cout + co, so a
    lane-flattened padded image row matmul'd against mat[ky] gives the ky-row
    contribution of a stride-1 'same' conv for a whole output row at once.
    """
    Kk, _, cin, cout = w_tap.shape
    Wp = W + 2 * p
    wcols = jnp.arange(W)
    mats = []
    for ky in range(Kk):
        m = jnp.zeros((Wp, cin, W, cout), jnp.float32)
        for kx in range(Kk):
            m = m.at[wcols + kx, :, wcols, :].set(w_tap[ky, kx])
        mats.append(m.reshape(Wp * cin, W * cout))
    return jnp.stack(mats, axis=0).astype(jnp.bfloat16)


# ---------------------------------------------------------------------------
# The single fused kernel.
# Activation layout everywhere: rows = (batch, image-row), lanes = (w, c).
# ---------------------------------------------------------------------------
def autoencoder_kernel(*refs, N, H, W, K, r0, Rs, enc_layers, dec_layers):
    p = K // 2
    Wp = W + 2 * p
    n_enc, n_dec = len(enc_layers), len(dec_layers)

    it = iter(refs)
    x_ref = next(it)
    enc_wb = [(next(it), next(it)) for _ in range(n_enc)]
    dec_wb = [(next(it), next(it)) for _ in range(n_dec)]
    w1_ref, b1_ref, w2_ref, b2_ref = next(it), next(it), next(it), next(it)
    o_ref = next(it)
    distinct_cin = sorted({c for c, _, _ in enc_layers + dec_layers})
    halo = {c: next(it) for c in distinct_cin}
    flat_ref = next(it)

    Mrows = (N - 1) * Rs + H  # matmul row extent covering every valid output row

    # Zero only the halo *border* strips, once. Interiors are fully rewritten
    # per layer and each buffer is only reused by layers with the same Cin.
    for cin in distinct_cin:
        buf = halo[cin]
        wpin, wcin = Wp * cin, W * cin
        buf[:, 0:p * cin] = jnp.zeros((N * Rs, p * cin), jnp.bfloat16)
        buf[:, p * cin + wcin:wpin] = jnp.zeros(
            (N * Rs, wpin - p * cin - wcin), jnp.bfloat16)
        for n in range(N):
            buf[n * Rs + r0 - p:n * Rs + r0, :] = jnp.zeros((p, wpin), jnp.bfloat16)
            buf[n * Rs + r0 + H:n * Rs + r0 + H + p, :] = jnp.zeros(
                (p, wpin), jnp.bfloat16)

    def fill_halo_rows(cin, rows):
        # rows[n]: (H, W*cin) f32 -> bf16 interior store at an aligned row base.
        buf = halo[cin]
        for n in range(N):
            buf[n * Rs + r0:n * Rs + r0 + H, p * cin:(p + W) * cin] = (
                rows[n].astype(jnp.bfloat16))

    def fill_halo_flat(cin, flat):
        # flat: (N, H*W*cin) f32 (decoder-linear output) -> halo interior.
        buf = halo[cin]
        wcin = W * cin
        for n in range(N):
            for h in range(H):
                r = n * Rs + r0 + h
                buf[r:r + 1, p * cin:p * cin + wcin] = (
                    flat[n:n + 1, h * wcin:(h + 1) * wcin].astype(jnp.bfloat16))

    def conv_layer(cin, cout, wt_ref, b_ref, kind):
        # K matmuls against block-Toeplitz weights; f32 accumulation in regs.
        buf = halo[cin]
        wpin, wcout = Wp * cin, W * cout
        out = None
        for ky in range(K):
            t = jnp.dot(buf[r0 - p + ky:r0 - p + ky + Mrows, 0:wpin],
                        wt_ref[ky], preferred_element_type=jnp.float32)
            out = t if out is None else out + t
        bias = b_ref[...]
        return [_act(out[n * Rs:n * Rs + H, :] + bias, kind) for n in range(N)]

    # ----------------------- encoder convs (+LeakyReLU) -----------------------
    x = x_ref[...]
    rows = [x[n * H:(n + 1) * H, :] for n in range(N)]
    for li, (cin, cout, kind) in enumerate(enc_layers):
        fill_halo_rows(cin, rows)
        rows = conv_layer(cin, cout, *enc_wb[li], kind)

    # ------------------- flatten -> Linear -> Linear (VMEM) -------------------
    wc = W * enc_layers[-1][1]
    for n in range(N):
        for h in range(H):
            flat_ref[n:n + 1, h * wc:(h + 1) * wc] = rows[n][h:h + 1, :]
    z = jnp.dot(flat_ref[...].astype(jnp.bfloat16), w1_ref[...],
                preferred_element_type=jnp.float32) + b1_ref[...]
    d = jnp.dot(z.astype(jnp.bfloat16), w2_ref[...],
                preferred_element_type=jnp.float32) + b2_ref[...]

    # ----------------------------- decoder convs -----------------------------
    cin, cout, kind = dec_layers[0]
    fill_halo_flat(cin, d)
    rows = conv_layer(cin, cout, *dec_wb[0], kind)
    for li in range(1, n_dec):
        cin, cout, kind = dec_layers[li]
        fill_halo_rows(cin, rows)
        rows = conv_layer(cin, cout, *dec_wb[li], kind)

    for n in range(N):
        o_ref[n * H:(n + 1) * H, :] = rows[n]


# ---------------------------------------------------------------------------
# Wrapper: one pallas_call for the whole forward pass.
# ---------------------------------------------------------------------------
def autoencoder_forward(params, x_nchw):
    N, C0, H, W = x_nchw.shape
    K = params["K"]
    p = K // 2
    enc_layers, dec_layers = params["enc_layers"], params["dec_layers"]
    assert enc_layers[0][0] == C0
    C_mid = enc_layers[-1][1]
    C_last = dec_layers[-1][1]

    r0 = 8                                # sublane-aligned interior row base (>= p)
    assert p <= r0
    Rs = ((r0 + H + p + 7) // 8) * 8      # per-batch row stride, multiple of 8
    Wp = W + 2 * p

    # NCHW -> lane-dense rows (sublane=(n,h), lane=(w,c)); tiny boundary relayout.
    x_rows = jnp.transpose(x_nchw, (0, 2, 3, 1)).reshape(N * H, W * C0)

    flat_args = [x_rows]
    for wt, brow in params["enc_convs"] + params["dec_convs"]:
        flat_args += [wt, brow]
    flat_args += [*params["enc_lin"], *params["dec_lin"]]
    in_specs = [_full_spec(a.shape) for a in flat_args]

    distinct_cin = sorted({c for c, _, _ in enc_layers + dec_layers})
    scratch = [pltpu.VMEM((N * Rs, Wp * c), jnp.bfloat16) for c in distinct_cin]
    scratch.append(pltpu.VMEM((N, H * W * C_mid), jnp.float32))

    kern = functools.partial(
        autoencoder_kernel, N=N, H=H, W=W, K=K, r0=r0, Rs=Rs,
        enc_layers=tuple(enc_layers), dec_layers=tuple(dec_layers))

    out_rows = pl.pallas_call(
        kern,
        out_shape=jax.ShapeDtypeStruct((N * H, W * C_last), jnp.float32),
        grid=(1,),
        in_specs=in_specs,
        out_specs=_full_spec((N * H, W * C_last)),
        scratch_shapes=scratch,
        compiler_params=pltpu.CompilerParams(
            dimension_semantics=("arbitrary",)),
    )(*flat_args)

    return out_rows.reshape(N, H, W, C_last).transpose(0, 3, 1, 2)


# ---------------------------------------------------------------------------
# Pure-JAX reference (same synthetic weights, same bf16/f32 mixed precision).
# ---------------------------------------------------------------------------
def reference_forward(params, x_nchw):
    def conv_same(y, w_tap, b, kind):
        out = jax.lax.conv_general_dilated(
            y.astype(jnp.bfloat16), w_tap.astype(jnp.bfloat16),
            window_strides=(1, 1), padding="SAME",
            dimension_numbers=("NHWC", "HWIO", "NHWC"),
            preferred_element_type=jnp.float32)
        return _act(out + b.reshape(1, 1, 1, -1), kind)

    x = jnp.transpose(x_nchw, (0, 2, 3, 1))
    for (w_tap, b), (_, _, kind) in zip(params["enc_convs_ref"], params["enc_layers"]):
        x = conv_same(x, w_tap, b, kind)
    N = x.shape[0]
    C, H, W = params["shape_before_flattening"]
    flat = x.reshape(N, -1)                                    # (h, w, c) order
    w1, b1 = params["enc_lin"]
    w2, b2 = params["dec_lin"]
    z = jnp.dot(flat.astype(jnp.bfloat16), w1, preferred_element_type=jnp.float32) + b1
    d = jnp.dot(z.astype(jnp.bfloat16), w2, preferred_element_type=jnp.float32) + b2
    x = d.reshape(N, H, W, C)
    for (w_tap, b), (_, _, kind) in zip(params["dec_convs_ref"], params["dec_layers"]):
        x = conv_same(x, w_tap, b, kind)
    return jnp.transpose(x, (0, 3, 1, 2))


# ---------------------------------------------------------------------------
# Deterministic synthetic parameters (same layer structure the torch module
# builds; use_batch_norm / use_dropout default to False -> not instantiated).
# ---------------------------------------------------------------------------
def init_params(key, input_dim, enc_filters, enc_k, dec_filters, dec_k, z_dim):
    Cin, H, W = input_dim
    K = enc_k[0]
    assert all(k == K for k in list(enc_k) + list(dec_k))
    p = K // 2
    n_conv = len(enc_filters) + len(dec_filters)
    keys = iter(jax.random.split(key, 2 * n_conv + 8))

    def make_conv(cin, cout):
        scale = 1.0 / math.sqrt(K * K * cin)
        w_tap = jax.random.normal(next(keys), (K, K, cin, cout), jnp.float32) * scale
        b = jax.random.normal(next(keys), (1, cout), jnp.float32) * 0.01
        return (_conv_to_toeplitz(w_tap, W, p), jnp.tile(b, (1, W))), (w_tap, b)

    params = {"K": K, "enc_convs": [], "dec_convs": [],
              "enc_convs_ref": [], "dec_convs_ref": []}

    c = Cin
    enc_layers = []
    for f in enc_filters:
        folded, raw = make_conv(c, f)
        params["enc_convs"].append(folded)
        params["enc_convs_ref"].append(raw)
        enc_layers.append((c, f, "leaky_relu"))
        c = f

    C = c
    flat = H * W * C                         # stride-1 'same' convs keep H, W
    params["shape_before_flattening"] = (C, H, W)

    # TODO(synk): loading real torch checkpoints requires (a) permuting the
    # Linear rows/cols from the NCHW-Flatten order to this kernel's (h, w, c)
    # order and (b) flipping + in/out-channel-transposing the ConvTranspose2d
    # kernels before the Toeplitz fold; synthetic weights are sampled directly
    # in kernel form.
    params["enc_lin"] = (
        (jax.random.normal(next(keys), (flat, z_dim), jnp.float32)
         / math.sqrt(flat)).astype(jnp.bfloat16),
        jax.random.normal(next(keys), (1, z_dim), jnp.float32) * 0.01,
    )
    params["dec_lin"] = (
        (jax.random.normal(next(keys), (z_dim, flat), jnp.float32)
         / math.sqrt(z_dim)).astype(jnp.bfloat16),
        jax.random.normal(next(keys), (1, flat), jnp.float32) * 0.01,
    )

    dec_layers = []
    for i, f in enumerate(dec_filters):
        folded, raw = make_conv(c, f)
        params["dec_convs"].append(folded)
        params["dec_convs_ref"].append(raw)
        kind = "leaky_relu" if i < len(dec_filters) - 1 else "sigmoid"
        dec_layers.append((c, f, kind))
        c = f

    params["enc_layers"] = tuple(enc_layers)
    params["dec_layers"] = tuple(dec_layers)
    return params


if __name__ == "__main__":
    key = jax.random.PRNGKey(0)
    k_param, k_x = jax.random.split(key)

    # Small, self-consistent config (stride 1 is required by padding='same').
    input_dim = (4, 16, 16)                  # (C, H, W)
    encoder_conv_filters = [8, 8]
    encoder_conv_kernel_size = [3, 3]
    decoder_conv_t_filters = [8, 4]          # last == input channels
    decoder_conv_t_kernel_size = [3, 3]
    z_dim = 32

    params = init_params(k_param, input_dim,
                         encoder_conv_filters, encoder_conv_kernel_size,
                         decoder_conv_t_filters, decoder_conv_t_kernel_size,
                         z_dim)

    x = jax.random.uniform(k_x, (2, *input_dim), jnp.float32)   # NCHW input

    fwd = jax.jit(lambda xx: autoencoder_forward(params, xx))
    out = jax.block_until_ready(fwd(x))

    assert out.shape == (2, 4, 16, 16), out.shape
    assert out.dtype == jnp.float32
    assert bool(jnp.all((out >= 0.0) & (out <= 1.0)))           # final Sigmoid

    ref = jax.block_until_ready(reference_forward(params, x))
    max_err = float(jnp.max(jnp.abs(out - ref)))
    assert max_err < 5e-2, f"kernel/reference mismatch: max abs err {max_err}"

    print("KERNEL_OK")
</pallas_src>

<mosaic_0001>
module attributes {stable_mosaic.version = 11 : i64} {
  func.func @autoencoder_kernel(%arg0: i32, %arg1: memref<32x64xf32, #tpu.memory_space<vmem>>, %arg2: memref<3x72x128xbf16, #tpu.memory_space<vmem>>, %arg3: memref<1x128xf32, #tpu.memory_space<vmem>>, %arg4: memref<3x144x128xbf16, #tpu.memory_space<vmem>>, %arg5: memref<1x128xf32, #tpu.memory_space<vmem>>, %arg6: memref<3x144x128xbf16, #tpu.memory_space<vmem>>, %arg7: memref<1x128xf32, #tpu.memory_space<vmem>>, %arg8: memref<3x144x64xbf16, #tpu.memory_space<vmem>>, %arg9: memref<1x64xf32, #tpu.memory_space<vmem>>, %arg10: memref<2048x32xbf16, #tpu.memory_space<vmem>>, %arg11: memref<1x32xf32, #tpu.memory_space<vmem>>, %arg12: memref<32x2048xbf16, #tpu.memory_space<vmem>>, %arg13: memref<1x2048xf32, #tpu.memory_space<vmem>>, %arg14: memref<32x64xf32, #tpu.memory_space<vmem>>, %arg15: memref<64x72xbf16, #tpu.memory_space<vmem>>, %arg16: memref<64x144xbf16, #tpu.memory_space<vmem>>, %arg17: memref<2x2048xf32, #tpu.memory_space<vmem>>) attributes {dimension_semantics = [#tpu.dimension_semantics<arbitrary>], iteration_bounds = array<i64: 1>, scalar_prefetch = 0 : i64, scratch_operands = 3 : i64, tpu.core_type = #tpu.core_type<tc>, window_params = [{pipeline_mode = #tpu.pipeline_mode<synchronous>, transform_indices = @transform_0, window_bounds = array<i64: 32, 64>}, {pipeline_mode = #tpu.pipeline_mode<synchronous>, transform_indices = @transform_1, window_bounds = array<i64: 3, 72, 128>}, {pipeline_mode = #tpu.pipeline_mode<synchronous>, transform_indices = @transform_2, window_bounds = array<i64: 1, 128>}, {pipeline_mode = #tpu.pipeline_mode<synchronous>, transform_indices = @transform_3, window_bounds = array<i64: 3, 144, 128>}, {pipeline_mode = #tpu.pipeline_mode<synchronous>, transform_indices = @transform_4, window_bounds = array<i64: 1, 128>}, {pipeline_mode = #tpu.pipeline_mode<synchronous>, transform_indices = @transform_5, window_bounds = array<i64: 3, 144, 128>}, {pipeline_mode = #tpu.pipeline_mode<synchronous>, transform_indices = @transform_6, window_bounds = array<i64: 1, 128>}, {pipeline_mode = #tpu.pipeline_mode<synchronous>, transform_indices = @transform_7, window_bounds = array<i64: 3, 144, 64>}, {pipeline_mode = #tpu.pipeline_mode<synchronous>, transform_indices = @transform_8, window_bounds = array<i64: 1, 64>}, {pipeline_mode = #tpu.pipeline_mode<synchronous>, transform_indices = @transform_9, window_bounds = array<i64: 2048, 32>}, {pipeline_mode = #tpu.pipeline_mode<synchronous>, transform_indices = @transform_10, window_bounds = array<i64: 1, 32>}, {pipeline_mode = #tpu.pipeline_mode<synchronous>, transform_indices = @transform_11, window_bounds = array<i64: 32, 2048>}, {pipeline_mode = #tpu.pipeline_mode<synchronous>, transform_indices = @transform_12, window_bounds = array<i64: 1, 2048>}, {pipeline_mode = #tpu.pipeline_mode<synchronous>, transform_indices = @transform_13, window_bounds = array<i64: 32, 64>}]} {
    %cst = arith.constant 0.000000e+00 : bf16
    %0 = vector.broadcast %cst : bf16 to vector<64x4xbf16>
    %c0 = arith.constant 0 : index
    %c0_0 = arith.constant 0 : index
    %1 = vector.load %arg15[%c0, %c0_0] : memref<64x72xbf16, #tpu.memory_space<vmem>>, vector<64x4xbf16>
    tpu.vector_store %arg15[%c0, %c0_0], %0 {strides = array<i32>} : memref<64x72xbf16, #tpu.memory_space<vmem>>, vector<64x4xbf16>,
    %cst_1 = arith.constant 0.000000e+00 : bf16
    %2 = vector.broadcast %cst_1 : bf16 to vector<64x4xbf16>
    %c0_2 = arith.constant 0 : index
    %c68 = arith.constant 68 : index
    %3 = vector.load %arg15[%c0_2, %c68] : memref<64x72xbf16, #tpu.memory_space<vmem>>, vector<64x4xbf16>
    tpu.vector_store %arg15[%c0_2, %c68], %2 {strides = array<i32>} : memref<64x72xbf16, #tpu.memory_space<vmem>>, vector<64x4xbf16>,
    %cst_3 = arith.constant 0.000000e+00 : bf16
    %4 = vector.broadcast %cst_3 : bf16 to vector<1x72xbf16>
    %c7 = arith.constant 7 : index
    %c0_4 = arith.constant 0 : index
    %5 = vector.load %arg15[%c7, %c0_4] : memref<64x72xbf16, #tpu.memory_space<vmem>>, vector<1x72xbf16>
    tpu.vector_store %arg15[%c7, %c0_4], %4 {strides = array<i32>} : memref<64x72xbf16, #tpu.memory_space<vmem>>, vector<1x72xbf16>,
    %cst_5 = arith.constant 0.000000e+00 : bf16
    %6 = vector.broadcast %cst_5 : bf16 to vector<1x72xbf16>
    %c24 = arith.constant 24 : index
    %c0_6 = arith.constant 0 : index
    %7 = vector.load %arg15[%c24, %c0_6] : memref<64x72xbf16, #tpu.memory_space<vmem>>, vector<1x72xbf16>
    tpu.vector_store %arg15[%c24, %c0_6], %6 {strides = array<i32>} : memref<64x72xbf16, #tpu.memory_space<vmem>>, vector<1x72xbf16>,
    %cst_7 = arith.constant 0.000000e+00 : bf16
    %8 = vector.broadcast %cst_7 : bf16 to vector<1x72xbf16>
    %c39 = arith.constant 39 : index
    %c0_8 = arith.constant 0 : index
    %9 = vector.load %arg15[%c39, %c0_8] : memref<64x72xbf16, #tpu.memory_space<vmem>>, vector<1x72xbf16>
    tpu.vector_store %arg15[%c39, %c0_8], %8 {strides = array<i32>} : memref<64x72xbf16, #tpu.memory_space<vmem>>, vector<1x72xbf16>,
    %cst_9 = arith.constant 0.000000e+00 : bf16
    %10 = vector.broadcast %cst_9 : bf16 to vector<1x72xbf16>
    %c56 = arith.constant 56 : index
    %c0_10 = arith.constant 0 : index
    %11 = vector.load %arg15[%c56, %c0_10] : memref<64x72xbf16, #tpu.memory_space<vmem>>, vector<1x72xbf16>
    tpu.vector_store %arg15[%c56, %c0_10], %10 {strides = array<i32>} : memref<64x72xbf16, #tpu.memory_space<vmem>>, vector<1x72xbf16>,
    %cst_11 = arith.constant 0.000000e+00 : bf16
    %12 = vector.broadcast %cst_11 : bf16 to vector<64x8xbf16>
    %c0_12 = arith.constant 0 : index
    %c0_13 = arith.constant 0 : index
    %13 = vector.load %arg16[%c0_12, %c0_13] : memref<64x144xbf16, #tpu.memory_space<vmem>>, vector<64x8xbf16>
    tpu.vector_store %arg16[%c0_12, %c0_13], %12 {strides = array<i32>} : memref<64x144xbf16, #tpu.memory_space<vmem>>, vector<64x8xbf16>,
    %cst_14 = arith.constant 0.000000e+00 : bf16
    %14 = vector.broadcast %cst_14 : bf16 to vector<64x8xbf16>
    %c0_15 = arith.constant 0 : index
    %c136 = arith.constant 136 : index
    %15 = vector.load %arg16[%c0_15, %c136] : memref<64x144xbf16, #tpu.memory_space<vmem>>, vector<64x8xbf16>
    tpu.vector_store %arg16[%c0_15, %c136], %14 {strides = array<i32>} : memref<64x144xbf16, #tpu.memory_space<vmem>>, vector<64x8xbf16>,
    %cst_16 = arith.constant 0.000000e+00 : bf16
    %16 = vector.broadcast %cst_16 : bf16 to vector<1x144xbf16>
    %c7_17 = arith.constant 7 : index
    %c0_18 = arith.constant 0 : index
    %17 = vector.load %arg16[%c7_17, %c0_18] : memref<64x144xbf16, #tpu.memory_space<vmem>>, vector<1x144xbf16>
    tpu.vector_store %arg16[%c7_17, %c0_18], %16 {strides = array<i32>} : memref<64x144xbf16, #tpu.memory_space<vmem>>, vector<1x144xbf16>,
    %cst_19 = arith.constant 0.000000e+00 : bf16
    %18 = vector.broadcast %cst_19 : bf16 to vector<1x144xbf16>
    %c24_20 = arith.constant 24 : index
    %c0_21 = arith.constant 0 : index
    %19 = vector.load %arg16[%c24_20, %c0_21] : memref<64x144xbf16, #tpu.memory_space<vmem>>, vector<1x144xbf16>
    tpu.vector_store %arg16[%c24_20, %c0_21], %18 {strides = array<i32>} : memref<64x144xbf16, #tpu.memory_space<vmem>>, vector<1x144xbf16>,
    %cst_22 = arith.constant 0.000000e+00 : bf16
    %20 = vector.broadcast %cst_22 : bf16 to vector<1x144xbf16>
    %c39_23 = arith.constant 39 : index
    %c0_24 = arith.constant 0 : index
    %21 = vector.load %arg16[%c39_23, %c0_24] : memref<64x144xbf16, #tpu.memory_space<vmem>>, vector<1x144xbf16>
    tpu.vector_store %arg16[%c39_23, %c0_24], %20 {strides = array<i32>} : memref<64x144xbf16, #tpu.memory_space<vmem>>, vector<1x144xbf16>,
    %cst_25 = arith.constant 0.000000e+00 : bf16
    %22 = vector.broadcast %cst_25 : bf16 to vector<1x144xbf16>
    %c56_26 = arith.constant 56 : index
    %c0_27 = arith.constant 0 : index
    %23 = vector.load %arg16[%c56_26, %c0_27] : memref<64x144xbf16, #tpu.memory_space<vmem>>, vector<1x144xbf16>
    tpu.vector_store %arg16[%c56_26, %c0_27], %22 {strides = array<i32>} : memref<64x144xbf16, #tpu.memory_space<vmem>>, vector<1x144xbf16>,
    %c0_28 = arith.constant 0 : index
    %c0_29 = arith.constant 0 : index
    %24 = vector.load %arg1[%c0_28, %c0_29] : memref<32x64xf32, #tpu.memory_space<vmem>>, vector<32x64xf32>
    %25 = vector.extract_strided_slice %24 {offsets = [0, 0], sizes = [16, 64], strides = [1, 1]} : vector<32x64xf32> to vector<16x64xf32>
    %26 = vector.extract_strided_slice %24 {offsets = [16, 0], sizes = [16, 64], strides = [1, 1]} : vector<32x64xf32> to vector<16x64xf32>
    %27 = arith.truncf %25 : vector<16x64xf32> to vector<16x64xbf16>
    %c8 = arith.constant 8 : index
    %c4 = arith.constant 4 : index
    %28 = vector.load %arg15[%c8, %c4] : memref<64x72xbf16, #tpu.memory_space<vmem>>, vector<16x64xbf16>
    tpu.vector_store %arg15[%c8, %c4], %27 {strides = array<i32>} : memref<64x72xbf16, #tpu.memory_space<vmem>>, vector<16x64xbf16>,
    %29 = arith.truncf %26 : vector<16x64xf32> to vector<16x64xbf16>
    %c40 = arith.constant 40 : index
    %c4_30 = arith.constant 4 : index
    %30 = vector.load %arg15[%c40, %c4_30] : memref<64x72xbf16, #tpu.memory_space<vmem>>, vector<16x64xbf16>
    tpu.vector_store %arg15[%c40, %c4_30], %29 {strides = array<i32>} : memref<64x72xbf16, #tpu.memory_space<vmem>>, vector<16x64xbf16>,
    %c7_31 = arith.constant 7 : index
    %c0_32 = arith.constant 0 : index
    %31 = vector.load %arg15[%c7_31, %c0_32] : memref<64x72xbf16, #tpu.memory_space<vmem>>, vector<48x72xbf16>
    %c0_33 = arith.constant 0 : index
    %c0_34 = arith.constant 0 : index
    %c0_35 = arith.constant 0 : index
    %32 = vector.load %arg2[%c0_33, %c0_34, %c0_35] : memref<3x72x128xbf16, #tpu.memory_space<vmem>>, vector<1x72x128xbf16>
    %33 = vector.shape_cast %32 : vector<1x72x128xbf16> to vector<72x128xbf16>
    %cst_36 = arith.constant dense<0.000000e+00> : vector<48x128xf32>
    %34 = tpu.matmul %31, %33, %cst_36 {dimension_numbers = #tpu.dot_dimension_numbers<[1], [0], [0], [1], [0, 0, 1, 1], [], []>} : vector<48x72xbf16>, vector<72x128xbf16>, vector<48x128xf32> -> vector<48x128xf32>
    %c8_37 = arith.constant 8 : index
    %c0_38 = arith.constant 0 : index
    %35 = vector.load %arg15[%c8_37, %c0_38] : memref<64x72xbf16, #tpu.memory_space<vmem>>, vector<48x72xbf16>
    %c1 = arith.constant 1 : index
    %c0_39 = arith.constant 0 : index
    %c0_40 = arith.constant 0 : index
    %36 = vector.load %arg2[%c1, %c0_39, %c0_40] : memref<3x72x128xbf16, #tpu.memory_space<vmem>>, vector<1x72x128xbf16>
    %37 = vector.shape_cast %36 : vector<1x72x128xbf16> to vector<72x128xbf16>
    %cst_41 = arith.constant dense<0.000000e+00> : vector<48x128xf32>
    %38 = tpu.matmul %35, %37, %cst_41 {dimension_numbers = #tpu.dot_dimension_numbers<[1], [0], [0], [1], [0, 0, 1, 1], [], []>} : vector<48x72xbf16>, vector<72x128xbf16>, vector<48x128xf32> -> vector<48x128xf32>
    %39 = arith.addf %34, %38 : vector<48x128xf32>
    %c9 = arith.constant 9 : index
    %c0_42 = arith.constant 0 : index
    %40 = vector.load %arg15[%c9, %c0_42] : memref<64x72xbf16, #tpu.memory_space<vmem>>, vector<48x72xbf16>
    %c2 = arith.constant 2 : index
    %c0_43 = arith.constant 0 : index
    %c0_44 = arith.constant 0 : index
    %41 = vector.load %arg2[%c2, %c0_43, %c0_44] : memref<3x72x128xbf16, #tpu.memory_space<vmem>>, vector<1x72x128xbf16>
    %42 = vector.shape_cast %41 : vector<1x72x128xbf16> to vector<72x128xbf16>
    %cst_45 = arith.constant dense<0.000000e+00> : vector<48x128xf32>
    %43 = tpu.matmul %40, %42, %cst_45 {dimension_numbers = #tpu.dot_dimension_numbers<[1], [0], [0], [1], [0, 0, 1, 1], [], []>} : vector<48x72xbf16>, vector<72x128xbf16>, vector<48x128xf32> -> vector<48x128xf32>
    %44 = arith.addf %39, %43 : vector<48x128xf32>
    %c0_46 = arith.constant 0 : index
    %c0_47 = arith.constant 0 : index
    %45 = vector.load %arg3[%c0_46, %c0_47] : memref<1x128xf32, #tpu.memory_space<vmem>>, vector<1x128xf32>
    %46 = vector.extract_strided_slice %44 {offsets = [0, 0], sizes = [16, 128], strides = [1, 1]} : vector<48x128xf32> to vector<16x128xf32>
    %47 = vector.broadcast %45 : vector<1x128xf32> to vector<16x128xf32>
    %48 = arith.addf %46, %47 : vector<16x128xf32>
    %cst_48 = arith.constant 0.000000e+00 : f32
    %49 = vector.broadcast %cst_48 : f32 to vector<16x128xf32>
    %50 = arith.cmpf oge, %48, %49 : vector<16x128xf32>
    %cst_49 = arith.constant 0.00999999977 : f32
    %51 = vector.broadcast %cst_49 : f32 to vector<16x128xf32>
    %52 = arith.mulf %51, %48 : vector<16x128xf32>
    %53 = arith.select %50, %48, %52 : vector<16x128xi1>, vector<16x128xf32>
    %54 = vector.extract_strided_slice %44 {offsets = [32, 0], sizes = [16, 128], strides = [1, 1]} : vector<48x128xf32> to vector<16x128xf32>
    %55 = vector.broadcast %45 : vector<1x128xf32> to vector<16x128xf32>
    %56 = arith.addf %54, %55 : vector<16x128xf32>
    %cst_50 = arith.constant 0.000000e+00 : f32
    %57 = vector.broadcast %cst_50 : f32 to vector<16x128xf32>
    %58 = arith.cmpf oge, %56, %57 : vector<16x128xf32>
    %cst_51 = arith.constant 0.00999999977 : f32
    %59 = vector.broadcast %cst_51 : f32 to vector<16x128xf32>
    %60 = arith.mulf %59, %56 : vector<16x128xf32>
    %61 = arith.select %58, %56, %60 : vector<16x128xi1>, vector<16x128xf32>
    %62 = arith.truncf %53 : vector<16x128xf32> to vector<16x128xbf16>
    %c8_52 = arith.constant 8 : index
    %c8_53 = arith.constant 8 : index
    %63 = vector.load %arg16[%c8_52, %c8_53] : memref<64x144xbf16, #tpu.memory_space<vmem>>, vector<16x128xbf16>
    tpu.vector_store %arg16[%c8_52, %c8_53], %62 {strides = array<i32>} : memref<64x144xbf16, #tpu.memory_space<vmem>>, vector<16x128xbf16>,
    %64 = arith.truncf %61 : vector<16x128xf32> to vector<16x128xbf16>
    %c40_54 = arith.constant 40 : index
    %c8_55 = arith.constant 8 : index
    %65 = vector.load %arg16[%c40_54, %c8_55] : memref<64x144xbf16, #tpu.memory_space<vmem>>, vector<16x128xbf16>
    tpu.vector_store %arg16[%c40_54, %c8_55], %64 {strides = array<i32>} : memref<64x144xbf16, #tpu.memory_space<vmem>>, vector<16x128xbf16>,
    %c7_56 = arith.constant 7 : index
    %c0_57 = arith.constant 0 : index
    %66 = vector.load %arg16[%c7_56, %c0_57] : memref<64x144xbf16, #tpu.memory_space<vmem>>, vector<48x144xbf16>
    %c0_58 = arith.constant 0 : index
    %c0_59 = arith.constant 0 : index
    %c0_60 = arith.constant 0 : index
    %67 = vector.load %arg4[%c0_58, %c0_59, %c0_60] : memref<3x144x128xbf16, #tpu.memory_space<vmem>>, vector<1x144x128xbf16>
    %68 = vector.shape_cast %67 : vector<1x144x128xbf16> to vector<144x128xbf16>
    %cst_61 = arith.constant dense<0.000000e+00> : vector<48x128xf32>
    %69 = tpu.matmul %66, %68, %cst_61 {dimension_numbers = #tpu.dot_dimension_numbers<[1], [0], [0], [1], [0, 0, 1, 1], [], []>} : vector<48x144xbf16>, vector<144x128xbf16>, vector<48x128xf32> -> vector<48x128xf32>
    %c8_62 = arith.constant 8 : index
    %c0_63 = arith.constant 0 : index
    %70 = vector.load %arg16[%c8_62, %c0_63] : memref<64x144xbf16, #tpu.memory_space<vmem>>, vector<48x144xbf16>
    %c1_64 = arith.constant 1 : index
    %c0_65 = arith.constant 0 : index
    %c0_66 = arith.constant 0 : index
    %71 = vector.load %arg4[%c1_64, %c0_65, %c0_66] : memref<3x144x128xbf16, #tpu.memory_space<vmem>>, vector<1x144x128xbf16>
    %72 = vector.shape_cast %71 : vector<1x144x128xbf16> to vector<144x128xbf16>
    %cst_67 = arith.constant dense<0.000000e+00> : vector<48x128xf32>
    %73 = tpu.matmul %70, %72, %cst_67 {dimension_numbers = #tpu.dot_dimension_numbers<[1], [0], [0], [1], [0, 0, 1, 1], [], []>} : vector<48x144xbf16>, vector<144x128xbf16>, vector<48x128xf32> -> vector<48x128xf32>
    %74 = arith.addf %69, %73 : vector<48x128xf32>
    %c9_68 = arith.constant 9 : index
    %c0_69 = arith.constant 0 : index
    %75 = vector.load %arg16[%c9_68, %c0_69] : memref<64x144xbf16, #tpu.memory_space<vmem>>, vector<48x144xbf16>
    %c2_70 = arith.constant 2 : index
    %c0_71 = arith.constant 0 : index
    %c0_72 = arith.constant 0 : index
    %76 = vector.load %arg4[%c2_70, %c0_71, %c0_72] : memref<3x144x128xbf16, #tpu.memory_space<vmem>>, vector<1x144x128xbf16>
    %77 = vector.shape_cast %76 : vector<1x144x128xbf16> to vector<144x128xbf16>
    %cst_73 = arith.constant dense<0.000000e+00> : vector<48x128xf32>
    %78 = tpu.matmul %75, %77, %cst_73 {dimension_numbers = #tpu.dot_dimension_numbers<[1], [0], [0], [1], [0, 0, 1, 1], [], []>} : vector<48x144xbf16>, vector<144x128xbf16>, vector<48x128xf32> -> vector<48x128xf32>
    %79 = arith.addf %74, %78 : vector<48x128xf32>
    %c0_74 = arith.constant 0 : index
    %c0_75 = arith.constant 0 : index
    %80 = vector.load %arg5[%c0_74, %c0_75] : memref<1x128xf32, #tpu.memory_space<vmem>>, vector<1x128xf32>
    %81 = vector.extract_strided_slice %79 {offsets = [0, 0], sizes = [16, 128], strides = [1, 1]} : vector<48x128xf32> to vector<16x128xf32>
    %82 = vector.broadcast %80 : vector<1x128xf32> to vector<16x128xf32>
    %83 = arith.addf %81, %82 : vector<16x128xf32>
    %cst_76 = arith.constant 0.000000e+00 : f32
    %84 = vector.broadcast %cst_76 : f32 to vector<16x128xf32>
    %85 = arith.cmpf oge, %83, %84 : vector<16x128xf32>
    %cst_77 = arith.constant 0.00999999977 : f32
    %86 = vector.broadcast %cst_77 : f32 to vector<16x128xf32>
    %87 = arith.mulf %86, %83 : vector<16x128xf32>
    %88 = arith.select %85, %83, %87 : vector<16x128xi1>, vector<16x128xf32>
    %89 = vector.extract_strided_slice %79 {offsets = [32, 0], sizes = [16, 128], strides = [1, 1]} : vector<48x128xf32> to vector<16x128xf32>
    %90 = vector.broadcast %80 : vector<1x128xf32> to vector<16x128xf32>
    %91 = arith.addf %89, %90 : vector<16x128xf32>
    %cst_78 = arith.constant 0.000000e+00 : f32
    %92 = vector.broadcast %cst_78 : f32 to vector<16x128xf32>
    %93 = arith.cmpf oge, %91, %92 : vector<16x128xf32>
    %cst_79 = arith.constant 0.00999999977 : f32
    %94 = vector.broadcast %cst_79 : f32 to vector<16x128xf32>
    %95 = arith.mulf %94, %91 : vector<16x128xf32>
    %96 = arith.select %93, %91, %95 : vector<16x128xi1>, vector<16x128xf32>
    %97 = vector.extract_strided_slice %88 {offsets = [0, 0], sizes = [1, 128], strides = [1, 1]} : vector<16x128xf32> to vector<1x128xf32>
    %c0_80 = arith.constant 0 : index
    %c0_81 = arith.constant 0 : index
    %98 = vector.load %arg17[%c0_80, %c0_81] : memref<2x2048xf32, #tpu.memory_space<vmem>>, vector<1x128xf32>
    tpu.vector_store %arg17[%c0_80, %c0_81], %97 {strides = array<i32>} : memref<2x2048xf32, #tpu.memory_space<vmem>>, vector<1x128xf32>,
    %99 = vector.extract_strided_slice %88 {offsets = [1, 0], sizes = [1, 128], strides = [1, 1]} : vector<16x128xf32> to vector<1x128xf32>
    %c0_82 = arith.constant 0 : index
    %c128 = arith.constant 128 : index
    %100 = vector.load %arg17[%c0_82, %c128] : memref<2x2048xf32, #tpu.memory_space<vmem>>, vector<1x128xf32>
    tpu.vector_store %arg17[%c0_82, %c128], %99 {strides = array<i32>} : memref<2x2048xf32, #tpu.memory_space<vmem>>, vector<1x128xf32>,
    %101 = vector.extract_strided_slice %88 {offsets = [2, 0], sizes = [1, 128], strides = [1, 1]} : vector<16x128xf32> to vector<1x128xf32>
    %c0_83 = arith.constant 0 : index
    %c256 = arith.constant 256 : index
    %102 = vector.load %arg17[%c0_83, %c256] : memref<2x2048xf32, #tpu.memory_space<vmem>>, vector<1x128xf32>
    tpu.vector_store %arg17[%c0_83, %c256], %101 {strides = array<i32>} : memref<2x2048xf32, #tpu.memory_space<vmem>>, vector<1x128xf32>,
    %103 = vector.extract_strided_slice %88 {offsets = [3, 0], sizes = [1, 128], strides = [1, 1]} : vector<16x128xf32> to vector<1x128xf32>
    %c0_84 = arith.constant 0 : index
    %c384 = arith.constant 384 : index
    %104 = vector.load %arg17[%c0_84, %c384] : memref<2x2048xf32, #tpu.memory_space<vmem>>, vector<1x128xf32>
    tpu.vector_store %arg17[%c0_84, %c384], %103 {strides = array<i32>} : memref<2x2048xf32, #tpu.memory_space<vmem>>, vector<1x128xf32>,
    %105 = vector.extract_strided_slice %88 {offsets = [4, 0], sizes = [1, 128], strides = [1, 1]} : vector<16x128xf32> to vector<1x128xf32>
    %c0_85 = arith.constant 0 : index
    %c512 = arith.constant 512 : index
    %106 = vector.load %arg17[%c0_85, %c512] : memref<2x2048xf32, #tpu.memory_space<vmem>>, vector<1x128xf32>
    tpu.vector_store %arg17[%c0_85, %c512], %105 {strides = array<i32>} : memref<2x2048xf32, #tpu.memory_space<vmem>>, vector<1x128xf32>,
    %107 = vector.extract_strided_slice %88 {offsets = [5, 0], sizes = [1, 128], strides = [1, 1]} : vector<16x128xf32> to vector<1x128xf32>
    %c0_86 = arith.constant 0 : index
    %c640 = arith.constant 640 : index
    %108 = vector.load %arg17[%c0_86, %c640] : memref<2x2048xf32, #tpu.memory_space<vmem>>, vector<1x128xf32>
    tpu.vector_store %arg17[%c0_86, %c640], %107 {strides = array<i32>} : memref<2x2048xf32, #tpu.memory_space<vmem>>, vector<1x128xf32>,
    %109 = vector.extract_strided_slice %88 {offsets = [6, 0], sizes = [1, 128], strides = [1, 1]} : vector<16x128xf32> to vector<1x128xf32>
    %c0_87 = arith.constant 0 : index
    %c768 = arith.constant 768 : index
    %110 = vector.load %arg17[%c0_87, %c768] : memref<2x2048xf32, #tpu.memory_space<vmem>>, vector<1x128xf32>
    tpu.vector_store %arg17[%c0_87, %c768], %109 {strides = array<i32>} : memref<2x2048xf32, #tpu.memory_space<vmem>>, vector<1x128xf32>,
    %111 = vector.extract_strided_slice %88 {offsets = [7, 0], sizes = [1, 128], strides = [1, 1]} : vector<16x128xf32> to vector<1x128xf32>
    %c0_88 = arith.constant 0 : index
    %c896 = arith.constant 896 : index
    %112 = vector.load %arg17[%c0_88, %c896] : memref<2x2048xf32, #tpu.memory_space<vmem>>, vector<1x128xf32>
    tpu.vector_store %arg17[%c0_88, %c896], %111 {strides = array<i32>} : memref<2x2048xf32, #tpu.memory_space<vmem>>, vector<1x128xf32>,
    %113 = vector.extract_strided_slice %88 {offsets = [8, 0], sizes = [1, 128], strides = [1, 1]} : vector<16x128xf32> to vector<1x128xf32>
    %c0_89 = arith.constant 0 : index
    %c1024 = arith.constant 1024 : index
    %114 = vector.load %arg17[%c0_89, %c1024] : memref<2x2048xf32, #tpu.memory_space<vmem>>, vector<1x128xf32>
    tpu.vector_store %arg17[%c0_89, %c1024], %113 {strides = array<i32>} : memref<2x2048xf32, #tpu.memory_space<vmem>>, vector<1x128xf32>,
    %115 = vector.extract_strided_slice %88 {offsets = [9, 0], sizes = [1, 128], strides = [1, 1]} : vector<16x128xf32> to vector<1x128xf32>
    %c0_90 = arith.constant 0 : index
    %c1152 = arith.constant 1152 : index
    %116 = vector.load %arg17[%c0_90, %c1152] : memref<2x2048xf32, #tpu.memory_space<vmem>>, vector<1x128xf32>
    tpu.vector_store %arg17[%c0_90, %c1152], %115 {strides = array<i32>} : memref<2x2048xf32, #tpu.memory_space<vmem>>, vector<1x128xf32>,
    %117 = vector.extract_strided_slice %88 {offsets = [10, 0], sizes = [1, 128], strides = [1, 1]} : vector<16x128xf32> to vector<1x128xf32>
    %c0_91 = arith.constant 0 : index
    %c1280 = arith.constant 1280 : index
    %118 = vector.load %arg17[%c0_91, %c1280] : memref<2x2048xf32, #tpu.memory_space<vmem>>, vector<1x128xf32>
    tpu.vector_store %arg17[%c0_91, %c1280], %117 {strides = array<i32>} : memref<2x2048xf32, #tpu.memory_space<vmem>>, vector<1x128xf32>,
    %119 = vector.extract_strided_slice %88 {offsets = [11, 0], sizes = [1, 128], strides = [1, 1]} : vector<16x128xf32> to vector<1x128xf32>
    %c0_92 = arith.constant 0 : index
    %c1408 = arith.constant 1408 : index
    %120 = vector.load %arg17[%c0_92, %c1408] : memref<2x2048xf32, #tpu.memory_space<vmem>>, vector<1x128xf32>
    tpu.vector_store %arg17[%c0_92, %c1408], %119 {strides = array<i32>} : memref<2x2048xf32, #tpu.memory_space<vmem>>, vector<1x128xf32>,
    %121 = vector.extract_strided_slice %88 {offsets = [12, 0], sizes = [1, 128], strides = [1, 1]} : vector<16x128xf32> to vector<1x128xf32>
    %c0_93 = arith.constant 0 : index
    %c1536 = arith.constant 1536 : index
    %122 = vector.load %arg17[%c0_93, %c1536] : memref<2x2048xf32, #tpu.memory_space<vmem>>, vector<1x128xf32>
    tpu.vector_store %arg17[%c0_93, %c1536], %121 {strides = array<i32>} : memref<2x2048xf32, #tpu.memory_space<vmem>>, vector<1x128xf32>,
    %123 = vector.extract_strided_slice %88 {offsets = [13, 0], sizes = [1, 128], strides = [1, 1]} : vector<16x128xf32> to vector<1x128xf32>
    %c0_94 = arith.constant 0 : index
    %c1664 = arith.constant 1664 : index
    %124 = vector.load %arg17[%c0_94, %c1664] : memref<2x2048xf32, #tpu.memory_space<vmem>>, vector<1x128xf32>
    tpu.vector_store %arg17[%c0_94, %c1664], %123 {strides = array<i32>} : memref<2x2048xf32, #tpu.memory_space<vmem>>, vector<1x128xf32>,
    %125 = vector.extract_strided_slice %88 {offsets = [14, 0], sizes = [1, 128], strides = [1, 1]} : vector<16x128xf32> to vector<1x128xf32>
    %c0_95 = arith.constant 0 : index
    %c1792 = arith.constant 1792 : index
    %126 = vector.load %arg17[%c0_95, %c1792] : memref<2x2048xf32, #tpu.memory_space<vmem>>, vector<1x128xf32>
    tpu.vector_store %arg17[%c0_95, %c1792], %125 {strides = array<i32>} : memref<2x2048xf32, #tpu.memory_space<vmem>>, vector<1x128xf32>,
    %127 = vector.extract_strided_slice %88 {offsets = [15, 0], sizes = [1, 128], strides = [1, 1]} : vector<16x128xf32> to vector<1x128xf32>
    %c0_96 = arith.constant 0 : index
    %c1920 = arith.constant 1920 : index
    %128 = vector.load %arg17[%c0_96, %c1920] : memref<2x2048xf32, #tpu.memory_space<vmem>>, vector<1x128xf32>
    tpu.vector_store %arg17[%c0_96, %c1920], %127 {strides = array<i32>} : memref<2x2048xf32, #tpu.memory_space<vmem>>, vector<1x128xf32>,
    %129 = vector.extract_strided_slice %96 {offsets = [0, 0], sizes = [1, 128], strides = [1, 1]} : vector<16x128xf32> to vector<1x128xf32>
    %c1_97 = arith.constant 1 : index
    %c0_98 = arith.constant 0 : index
    %130 = vector.load %arg17[%c1_97, %c0_98] : memref<2x2048xf32, #tpu.memory_space<vmem>>, vector<1x128xf32>
    tpu.vector_store %arg17[%c1_97, %c0_98], %129 {strides = array<i32>} : memref<2x2048xf32, #tpu.memory_space<vmem>>, vector<1x128xf32>,
    %131 = vector.extract_strided_slice %96 {offsets = [1, 0], sizes = [1, 128], strides = [1, 1]} : vector<16x128xf32> to vector<1x128xf32>
    %c1_99 = arith.constant 1 : index
    %c128_100 = arith.constant 128 : index
    %132 = vector.load %arg17[%c1_99, %c128_100] : memref<2x2048xf32, #tpu.memory_space<vmem>>, vector<1x128xf32>
    tpu.vector_store %arg17[%c1_99, %c128_100], %131 {strides = array<i32>} : memref<2x2048xf32, #tpu.memory_space<vmem>>, vector<1x128xf32>,
    %133 = vector.extract_strided_slice %96 {offsets = [2, 0], sizes = [1, 128], strides = [1, 1]} : vector<16x128xf32> to vector<1x128xf32>
    %c1_101 = arith.constant 1 : index
    %c256_102 = arith.constant 256 : index
    %134 = vector.load %arg17[%c1_101, %c256_102] : memref<2x2048xf32, #tpu.memory_space<vmem>>, vector<1x128xf32>
    tpu.vector_store %arg17[%c1_101, %c256_102], %133 {strides = array<i32>} : memref<2x2048xf32, #tpu.memory_space<vmem>>, vector<1x128xf32>,
    %135 = vector.extract_strided_slice %96 {offsets = [3, 0], sizes = [1, 128], strides = [1, 1]} : vector<16x128xf32> to vector<1x128xf32>
    %c1_103 = arith.constant 1 : index
    %c384_104 = arith.constant 384 : index
    %136 = vector.load %arg17[%c1_103, %c384_104] : memref<2x2048xf32, #tpu.memory_space<vmem>>, vector<1x128xf32>
    tpu.vector_store %arg17[%c1_103, %c384_104], %135 {strides = array<i32>} : memref<2x2048xf32, #tpu.memory_space<vmem>>, vector<1x128xf32>,
    %137 = vector.extract_strided_slice %96 {offsets = [4, 0], sizes = [1, 128], strides = [1, 1]} : vector<16x128xf32> to vector<1x128xf32>
    %c1_105 = arith.constant 1 : index
    %c512_106 = arith.constant 512 : index
    %138 = vector.load %arg17[%c1_105, %c512_106] : memref<2x2048xf32, #tpu.memory_space<vmem>>, vector<1x128xf32>
    tpu.vector_store %arg17[%c1_105, %c512_106], %137 {strides = array<i32>} : memref<2x2048xf32, #tpu.memory_space<vmem>>, vector<1x128xf32>,
    %139 = vector.extract_strided_slice %96 {offsets = [5, 0], sizes = [1, 128], strides = [1, 1]} : vector<16x128xf32> to vector<1x128xf32>
    %c1_107 = arith.constant 1 : index
    %c640_108 = arith.constant 640 : index
    %140 = vector.load %arg17[%c1_107, %c640_108] : memref<2x2048xf32, #tpu.memory_space<vmem>>, vector<1x128xf32>
    tpu.vector_store %arg17[%c1_107, %c640_108], %139 {strides = array<i32>} : memref<2x2048xf32, #tpu.memory_space<vmem>>, vector<1x128xf32>,
    %141 = vector.extract_strided_slice %96 {offsets = [6, 0], sizes = [1, 128], strides = [1, 1]} : vector<16x128xf32> to vector<1x128xf32>
    %c1_109 = arith.constant 1 : index
    %c768_110 = arith.constant 768 : index
    %142 = vector.load %arg17[%c1_109, %c768_110] : memref<2x2048xf32, #tpu.memory_space<vmem>>, vector<1x128xf32>
    tpu.vector_store %arg17[%c1_109, %c768_110], %141 {strides = array<i32>} : memref<2x2048xf32, #tpu.memory_space<vmem>>, vector<1x128xf32>,
    %143 = vector.extract_strided_slice %96 {offsets = [7, 0], sizes = [1, 128], strides = [1, 1]} : vector<16x128xf32> to vector<1x128xf32>
    %c1_111 = arith.constant 1 : index
    %c896_112 = arith.constant 896 : index
    %144 = vector.load %arg17[%c1_111, %c896_112] : memref<2x2048xf32, #tpu.memory_space<vmem>>, vector<1x128xf32>
    tpu.vector_store %arg17[%c1_111, %c896_112], %143 {strides = array<i32>} : memref<2x2048xf32, #tpu.memory_space<vmem>>, vector<1x128xf32>,
    %145 = vector.extract_strided_slice %96 {offsets = [8, 0], sizes = [1, 128], strides = [1, 1]} : vector<16x128xf32> to vector<1x128xf32>
    %c1_113 = arith.constant 1 : index
    %c1024_114 = arith.constant 1024 : index
    %146 = vector.load %arg17[%c1_113, %c1024_114] : memref<2x2048xf32, #tpu.memory_space<vmem>>, vector<1x128xf32>
    tpu.vector_store %arg17[%c1_113, %c1024_114], %145 {strides = array<i32>} : memref<2x2048xf32, #tpu.memory_space<vmem>>, vector<1x128xf32>,
    %147 = vector.extract_strided_slice %96 {offsets = [9, 0], sizes = [1, 128], strides = [1, 1]} : vector<16x128xf32> to vector<1x128xf32>
    %c1_115 = arith.constant 1 : index
    %c1152_116 = arith.constant 1152 : index
    %148 = vector.load %arg17[%c1_115, %c1152_116] : memref<2x2048xf32, #tpu.memory_space<vmem>>, vector<1x128xf32>
    tpu.vector_store %arg17[%c1_115, %c1152_116], %147 {strides = array<i32>} : memref<2x2048xf32, #tpu.memory_space<vmem>>, vector<1x128xf32>,
    %149 = vector.extract_strided_slice %96 {offsets = [10, 0], sizes = [1, 128], strides = [1, 1]} : vector<16x128xf32> to vector<1x128xf32>
    %c1_117 = arith.constant 1 : index
    %c1280_118 = arith.constant 1280 : index
    %150 = vector.load %arg17[%c1_117, %c1280_118] : memref<2x2048xf32, #tpu.memory_space<vmem>>, vector<1x128xf32>
    tpu.vector_store %arg17[%c1_117, %c1280_118], %149 {strides = array<i32>} : memref<2x2048xf32, #tpu.memory_space<vmem>>, vector<1x128xf32>,
    %151 = vector.extract_strided_slice %96 {offsets = [11, 0], sizes = [1, 128], strides = [1, 1]} : vector<16x128xf32> to vector<1x128xf32>
    %c1_119 = arith.constant 1 : index
    %c1408_120 = arith.constant 1408 : index
    %152 = vector.load %arg17[%c1_119, %c1408_120] : memref<2x2048xf32, #tpu.memory_space<vmem>>, vector<1x128xf32>
    tpu.vector_store %arg17[%c1_119, %c1408_120], %151 {strides = array<i32>} : memref<2x2048xf32, #tpu.memory_space<vmem>>, vector<1x128xf32>,
    %153 = vector.extract_strided_slice %96 {offsets = [12, 0], sizes = [1, 128], strides = [1, 1]} : vector<16x128xf32> to vector<1x128xf32>
    %c1_121 = arith.constant 1 : index
    %c1536_122 = arith.constant 1536 : index
    %154 = vector.load %arg17[%c1_121, %c1536_122] : memref<2x2048xf32, #tpu.memory_space<vmem>>, vector<1x128xf32>
    tpu.vector_store %arg17[%c1_121, %c1536_122], %153 {strides = array<i32>} : memref<2x2048xf32, #tpu.memory_space<vmem>>, vector<1x128xf32>,
    %155 = vector.extract_strided_slice %96 {offsets = [13, 0], sizes = [1, 128], strides = [1, 1]} : vector<16x128xf32> to vector<1x128xf32>
    %c1_123 = arith.constant 1 : index
    %c1664_124 = arith.constant 1664 : index
    %156 = vector.load %arg17[%c1_123, %c1664_124] : memref<2x2048xf32, #tpu.memory_space<vmem>>, vector<1x128xf32>
    tpu.vector_store %arg17[%c1_123, %c1664_124], %155 {strides = array<i32>} : memref<2x2048xf32, #tpu.memory_space<vmem>>, vector<1x128xf32>,
    %157 = vector.extract_strided_slice %96 {offsets = [14, 0], sizes = [1, 128], strides = [1, 1]} : vector<16x128xf32> to vector<1x128xf32>
    %c1_125 = arith.constant 1 : index
    %c1792_126 = arith.constant 1792 : index
    %158 = vector.load %arg17[%c1_125, %c1792_126] : memref<2x2048xf32, #tpu.memory_space<vmem>>, vector<1x128xf32>
    tpu.vector_store %arg17[%c1_125, %c1792_126], %157 {strides = array<i32>} : memref<2x2048xf32, #tpu.memory_space<vmem>>, vector<1x128xf32>,
    %159 = vector.extract_strided_slice %96 {offsets = [15, 0], sizes = [1, 128], strides = [1, 1]} : vector<16x128xf32> to vector<1x128xf32>
    %c1_127 = arith.constant 1 : index
    %c1920_128 = arith.constant 1920 : index
    %160 = vector.load %arg17[%c1_127, %c1920_128] : memref<2x2048xf32, #tpu.memory_space<vmem>>, vector<1x128xf32>
    tpu.vector_store %arg17[%c1_127, %c1920_128], %159 {strides = array<i32>} : memref<2x2048xf32, #tpu.memory_space<vmem>>, vector<1x128xf32>,
    %c0_129 = arith.constant 0 : index
    %c0_130 = arith.constant 0 : index
    %161 = vector.load %arg17[%c0_129, %c0_130] : memref<2x2048xf32, #tpu.memory_space<vmem>>, vector<2x2048xf32>
    %162 = arith.truncf %161 : vector<2x2048xf32> to vector<2x2048xbf16>
    %c0_131 = arith.constant 0 : index
    %c0_132 = arith.constant 0 : index
    %163 = vector.load %arg10[%c0_131, %c0_132] : memref<2048x32xbf16, #tpu.memory_space<vmem>>, vector<2048x32xbf16>
    %cst_133 = arith.constant dense<0.000000e+00> : vector<2x32xf32>
    %164 = tpu.matmul %162, %163, %cst_133 {dimension_numbers = #tpu.dot_dimension_numbers<[1], [0], [0], [1], [0, 0, 1, 1], [], []>} : vector<2x2048xbf16>, vector<2048x32xbf16>, vector<2x32xf32> -> vector<2x32xf32>
    %c0_134 = arith.constant 0 : index
    %c0_135 = arith.constant 0 : index
    %165 = vector.load %arg11[%c0_134, %c0_135] : memref<1x32xf32, #tpu.memory_space<vmem>>, vector<1x32xf32>
    %166 = vector.broadcast %165 : vector<1x32xf32> to vector<2x32xf32>
    %167 = arith.addf %164, %166 : vector<2x32xf32>
    %168 = arith.truncf %167 : vector<2x32xf32> to vector<2x32xbf16>
    %c0_136 = arith.constant 0 : index
    %c0_137 = arith.constant 0 : index
    %169 = vector.load %arg12[%c0_136, %c0_137] : memref<32x2048xbf16, #tpu.memory_space<vmem>>, vector<32x2048xbf16>
    %cst_138 = arith.constant dense<0.000000e+00> : vector<2x2048xf32>
    %170 = tpu.matmul %168, %169, %cst_138 {dimension_numbers = #tpu.dot_dimension_numbers<[1], [0], [0], [1], [0, 0, 1, 1], [], []>} : vector<2x32xbf16>, vector<32x2048xbf16>, vector<2x2048xf32> -> vector<2x2048xf32>
    %c0_139 = arith.constant 0 : index
    %c0_140 = arith.constant 0 : index
    %171 = vector.load %arg13[%c0_139, %c0_140] : memref<1x2048xf32, #tpu.memory_space<vmem>>, vector<1x2048xf32>
    %172 = vector.broadcast %171 : vector<1x2048xf32> to vector<2x2048xf32>
    %173 = arith.addf %170, %172 : vector<2x2048xf32>
    %174 = vector.extract_strided_slice %173 {offsets = [0, 0], sizes = [1, 128], strides = [1, 1]} : vector<2x2048xf32> to vector<1x128xf32>
    %175 = arith.truncf %174 : vector<1x128xf32> to vector<1x128xbf16>
    %c8_141 = arith.constant 8 : index
    %c8_142 = arith.constant 8 : index
    %176 = vector.load %arg16[%c8_141, %c8_142] : memref<64x144xbf16, #tpu.memory_space<vmem>>, vector<1x128xbf16>
    tpu.vector_store %arg16[%c8_141, %c8_142], %175 {strides = array<i32>} : memref<64x144xbf16, #tpu.memory_space<vmem>>, vector<1x128xbf16>,
    %177 = vector.extract_strided_slice %173 {offsets = [0, 128], sizes = [1, 128], strides = [1, 1]} : vector<2x2048xf32> to vector<1x128xf32>
    %178 = arith.truncf %177 : vector<1x128xf32> to vector<1x128xbf16>
    %c9_143 = arith.constant 9 : index
    %c8_144 = arith.constant 8 : index
    %179 = vector.load %arg16[%c9_143, %c8_144] : memref<64x144xbf16, #tpu.memory_space<vmem>>, vector<1x128xbf16>
    tpu.vector_store %arg16[%c9_143, %c8_144], %178 {strides = array<i32>} : memref<64x144xbf16, #tpu.memory_space<vmem>>, vector<1x128xbf16>,
    %180 = vector.extract_strided_slice %173 {offsets = [0, 256], sizes = [1, 128], strides = [1, 1]} : vector<2x2048xf32> to vector<1x128xf32>
    %181 = arith.truncf %180 : vector<1x128xf32> to vector<1x128xbf16>
    %c10 = arith.constant 10 : index
    %c8_145 = arith.constant 8 : index
    %182 = vector.load %arg16[%c10, %c8_145] : memref<64x144xbf16, #tpu.memory_space<vmem>>, vector<1x128xbf16>
    tpu.vector_store %arg16[%c10, %c8_145], %181 {strides = array<i32>} : memref<64x144xbf16, #tpu.memory_space<vmem>>, vector<1x128xbf16>,
    %183 = vector.extract_strided_slice %173 {offsets = [0, 384], sizes = [1, 128], strides = [1, 1]} : vector<2x2048xf32> to vector<1x128xf32>
    %184 = arith.truncf %183 : vector<1x128xf32> to vector<1x128xbf16>
    %c11 = arith.constant 11 : index
    %c8_146 = arith.constant 8 : index
    %185 = vector.load %arg16[%c11, %c8_146] : memref<64x144xbf16, #tpu.memory_space<vmem>>, vector<1x128xbf16>
    tpu.vector_store %arg16[%c11, %c8_146], %184 {strides = array<i32>} : memref<64x144xbf16, #tpu.memory_space<vmem>>, vector<1x128xbf16>,
    %186 = vector.extract_strided_slice %173 {offsets = [0, 512], sizes = [1, 128], strides = [1, 1]} : vector<2x2048xf32> to vector<1x128xf32>
    %187 = arith.truncf %186 : vector<1x128xf32> to vector<1x128xbf16>
    %c12 = arith.constant 12 : index
    %c8_147 = arith.constant 8 : index
    %188 = vector.load %arg16[%c12, %c8_147] : memref<64x144xbf16, #tpu.memory_space<vmem>>, vector<1x128xbf16>
    tpu.vector_store %arg16[%c12, %c8_147], %187 {strides = array<i32>} : memref<64x144xbf16, #tpu.memory_space<vmem>>, vector<1x128xbf16>,
    %189 = vector.extract_strided_slice %173 {offsets = [0, 640], sizes = [1, 128], strides = [1, 1]} : vector<2x2048xf32> to vector<1x128xf32>
    %190 = arith.truncf %189 : vector<1x128xf32> to vector<1x128xbf16>
    %c13 = arith.constant 13 : index
    %c8_148 = arith.constant 8 : index
    %191 = vector.load %arg16[%c13, %c8_148] : memref<64x144xbf16, #tpu.memory_space<vmem>>, vector<1x128xbf16>
    tpu.vector_store %arg16[%c13, %c8_148], %190 {strides = array<i32>} : memref<64x144xbf16, #tpu.memory_space<vmem>>, vector<1x128xbf16>,
    %192 = vector.extract_strided_slice %173 {offsets = [0, 768], sizes = [1, 128], strides = [1, 1]} : vector<2x2048xf32> to vector<1x128xf32>
    %193 = arith.truncf %192 : vector<1x128xf32> to vector<1x128xbf16>
    %c14 = arith.constant 14 : index
    %c8_149 = arith.constant 8 : index
    %194 = vector.load %arg16[%c14, %c8_149] : memref<64x144xbf16, #tpu.memory_space<vmem>>, vector<1x128xbf16>
    tpu.vector_store %arg16[%c14, %c8_149], %193 {strides = array<i32>} : memref<64x144xbf16, #tpu.memory_space<vmem>>, vector<1x128xbf16>,
    %195 = vector.extract_strided_slice %173 {offsets = [0, 896], sizes = [1, 128], strides = [1, 1]} : vector<2x2048xf32> to vector<1x128xf32>
    %196 = arith.truncf %195 : vector<1x128xf32> to vector<1x128xbf16>
    %c15 = arith.constant 15 : index
    %c8_150 = arith.constant 8 : index
    %197 = vector.load %arg16[%c15, %c8_150] : memref<64x144xbf16, #tpu.memory_space<vmem>>, vector<1x128xbf16>
    tpu.vector_store %arg16[%c15, %c8_150], %196 {strides = array<i32>} : memref<64x144xbf16, #tpu.memory_space<vmem>>, vector<1x128xbf16>,
    %198 = vector.extract_strided_slice %173 {offsets = [0, 1024], sizes = [1, 128], strides = [1, 1]} : vector<2x2048xf32> to vector<1x128xf32>
    %199 = arith.truncf %198 : vector<1x128xf32> to vector<1x128xbf16>
    %c16 = arith.constant 16 : index
    %c8_151 = arith.constant 8 : index
    %200 = vector.load %arg16[%c16, %c8_151] : memref<64x144xbf16, #tpu.memory_space<vmem>>, vector<1x128xbf16>
    tpu.vector_store %arg16[%c16, %c8_151], %199 {strides = array<i32>} : memref<64x144xbf16, #tpu.memory_space<vmem>>, vector<1x128xbf16>,
    %201 = vector.extract_strided_slice %173 {offsets = [0, 1152], sizes = [1, 128], strides = [1, 1]} : vector<2x2048xf32> to vector<1x128xf32>
    %202 = arith.truncf %201 : vector<1x128xf32> to vector<1x128xbf16>
    %c17 = arith.constant 17 : index
    %c8_152 = arith.constant 8 : index
    %203 = vector.load %arg16[%c17, %c8_152] : memref<64x144xbf16, #tpu.memory_space<vmem>>, vector<1x128xbf16>
    tpu.vector_store %arg16[%c17, %c8_152], %202 {strides = array<i32>} : memref<64x144xbf16, #tpu.memory_space<vmem>>, vector<1x128xbf16>,
    %204 = vector.extract_strided_slice %173 {offsets = [0, 1280], sizes = [1, 128], strides = [1, 1]} : vector<2x2048xf32> to vector<1x128xf32>
    %205 = arith.truncf %204 : vector<1x128xf32> to vector<1x128xbf16>
    %c18 = arith.constant 18 : index
    %c8_153 = arith.constant 8 : index
    %206 = vector.load %arg16[%c18, %c8_153] : memref<64x144xbf16, #tpu.memory_space<vmem>>, vector<1x128xbf16>
    tpu.vector_store %arg16[%c18, %c8_153], %205 {strides = array<i32>} : memref<64x144xbf16, #tpu.memory_space<vmem>>, vector<1x128xbf16>,
    %207 = vector.extract_strided_slice %173 {offsets = [0, 1408], sizes = [1, 128], strides = [1, 1]} : vector<2x2048xf32> to vector<1x128xf32>
    %208 = arith.truncf %207 : vector<1x128xf32> to vector<1x128xbf16>
    %c19 = arith.constant 19 : index
    %c8_154 = arith.constant 8 : index
    %209 = vector.load %arg16[%c19, %c8_154] : memref<64x144xbf16, #tpu.memory_space<vmem>>, vector<1x128xbf16>
    tpu.vector_store %arg16[%c19, %c8_154], %208 {strides = array<i32>} : memref<64x144xbf16, #tpu.memory_space<vmem>>, vector<1x128xbf16>,
    %210 = vector.extract_strided_slice %173 {offsets = [0, 1536], sizes = [1, 128], strides = [1, 1]} : vector<2x2048xf32> to vector<1x128xf32>
    %211 = arith.truncf %210 : vector<1x128xf32> to vector<1x128xbf16>
    %c20 = arith.constant 20 : index
    %c8_155 = arith.constant 8 : index
    %212 = vector.load %arg16[%c20, %c8_155] : memref<64x144xbf16, #tpu.memory_space<vmem>>, vector<1x128xbf16>
    tpu.vector_store %arg16[%c20, %c8_155], %211 {strides = array<i32>} : memref<64x144xbf16, #tpu.memory_space<vmem>>, vector<1x128xbf16>,
    %213 = vector.extract_strided_slice %173 {offsets = [0, 1664], sizes = [1, 128], strides = [1, 1]} : vector<2x2048xf32> to vector<1x128xf32>
    %214 = arith.truncf %213 : vector<1x128xf32> to vector<1x128xbf16>
    %c21 = arith.constant 21 : index
    %c8_156 = arith.constant 8 : index
    %215 = vector.load %arg16[%c21, %c8_156] : memref<64x144xbf16, #tpu.memory_space<vmem>>, vector<1x128xbf16>
    tpu.vector_store %arg16[%c21, %c8_156], %214 {strides = array<i32>} : memref<64x144xbf16, #tpu.memory_space<vmem>>, vector<1x128xbf16>,
    %216 = vector.extract_strided_slice %173 {offsets = [0, 1792], sizes = [1, 128], strides = [1, 1]} : vector<2x2048xf32> to vector<1x128xf32>
    %217 = arith.truncf %216 : vector<1x128xf32> to vector<1x128xbf16>
    %c22 = arith.constant 22 : index
    %c8_157 = arith.constant 8 : index
    %218 = vector.load %arg16[%c22, %c8_157] : memref<64x144xbf16, #tpu.memory_space<vmem>>, vector<1x128xbf16>
    tpu.vector_store %arg16[%c22, %c8_157], %217 {strides = array<i32>} : memref<64x144xbf16, #tpu.memory_space<vmem>>, vector<1x128xbf16>,
    %219 = vector.extract_strided_slice %173 {offsets = [0, 1920], sizes = [1, 128], strides = [1, 1]} : vector<2x2048xf32> to vector<1x128xf32>
    %220 = arith.truncf %219 : vector<1x128xf32> to vector<1x128xbf16>
    %c23 = arith.constant 23 : index
    %c8_158 = arith.constant 8 : index
    %221 = vector.load %arg16[%c23, %c8_158] : memref<64x144xbf16, #tpu.memory_space<vmem>>, vector<1x128xbf16>
    tpu.vector_store %arg16[%c23, %c8_158], %220 {strides = array<i32>} : memref<64x144xbf16, #tpu.memory_space<vmem>>, vector<1x128xbf16>,
    %222 = vector.extract_strided_slice %173 {offsets = [1, 0], sizes = [1, 128], strides = [1, 1]} : vector<2x2048xf32> to vector<1x128xf32>
    %223 = arith.truncf %222 : vector<1x128xf32> to vector<1x128xbf16>
    %c40_159 = arith.constant 40 : index
    %c8_160 = arith.constant 8 : index
    %224 = vector.load %arg16[%c40_159, %c8_160] : memref<64x144xbf16, #tpu.memory_space<vmem>>, vector<1x128xbf16>
    tpu.vector_store %arg16[%c40_159, %c8_160], %223 {strides = array<i32>} : memref<64x144xbf16, #tpu.memory_space<vmem>>, vector<1x128xbf16>,
    %225 = vector.extract_strided_slice %173 {offsets = [1, 128], sizes = [1, 128], strides = [1, 1]} : vector<2x2048xf32> to vector<1x128xf32>
    %226 = arith.truncf %225 : vector<1x128xf32> to vector<1x128xbf16>
    %c41 = arith.constant 41 : index
    %c8_161 = arith.constant 8 : index
    %227 = vector.load %arg16[%c41, %c8_161] : memref<64x144xbf16, #tpu.memory_space<vmem>>, vector<1x128xbf16>
    tpu.vector_store %arg16[%c41, %c8_161], %226 {strides = array<i32>} : memref<64x144xbf16, #tpu.memory_space<vmem>>, vector<1x128xbf16>,
    %228 = vector.extract_strided_slice %173 {offsets = [1, 256], sizes = [1, 128], strides = [1, 1]} : vector<2x2048xf32> to vector<1x128xf32>
    %229 = arith.truncf %228 : vector<1x128xf32> to vector<1x128xbf16>
    %c42 = arith.constant 42 : index
    %c8_162 = arith.constant 8 : index
    %230 = vector.load %arg16[%c42, %c8_162] : memref<64x144xbf16, #tpu.memory_space<vmem>>, vector<1x128xbf16>
    tpu.vector_store %arg16[%c42, %c8_162], %229 {strides = array<i32>} : memref<64x144xbf16, #tpu.memory_space<vmem>>, vector<1x128xbf16>,
    %231 = vector.extract_strided_slice %173 {offsets = [1, 384], sizes = [1, 128], strides = [1, 1]} : vector<2x2048xf32> to vector<1x128xf32>
    %232 = arith.truncf %231 : vector<1x128xf32> to vector<1x128xbf16>
    %c43 = arith.constant 43 : index
    %c8_163 = arith.constant 8 : index
    %233 = vector.load %arg16[%c43, %c8_163] : memref<64x144xbf16, #tpu.memory_space<vmem>>, vector<1x128xbf16>
    tpu.vector_store %arg16[%c43, %c8_163], %232 {strides = array<i32>} : memref<64x144xbf16, #tpu.memory_space<vmem>>, vector<1x128xbf16>,
    %234 = vector.extract_strided_slice %173 {offsets = [1, 512], sizes = [1, 128], strides = [1, 1]} : vector<2x2048xf32> to vector<1x128xf32>
    %235 = arith.truncf %234 : vector<1x128xf32> to vector<1x128xbf16>
    %c44 = arith.constant 44 : index
    %c8_164 = arith.constant 8 : index
    %236 = vector.load %arg16[%c44, %c8_164] : memref<64x144xbf16, #tpu.memory_space<vmem>>, vector<1x128xbf16>
    tpu.vector_store %arg16[%c44, %c8_164], %235 {strides = array<i32>} : memref<64x144xbf16, #tpu.memory_space<vmem>>, vector<1x128xbf16>,
    %237 = vector.extract_strided_slice %173 {offsets = [1, 640], sizes = [1, 128], strides = [1, 1]} : vector<2x2048xf32> to vector<1x128xf32>
    %238 = arith.truncf %237 : vector<1x128xf32> to vector<1x128xbf16>
    %c45 = arith.constant 45 : index
    %c8_165 = arith.constant 8 : index
    %239 = vector.load %arg16[%c45, %c8_165] : memref<64x144xbf16, #tpu.memory_space<vmem>>, vector<1x128xbf16>
    tpu.vector_store %arg16[%c45, %c8_165], %238 {strides = array<i32>} : memref<64x144xbf16, #tpu.memory_space<vmem>>, vector<1x128xbf16>,
    %240 = vector.extract_strided_slice %173 {offsets = [1, 768], sizes = [1, 128], strides = [1, 1]} : vector<2x2048xf32> to vector<1x128xf32>
    %241 = arith.truncf %240 : vector<1x128xf32> to vector<1x128xbf16>
    %c46 = arith.constant 46 : index
    %c8_166 = arith.constant 8 : index
    %242 = vector.load %arg16[%c46, %c8_166] : memref<64x144xbf16, #tpu.memory_space<vmem>>, vector<1x128xbf16>
    tpu.vector_store %arg16[%c46, %c8_166], %241 {strides = array<i32>} : memref<64x144xbf16, #tpu.memory_space<vmem>>, vector<1x128xbf16>,
    %243 = vector.extract_strided_slice %173 {offsets = [1, 896], sizes = [1, 128], strides = [1, 1]} : vector<2x2048xf32> to vector<1x128xf32>
    %244 = arith.truncf %243 : vector<1x128xf32> to vector<1x128xbf16>
    %c47 = arith.constant 47 : index
    %c8_167 = arith.constant 8 : index
    %245 = vector.load %arg16[%c47, %c8_167] : memref<64x144xbf16, #tpu.memory_space<vmem>>, vector<1x128xbf16>
    tpu.vector_store %arg16[%c47, %c8_167], %244 {strides = array<i32>} : memref<64x144xbf16, #tpu.memory_space<vmem>>, vector<1x128xbf16>,
    %246 = vector.extract_strided_slice %173 {offsets = [1, 1024], sizes = [1, 128], strides = [1, 1]} : vector<2x2048xf32> to vector<1x128xf32>
    %247 = arith.truncf %246 : vector<1x128xf32> to vector<1x128xbf16>
    %c48 = arith.constant 48 : index
    %c8_168 = arith.constant 8 : index
    %248 = vector.load %arg16[%c48, %c8_168] : memref<64x144xbf16, #tpu.memory_space<vmem>>, vector<1x128xbf16>
    tpu.vector_store %arg16[%c48, %c8_168], %247 {strides = array<i32>} : memref<64x144xbf16, #tpu.memory_space<vmem>>, vector<1x128xbf16>,
    %249 = vector.extract_strided_slice %173 {offsets = [1, 1152], sizes = [1, 128], strides = [1, 1]} : vector<2x2048xf32> to vector<1x128xf32>
    %250 = arith.truncf %249 : vector<1x128xf32> to vector<1x128xbf16>
    %c49 = arith.constant 49 : index
    %c8_169 = arith.constant 8 : index
    %251 = vector.load %arg16[%c49, %c8_169] : memref<64x144xbf16, #tpu.memory_space<vmem>>, vector<1x128xbf16>
    tpu.vector_store %arg16[%c49, %c8_169], %250 {strides = array<i32>} : memref<64x144xbf16, #tpu.memory_space<vmem>>, vector<1x128xbf16>,
    %252 = vector.extract_strided_slice %173 {offsets = [1, 1280], sizes = [1, 128], strides = [1, 1]} : vector<2x2048xf32> to vector<1x128xf32>
    %253 = arith.truncf %252 : vector<1x128xf32> to vector<1x128xbf16>
    %c50 = arith.constant 50 : index
    %c8_170 = arith.constant 8 : index
    %254 = vector.load %arg16[%c50, %c8_170] : memref<64x144xbf16, #tpu.memory_space<vmem>>, vector<1x128xbf16>
    tpu.vector_store %arg16[%c50, %c8_170], %253 {strides = array<i32>} : memref<64x144xbf16, #tpu.memory_space<vmem>>, vector<1x128xbf16>,
    %255 = vector.extract_strided_slice %173 {offsets = [1, 1408], sizes = [1, 128], strides = [1, 1]} : vector<2x2048xf32> to vector<1x128xf32>
    %256 = arith.truncf %255 : vector<1x128xf32> to vector<1x128xbf16>
    %c51 = arith.constant 51 : index
    %c8_171 = arith.constant 8 : index
    %257 = vector.load %arg16[%c51, %c8_171] : memref<64x144xbf16, #tpu.memory_space<vmem>>, vector<1x128xbf16>
    tpu.vector_store %arg16[%c51, %c8_171], %256 {strides = array<i32>} : memref<64x144xbf16, #tpu.memory_space<vmem>>, vector<1x128xbf16>,
    %258 = vector.extract_strided_slice %173 {offsets = [1, 1536], sizes = [1, 128], strides = [1, 1]} : vector<2x2048xf32> to vector<1x128xf32>
    %259 = arith.truncf %258 : vector<1x128xf32> to vector<1x128xbf16>
    %c52 = arith.constant 52 : index
    %c8_172 = arith.constant 8 : index
    %260 = vector.load %arg16[%c52, %c8_172] : memref<64x144xbf16, #tpu.memory_space<vmem>>, vector<1x128xbf16>
    tpu.vector_store %arg16[%c52, %c8_172], %259 {strides = array<i32>} : memref<64x144xbf16, #tpu.memory_space<vmem>>, vector<1x128xbf16>,
    %261 = vector.extract_strided_slice %173 {offsets = [1, 1664], sizes = [1, 128], strides = [1, 1]} : vector<2x2048xf32> to vector<1x128xf32>
    %262 = arith.truncf %261 : vector<1x128xf32> to vector<1x128xbf16>
    %c53 = arith.constant 53 : index
    %c8_173 = arith.constant 8 : index
    %263 = vector.load %arg16[%c53, %c8_173] : memref<64x144xbf16, #tpu.memory_space<vmem>>, vector<1x128xbf16>
    tpu.vector_store %arg16[%c53, %c8_173], %262 {strides = array<i32>} : memref<64x144xbf16, #tpu.memory_space<vmem>>, vector<1x128xbf16>,
    %264 = vector.extract_strided_slice %173 {offsets = [1, 1792], sizes = [1, 128], strides = [1, 1]} : vector<2x2048xf32> to vector<1x128xf32>
    %265 = arith.truncf %264 : vector<1x128xf32> to vector<1x128xbf16>
    %c54 = arith.constant 54 : index
    %c8_174 = arith.constant 8 : index
    %266 = vector.load %arg16[%c54, %c8_174] : memref<64x144xbf16, #tpu.memory_space<vmem>>, vector<1x128xbf16>
    tpu.vector_store %arg16[%c54, %c8_174], %265 {strides = array<i32>} : memref<64x144xbf16, #tpu.memory_space<vmem>>, vector<1x128xbf16>,
    %267 = vector.extract_strided_slice %173 {offsets = [1, 1920], sizes = [1, 128], strides = [1, 1]} : vector<2x2048xf32> to vector<1x128xf32>
    %268 = arith.truncf %267 : vector<1x128xf32> to vector<1x128xbf16>
    %c55 = arith.constant 55 : index
    %c8_175 = arith.constant 8 : index
    %269 = vector.load %arg16[%c55, %c8_175] : memref<64x144xbf16, #tpu.memory_space<vmem>>, vector<1x128xbf16>
    tpu.vector_store %arg16[%c55, %c8_175], %268 {strides = array<i32>} : memref<64x144xbf16, #tpu.memory_space<vmem>>, vector<1x128xbf16>,
    %c7_176 = arith.constant 7 : index
    %c0_177 = arith.constant 0 : index
    %270 = vector.load %arg16[%c7_176, %c0_177] : memref<64x144xbf16, #tpu.memory_space<vmem>>, vector<48x144xbf16>
    %c0_178 = arith.constant 0 : index
    %c0_179 = arith.constant 0 : index
    %c0_180 = arith.constant 0 : index
    %271 = vector.load %arg6[%c0_178, %c0_179, %c0_180] : memref<3x144x128xbf16, #tpu.memory_space<vmem>>, vector<1x144x128xbf16>
    %272 = vector.shape_cast %271 : vector<1x144x128xbf16> to vector<144x128xbf16>
    %cst_181 = arith.constant dense<0.000000e+00> : vector<48x128xf32>
    %273 = tpu.matmul %270, %272, %cst_181 {dimension_numbers = #tpu.dot_dimension_numbers<[1], [0], [0], [1], [0, 0, 1, 1], [], []>} : vector<48x144xbf16>, vector<144x128xbf16>, vector<48x128xf32> -> vector<48x128xf32>
    %c8_182 = arith.constant 8 : index
    %c0_183 = arith.constant 0 : index
    %274 = vector.load %arg16[%c8_182, %c0_183] : memref<64x144xbf16, #tpu.memory_space<vmem>>, vector<48x144xbf16>
    %c1_184 = arith.constant 1 : index
    %c0_185 = arith.constant 0 : index
    %c0_186 = arith.constant 0 : index
    %275 = vector.load %arg6[%c1_184, %c0_185, %c0_186] : memref<3x144x128xbf16, #tpu.memory_space<vmem>>, vector<1x144x128xbf16>
    %276 = vector.shape_cast %275 : vector<1x144x128xbf16> to vector<144x128xbf16>
    %cst_187 = arith.constant dense<0.000000e+00> : vector<48x128xf32>
    %277 = tpu.matmul %274, %276, %cst_187 {dimension_numbers = #tpu.dot_dimension_numbers<[1], [0], [0], [1], [0, 0, 1, 1], [], []>} : vector<48x144xbf16>, vector<144x128xbf16>, vector<48x128xf32> -> vector<48x128xf32>
    %278 = arith.addf %273, %277 : vector<48x128xf32>
    %c9_188 = arith.constant 9 : index
    %c0_189 = arith.constant 0 : index
    %279 = vector.load %arg16[%c9_188, %c0_189] : memref<64x144xbf16, #tpu.memory_space<vmem>>, vector<48x144xbf16>
    %c2_190 = arith.constant 2 : index
    %c0_191 = arith.constant 0 : index
    %c0_192 = arith.constant 0 : index
    %280 = vector.load %arg6[%c2_190, %c0_191, %c0_192] : memref<3x144x128xbf16, #tpu.memory_space<vmem>>, vector<1x144x128xbf16>
    %281 = vector.shape_cast %280 : vector<1x144x128xbf16> to vector<144x128xbf16>
    %cst_193 = arith.constant dense<0.000000e+00> : vector<48x128xf32>
    %282 = tpu.matmul %279, %281, %cst_193 {dimension_numbers = #tpu.dot_dimension_numbers<[1], [0], [0], [1], [0, 0, 1, 1], [], []>} : vector<48x144xbf16>, vector<144x128xbf16>, vector<48x128xf32> -> vector<48x128xf32>
    %283 = arith.addf %278, %282 : vector<48x128xf32>
    %c0_194 = arith.constant 0 : index
    %c0_195 = arith.constant 0 : index
    %284 = vector.load %arg7[%c0_194, %c0_195] : memref<1x128xf32, #tpu.memory_space<vmem>>, vector<1x128xf32>
    %285 = vector.extract_strided_slice %283 {offsets = [0, 0], sizes = [16, 128], strides = [1, 1]} : vector<48x128xf32> to vector<16x128xf32>
    %286 = vector.broadcast %284 : vector<1x128xf32> to vector<16x128xf32>
    %287 = arith.addf %285, %286 : vector<16x128xf32>
    %cst_196 = arith.constant 0.000000e+00 : f32
    %288 = vector.broadcast %cst_196 : f32 to vector<16x128xf32>
    %289 = arith.cmpf oge, %287, %288 : vector<16x128xf32>
    %cst_197 = arith.constant 0.00999999977 : f32
    %290 = vector.broadcast %cst_197 : f32 to vector<16x128xf32>
    %291 = arith.mulf %290, %287 : vector<16x128xf32>
    %292 = arith.select %289, %287, %291 : vector<16x128xi1>, vector<16x128xf32>
    %293 = vector.extract_strided_slice %283 {offsets = [32, 0], sizes = [16, 128], strides = [1, 1]} : vector<48x128xf32> to vector<16x128xf32>
    %294 = vector.broadcast %284 : vector<1x128xf32> to vector<16x128xf32>
    %295 = arith.addf %293, %294 : vector<16x128xf32>
    %cst_198 = arith.constant 0.000000e+00 : f32
    %296 = vector.broadcast %cst_198 : f32 to vector<16x128xf32>
    %297 = arith.cmpf oge, %295, %296 : vector<16x128xf32>
    %cst_199 = arith.constant 0.00999999977 : f32
    %298 = vector.broadcast %cst_199 : f32 to vector<16x128xf32>
    %299 = arith.mulf %298, %295 : vector<16x128xf32>
    %300 = arith.select %297, %295, %299 : vector<16x128xi1>, vector<16x128xf32>
    %301 = arith.truncf %292 : vector<16x128xf32> to vector<16x128xbf16>
    %c8_200 = arith.constant 8 : index
    %c8_201 = arith.constant 8 : index
    %302 = vector.load %arg16[%c8_200, %c8_201] : memref<64x144xbf16, #tpu.memory_space<vmem>>, vector<16x128xbf16>
    tpu.vector_store %arg16[%c8_200, %c8_201], %301 {strides = array<i32>} : memref<64x144xbf16, #tpu.memory_space<vmem>>, vector<16x128xbf16>,
    %303 = arith.truncf %300 : vector<16x128xf32> to vector<16x128xbf16>
    %c40_202 = arith.constant 40 : index
    %c8_203 = arith.constant 8 : index
    %304 = vector.load %arg16[%c40_202, %c8_203] : memref<64x144xbf16, #tpu.memory_space<vmem>>, vector<16x128xbf16>
    tpu.vector_store %arg16[%c40_202, %c8_203], %303 {strides = array<i32>} : memref<64x144xbf16, #tpu.memory_space<vmem>>, vector<16x128xbf16>,
    %c7_204 = arith.constant 7 : index
    %c0_205 = arith.constant 0 : index
    %305 = vector.load %arg16[%c7_204, %c0_205] : memref<64x144xbf16, #tpu.memory_space<vmem>>, vector<48x144xbf16>
    %c0_206 = arith.constant 0 : index
    %c0_207 = arith.constant 0 : index
    %c0_208 = arith.constant 0 : index
    %306 = vector.load %arg8[%c0_206, %c0_207, %c0_208] : memref<3x144x64xbf16, #tpu.memory_space<vmem>>, vector<1x144x64xbf16>
    %307 = vector.shape_cast %306 : vector<1x144x64xbf16> to vector<144x64xbf16>
    %cst_209 = arith.constant dense<0.000000e+00> : vector<48x64xf32>
    %308 = tpu.matmul %305, %307, %cst_209 {dimension_numbers = #tpu.dot_dimension_numbers<[1], [0], [0], [1], [0, 0, 1, 1], [], []>} : vector<48x144xbf16>, vector<144x64xbf16>, vector<48x64xf32> -> vector<48x64xf32>
    %c8_210 = arith.constant 8 : index
    %c0_211 = arith.constant 0 : index
    %309 = vector.load %arg16[%c8_210, %c0_211] : memref<64x144xbf16, #tpu.memory_space<vmem>>, vector<48x144xbf16>
    %c1_212 = arith.constant 1 : index
    %c0_213 = arith.constant 0 : index
    %c0_214 = arith.constant 0 : index
    %310 = vector.load %arg8[%c1_212, %c0_213, %c0_214] : memref<3x144x64xbf16, #tpu.memory_space<vmem>>, vector<1x144x64xbf16>
    %311 = vector.shape_cast %310 : vector<1x144x64xbf16> to vector<144x64xbf16>
    %cst_215 = arith.constant dense<0.000000e+00> : vector<48x64xf32>
    %312 = tpu.matmul %309, %311, %cst_215 {dimension_numbers = #tpu.dot_dimension_numbers<[1], [0], [0], [1], [0, 0, 1, 1], [], []>} : vector<48x144xbf16>, vector<144x64xbf16>, vector<48x64xf32> -> vector<48x64xf32>
    %313 = arith.addf %308, %312 : vector<48x64xf32>
    %c9_216 = arith.constant 9 : index
    %c0_217 = arith.constant 0 : index
    %314 = vector.load %arg16[%c9_216, %c0_217] : memref<64x144xbf16, #tpu.memory_space<vmem>>, vector<48x144xbf16>
    %c2_218 = arith.constant 2 : index
    %c0_219 = arith.constant 0 : index
    %c0_220 = arith.constant 0 : index
    %315 = vector.load %arg8[%c2_218, %c0_219, %c0_220] : memref<3x144x64xbf16, #tpu.memory_space<vmem>>, vector<1x144x64xbf16>
    %316 = vector.shape_cast %315 : vector<1x144x64xbf16> to vector<144x64xbf16>
    %cst_221 = arith.constant dense<0.000000e+00> : vector<48x64xf32>
    %317 = tpu.matmul %314, %316, %cst_221 {dimension_numbers = #tpu.dot_dimension_numbers<[1], [0], [0], [1], [0, 0, 1, 1], [], []>} : vector<48x144xbf16>, vector<144x64xbf16>, vector<48x64xf32> -> vector<48x64xf32>
    %318 = arith.addf %313, %317 : vector<48x64xf32>
    %c0_222 = arith.constant 0 : index
    %c0_223 = arith.constant 0 : index
    %319 = vector.load %arg9[%c0_222, %c0_223] : memref<1x64xf32, #tpu.memory_space<vmem>>, vector<1x64xf32>
    %320 = vector.extract_strided_slice %318 {offsets = [0, 0], sizes = [16, 64], strides = [1, 1]} : vector<48x64xf32> to vector<16x64xf32>
    %321 = vector.broadcast %319 : vector<1x64xf32> to vector<16x64xf32>
    %322 = arith.addf %320, %321 : vector<16x64xf32>
    %cst_224 = arith.constant 0.000000e+00 : f32
    %323 = vector.broadcast %cst_224 : f32 to vector<16x64xf32>
    %324 = arith.subf %323, %322 : vector<16x64xf32>
    %325 = math.exp %324 : vector<16x64xf32>
    %cst_225 = arith.constant 1.000000e+00 : f32
    %326 = vector.broadcast %cst_225 : f32 to vector<16x64xf32>
    %327 = arith.addf %326, %325 : vector<16x64xf32>
    %cst_226 = arith.constant 1.000000e+00 : f32
    %328 = vector.broadcast %cst_226 : f32 to vector<16x64xf32>
    %329 = arith.divf %328, %327 : vector<16x64xf32>
    %330 = vector.extract_strided_slice %318 {offsets = [32, 0], sizes = [16, 64], strides = [1, 1]} : vector<48x64xf32> to vector<16x64xf32>
    %331 = vector.broadcast %319 : vector<1x64xf32> to vector<16x64xf32>
    %332 = arith.addf %330, %331 : vector<16x64xf32>
    %cst_227 = arith.constant 0.000000e+00 : f32
    %333 = vector.broadcast %cst_227 : f32 to vector<16x64xf32>
    %334 = arith.subf %333, %332 : vector<16x64xf32>
    %335 = math.exp %334 : vector<16x64xf32>
    %cst_228 = arith.constant 1.000000e+00 : f32
    %336 = vector.broadcast %cst_228 : f32 to vector<16x64xf32>
    %337 = arith.addf %336, %335 : vector<16x64xf32>
    %cst_229 = arith.constant 1.000000e+00 : f32
    %338 = vector.broadcast %cst_229 : f32 to vector<16x64xf32>
    %339 = arith.divf %338, %337 : vector<16x64xf32>
    %c0_230 = arith.constant 0 : index
    %c0_231 = arith.constant 0 : index
    %340 = vector.load %arg14[%c0_230, %c0_231] : memref<32x64xf32, #tpu.memory_space<vmem>>, vector<16x64xf32>
    tpu.vector_store %arg14[%c0_230, %c0_231], %329 {strides = array<i32>} : memref<32x64xf32, #tpu.memory_space<vmem>>, vector<16x64xf32>,
    %c16_232 = arith.constant 16 : index
    %c0_233 = arith.constant 0 : index
    %341 = vector.load %arg14[%c16_232, %c0_233] : memref<32x64xf32, #tpu.memory_space<vmem>>, vector<16x64xf32>
    tpu.vector_store %arg14[%c16_232, %c0_233], %339 {strides = array<i32>} : memref<32x64xf32, #tpu.memory_space<vmem>>, vector<16x64xf32>,
    return
  }
  func.func @transform_0(%arg0: i32) -> (i32, i32) {
    %c0_i32 = arith.constant 0 : i32
    %c0_i32_0 = arith.constant 0 : i32
    %c0_i32_1 = arith.constant 0 : i32
    return %c0_i32, %c0_i32_0 : i32, i32
  }
  func.func @transform_1(%arg0: i32) -> (i32, i32, i32) {
    %c0_i32 = arith.constant 0 : i32
    %c0_i32_0 = arith.constant 0 : i32
    %c0_i32_1 = arith.constant 0 : i32
    %c0_i32_2 = arith.constant 0 : i32
    return %c0_i32, %c0_i32_0, %c0_i32_1 : i32, i32, i32
  }
  func.func @transform_2(%arg0: i32) -> (i32, i32) {
    %c0_i32 = arith.constant 0 : i32
    %c0_i32_0 = arith.constant 0 : i32
    %c0_i32_1 = arith.constant 0 : i32
    return %c0_i32, %c0_i32_0 : i32, i32
  }
  func.func @transform_3(%arg0: i32) -> (i32, i32, i32) {
    %c0_i32 = arith.constant 0 : i32
    %c0_i32_0 = arith.constant 0 : i32
    %c0_i32_1 = arith.constant 0 : i32
    %c0_i32_2 = arith.constant 0 : i32
    return %c0_i32, %c0_i32_0, %c0_i32_1 : i32, i32, i32
  }
  func.func @transform_4(%arg0: i32) -> (i32, i32) {
    %c0_i32 = arith.constant 0 : i32
    %c0_i32_0 = arith.constant 0 : i32
    %c0_i32_1 = arith.constant 0 : i32
    return %c0_i32, %c0_i32_0 : i32, i32
  }
  func.func @transform_5(%arg0: i32) -> (i32, i32, i32) {
    %c0_i32 = arith.constant 0 : i32
    %c0_i32_0 = arith.constant 0 : i32
    %c0_i32_1 = arith.constant 0 : i32
    %c0_i32_2 = arith.constant 0 : i32
    return %c0_i32, %c0_i32_0, %c0_i32_1 : i32, i32, i32
  }
  func.func @transform_6(%arg0: i32) -> (i32, i32) {
    %c0_i32 = arith.constant 0 : i32
    %c0_i32_0 = arith.constant 0 : i32
    %c0_i32_1 = arith.constant 0 : i32
    return %c0_i32, %c0_i32_0 : i32, i32
  }
  func.func @transform_7(%arg0: i32) -> (i32, i32, i32) {
    %c0_i32 = arith.constant 0 : i32
    %c0_i32_0 = arith.constant 0 : i32
    %c0_i32_1 = arith.constant 0 : i32
    %c0_i32_2 = arith.constant 0 : i32
    return %c0_i32, %c0_i32_0, %c0_i32_1 : i32, i32, i32
  }
  func.func @transform_8(%arg0: i32) -> (i32, i32) {
    %c0_i32 = arith.constant 0 : i32
    %c0_i32_0 = arith.constant 0 : i32
    %c0_i32_1 = arith.constant 0 : i32
    return %c0_i32, %c0_i32_0 : i32, i32
  }
  func.func @transform_9(%arg0: i32) -> (i32, i32) {
    %c0_i32 = arith.constant 0 : i32
    %c0_i32_0 = arith.constant 0 : i32
    %c0_i32_1 = arith.constant 0 : i32
    return %c0_i32, %c0_i32_0 : i32, i32
  }
  func.func @transform_10(%arg0: i32) -> (i32, i32) {
    %c0_i32 = arith.constant 0 : i32
    %c0_i32_0 = arith.constant 0 : i32
    %c0_i32_1 = arith.constant 0 : i32
    return %c0_i32, %c0_i32_0 : i32, i32
  }
  func.func @transform_11(%arg0: i32) -> (i32, i32) {
    %c0_i32 = arith.constant 0 : i32
    %c0_i32_0 = arith.constant 0 : i32
    %c0_i32_1 = arith.constant 0 : i32
    return %c0_i32, %c0_i32_0 : i32, i32
  }
  func.func @transform_12(%arg0: i32) -> (i32, i32) {
    %c0_i32 = arith.constant 0 : i32
    %c0_i32_0 = arith.constant 0 : i32
    %c0_i32_1 = arith.constant 0 : i32
    return %c0_i32, %c0_i32_0 : i32, i32
  }
  func.func @transform_13(%arg0: i32) -> (i32, i32) {
    %c0_i32 = arith.constant 0 : i32
    %c0_i32_0 = arith.constant 0 : i32
    %c0_i32_1 = arith.constant 0 : i32
    return %c0_i32, %c0_i32_0 : i32, i32
  }
}

</mosaic_0001>

<bundles_post_ra>
// kernel: _lambda_.1
= control target key start
LH: loop header
LB: loop body
LE: loop exit
PB: predicated region body
PF: predicated region fallthrough
CT: control target
= control target key end

     0   :  { %18 = vsyncpa [#allocation6], 0  ;;  %s7787_s0 = inlined_call_operand.vmem [shape: f32[32,64], index: 0, kind: input, shape index: {}]   ;;  %s7788_s1 = inlined_call_operand.hbm [shape: bf16[3,72,128], index: 1, kind: input, shape index: {}]   ;;  %s7789_s2 = inlined_call_operand.vmem [shape: f32[1,128], index: 2, kind: input, shape index: {}]   ;;  %s7790_s3 = inlined_call_operand.hbm [shape: bf16[3,144,128], index: 3, kind: input, shape index: {}]   ;;  %s7791_s4 = inlined_call_operand.vmem [shape: f32[1,128], index: 4, kind: input, shape index: {}]   ;;  %s7792_s5 = inlined_call_operand.hbm [shape: bf16[3,144,128], index: 5, kind: input, shape index: {}]   ;;  %s7793_s6 = inlined_call_operand.vmem [shape: f32[1,128], index: 6, kind: input, shape index: {}]   ;;  %s7794_s7 = inlined_call_operand.vmem [shape: bf16[3,144,64], index: 7, kind: input, shape index: {}]   ;;  %s7795_s8 = inlined_call_operand.vmem [shape: f32[1,64], index: 8, kind: input, shape index: {}]   ;;  %s7796_s9 = inlined_call_operand.hbm [shape: bf16[2048,32], index: 9, kind: input, shape index: {}]   ;;  %s7797_s10 = inlined_call_operand.vmem [shape: f32[1,32], index: 10, kind: input, shape index: {}]   ;;  %s7798_s11 = inlined_call_operand.vmem [shape: bf16[32,2048], index: 11, kind: input, shape index: {}]   ;;  %s7799_s12 = inlined_call_operand.vmem [shape: f32[1,2048], index: 12, kind: input, shape index: {}]   ;;  %s7800_s13 = inlined_call_operand.vmem [shape: f32[32,64], index: 13, kind: output, shape index: {}]  }
   0x1   :  { %19 = vsyncpa [#allocation8], 0 }
   0x2   :  { %20 = vsyncpa [#allocation11], 0  ;;  %s6551_s25 = smov [#allocation7]   ;;  %s6552_s27 = smov [#allocation5]  }
   0x3   :  { %s42_s26 = sshll.u32 %s6551_s25, 4  ;;  %s28_s28 = sshll.u32 %s6552_s27, 4  ;;  %s43_s26 = int_to_ptr.vmem [resolvable:$true] %s42_s26  ;;  %s29_s28 = int_to_ptr.vmem [resolvable:$true] %s28_s28 }
   0x4   :  { %s6473_s29 = scalar_lea.vmem %s43_s26, 3456  ;;  %p6478_p1 = scmp.lt.s32.totalorder %s43_s26, %s43_s26 }
   0x5   :  { %p6474_p0 = scmp.ne.s32.totalorder %s43_s26, %s6473_s29  ;;  %p6479_p2 = scmp.lt.s32.totalorder %s6473_s29, %s6473_s29 }
   0x7   :  { %p6480_p3 = por %p6479_p2, %p6478_p1 }
   0x9   :  { %p6481_p4 = pnand %p6480_p3, %p6474_p0 }
   0xb   :  { %6484 = shalt.err (!%p6481_p4)
}
   0xc   :  { %s6553_s30 = smov 64   ;;  %s6554_s14 = smov 4  }
   0xd   :  { %48 = dma.hbm_to_vmem [thread:$0]  %s7790_s3, 3456, %s43_s26, [#allocation8], %s6553_s30, %s6553_s30, %s6554_s14  }
   0xe   :  { %s6493_s17 = scalar_lea.vmem %s29_s28, 1728  ;;  %p6498_p6 = scmp.lt.s32.totalorder %s29_s28, %s29_s28 }
   0xf   :  { %p6494_p5 = scmp.ne.s32.totalorder %s29_s28, %s6493_s17  ;;  %p6499_p7 = scmp.lt.s32.totalorder %s6493_s17, %s6493_s17 }
  0x11   :  { %p6500_p8 = por %p6499_p7, %p6498_p6 }
  0x13   :  { %p6501_p9 = pnand %p6500_p8, %p6494_p5 }
  0x15   :  { %6504 = shalt.err (!%p6501_p9)
}
  0x16   :  { %34 = dma.hbm_to_vmem [thread:$0]  %s7788_s1, 1728, %s29_s28, [#allocation6], %s6553_s30, %s6553_s30, %s6554_s14  }
  0x17   :  { %s6555_s20 = smov [#allocation9]   ;;  %s6556_s22 = smov [#allocation10]  }
  0x18   :  { %s56_s21 = sshll.u32 %s6555_s20, 4  ;;  %s74_s23 = sshll.u32 %s6556_s22, 4  ;;  %s57_s21 = int_to_ptr.vmem [resolvable:$true] %s56_s21  ;;  %s75_s23 = int_to_ptr.vmem [resolvable:$true] %s74_s23 }
  0x19   :  { %s6513_s3 = scalar_lea.vmem %s57_s21, 3456  ;;  %p6518_p11 = scmp.lt.s32.totalorder %s57_s21, %s57_s21 }
  0x1a   :  { %p6514_p10 = scmp.ne.s32.totalorder %s57_s21, %s6513_s3  ;;  %p6519_p12 = scmp.lt.s32.totalorder %s6513_s3, %s6513_s3 }
  0x1c   :  { %p6520_p13 = por %p6519_p12, %p6518_p11 }
  0x1e   :  { %p6521_p0 = pnand %p6520_p13, %p6514_p10 }
  0x20   :  { %6524 = shalt.err (!%p6521_p0)
}
  0x21   :  { %62 = dma.hbm_to_vmem [thread:$0]  %s7792_s5, 3456, %s57_s21, [#allocation8], %s6553_s30, %s6553_s30, %s6554_s14  }
  0x22   :  { %s6533_s1 = scalar_lea.vmem %s75_s23, 16384  ;;  %p6538_p2 = scmp.lt.s32.totalorder %s75_s23, %s75_s23 }
  0x23   :  { %p6534_p1 = scmp.ne.s32.totalorder %s75_s23, %s6533_s1  ;;  %p6539_p3 = scmp.lt.s32.totalorder %s6533_s1, %s6533_s1 }
  0x25   :  { %p6540_p4 = por %p6539_p3, %p6538_p2 }
  0x27   :  { %p6541_p5 = pnand %p6540_p4, %p6534_p1 }
  0x29   :  { %6544 = shalt.err (!%p6541_p5)
}
  0x2a   :  { %80 = dma.hbm_to_vmem [thread:$0]  %s7796_s9, 16384, %s75_s23, [#allocation11], %s6553_s30, %s6553_s30, %s6554_s14  }
  0x2b   :  { %6545 = dma.done.wait [#allocation6], 1728  }
  0x2c   :  { %6546 = vsyncadd [#allocation6], 4294965568 }
  0x2d   :  { %6547 = dma.done.wait [#allocation8], 6912  }
  0x2e   :  { %6548 = vsyncadd [#allocation8], 4294960384 }
  0x2f   :  { %6549 = dma.done.wait [#allocation11], 16384  }
  0x30   :  { %6550 = vsyncadd [#allocation11], 4294950912  ;;  %vm100_vm0 = vcmask 27648   ;;  %v6557_v0 = vmov 0.0   ;;  %vm109_vm1 = vcmask 585248   ;;  %v6558_v1 = vmov 0  }
  0x31   :  { %6086 = vmatprep.subr.bf16.mxu0 %v6557_v0  ;;  %101 = vst.msk [vmem:[#allocation2] sm:$0xf] %vm100_vm0, %v6558_v1  ;;  %102 = vst.msk [vmem:[#allocation2 + $0x4] sm:$0xf] %vm100_vm0, %v6558_v1  ;;  %6108 = vmatprep.subr.bf16.mxu1 %v6557_v0  ;;  %vm6559_vm2 = vmmov 0   ;;  %vm289_vm3 = vcmask 1043456  }
  0x32   :  { %104 = vst.msk [vmem:[#allocation2 + $0xc] sm:$0xf] %vm100_vm0, %v6558_v1  ;;  %105 = vst.msk [vmem:[#allocation2 + $0x10] sm:$0xf] %vm100_vm0, %v6558_v1  ;;  %6096 = vmatprep.mubr.msk.bf16.mxu0 %vm6559_vm2, %v6557_v0  ;;  %6118 = vmatprep.mubr.msk.bf16.mxu1 %vm6559_vm2, %v6557_v0  ;;  %v178_v2 = vld [vmem:[%s7787_s0] sm:$0xff]  ;;  %v180_v3 = vld [vmem:[%s7787_s0 + $0x10] sm:$0xff] }
  0x33   :  { %108 = vst.msk [vmem:[#allocation2 + $0x1c] sm:$0xf] %vm100_vm0, %v6558_v1  ;;  %103 = vst.msk [vmem:[#allocation2 + $0x8] sm:$0xf] %vm100_vm0, %v6558_v1  ;;  %v179_v4 = vld [vmem:[%s7787_s0 + $0x8] sm:$0xff]  ;;  %vm118_vm4 = vcmask 584707   ;;  %v5858_v5 = vpack.c.bf16 %v178_v2, %v178_v2  ;;  %v5860_v6 = vpack.c.bf16 %v180_v3, %v180_v3 }
  0x34   :  { %106 = vst.msk [vmem:[#allocation2 + $0x14] sm:$0xf] %vm100_vm0, %v6558_v1  ;;  %107 = vst.msk [vmem:[#allocation2 + $0x18] sm:$0xf] %vm100_vm0, %v6558_v1  ;;  %vm7803_vm5 = vsmask.f32 7950  ;;  %v5859_v9 = vpack.c.bf16 %v179_v4, %v179_v4 }
  0x35   :  { %110 = vst.msk [vmem:[#allocation2] sm:$0xf] %vm109_vm1, %v6558_v1  ;;  %111 = vst.msk [vmem:[#allocation2 + $0x4] sm:$0xf] %vm109_vm1, %v6558_v1  ;;  %v181_v7 = vld [vmem:[%s7787_s0 + $0x18] sm:$0xff]  ;;  %vm124_vm6 = vcmask 581632   ;;  %188 = vrot.lane.b32.xlu0 %v5858_v5, %s6554_s14  ;;  %203 = vrot.lane.b32.xlu1 %v5860_v6, %s6554_s14 }
  0x36   :  { %113 = vst.msk [vmem:[#allocation2 + $0xc] sm:$0xf] %vm109_vm1, %v6558_v1  ;;  %114 = vst.msk [vmem:[#allocation2 + $0x10] sm:$0xf] %vm109_vm1, %v6558_v1  ;;  %v6183_v8 = vld [vmem:[#allocation5 + $0x44] ss:$0 sps:$4 sm:$0xff]   ;;  %v5861_v10 = vpack.c.bf16 %v181_v7, %v181_v7 }
  0x37   :  { %117 = vst.msk [vmem:[#allocation2 + $0x1c] sm:$0xf] %vm109_vm1, %v6558_v1  ;;  %112 = vst.msk [vmem:[#allocation2 + $0x8] sm:$0xf] %vm109_vm1, %v6558_v1  ;;  %vm125_vm7 = vsmask.f32 256 }
  0x38   :  { %115 = vst.msk [vmem:[#allocation2 + $0x14] sm:$0xf] %vm109_vm1, %v6558_v1  ;;  %116 = vst.msk [vmem:[#allocation2 + $0x18] sm:$0xf] %vm109_vm1, %v6558_v1  ;;  %v291_v11 = vsel %vm289_vm3, %v6183_v8, 0  ;;  %v6184_v12 = vld [vmem:[#allocation5 + $0x3c] sm:$0xff]  }
  0x39   :  { %6087 = vmatpush3.bf16.msra.mxu0 %v291_v11  ;;  %v6186_v13 = vld [vmem:[#allocation5 + $0x20] ss:$0 sps:$4 sm:$0xff]   ;;  %vm6704_vm8 = vmand %vm118_vm4, %vm7803_vm5  ;;  %190 = vrot.lane.b32.xlu0 %v5859_v9, %s6554_s14  ;;  %v6185_v17 = vld [vmem:[#allocation5 + $0x34] sm:$0xff]   ;;  %vm194_vm10 = vcmask 551968   ;;  %vm279_vm11 = vcmask 588800   ;;  %vm136_vm14 = vcmask 60416  }
  0x3a   :  { %6088 = vmatprep.subr.bf16.mxu0 %v6557_v0  ;;  %v426_v15 = vsel %vm289_vm3, %v6186_v13, 0  ;;  %vm6710_vm9 = vmand %vm124_vm6, %vm125_vm7  ;;  %205 = vrot.lane.b32.xlu1 %v5861_v10, %s6554_s14  ;;  %v6188_v18 = vld [vmem:[#allocation5 + $0x18] sm:$0xff]   ;;  %v6187_v23 = vld [vmem:[#allocation5 + $0x2c] sm:$0xff]   ;;  %vm7804_vm12 = vsmask.f32 4352  ;;  %vm145_vm15 = vcmask 126016  }
  0x3b   :  { %6109 = vmatpush3.bf16.msra.mxu1 %v426_v15  ;;  %v6190_v24 = vld [vmem:[#allocation5 + $0x10] sm:$0xff]   ;;  %v6189_v26 = vld [vmem:[#allocation5 + $0x24] sm:$0xff]   ;;  %v6199_v15 = vld [vmem:[#allocation5 + $0x58] sm:$0xff]   ;;  %vm7819_vm13 = vsmask.f32 7424  ;;  %vm154_vm0 = vcmask 1043459  }
  0x3c   :  { %v121_v19 = vld [vmem:[#allocation2] sm:$0x8]  ;;  %6110 = vmatprep.subr.bf16.mxu1 %v6557_v0  ;;  %v6194_v27 = vld [vmem:[#allocation5 + $0x8] sm:$0xff]   ;;  %137 = vst.msk [vmem:[#allocation3] sm:$0xf] %vm136_vm14, %v6558_v1  ;;  %vm163_vm1 = vcmask 1040384  }
  0x3d   :  { %6089 = vmatpush3.bf16.msra.mxu0 %v6184_v12  ;;  %v122_v20 = vsel %vm6704_vm8, 0, %v121_v19  ;;  %v127_v21 = vld [vmem:[#allocation2 + $0xc] sm:$0x1]  ;;  %v130_v25 = vld [vmem:[#allocation2 + $0x10] sm:$0x8]  ;;  %v6196_v31 = vld [vmem:[#allocation5] sm:$0xff]  }
  0x3e   :  { %6090 = vmatprep.subr.bf16.mxu0 %v6557_v0  ;;  %123 = vst [vmem:[#allocation2] sm:$0x8] %v122_v20  ;;  %v128_v22 = vsel %vm6710_vm9, 0, %v127_v21  ;;  %v131_v28 = vsel %vm6704_vm8, 0, %v130_v25  ;;  %v133_v29 = vld [vmem:[#allocation2 + $0x1c] sm:$0x1]  ;;  %vm6822_vm4 = vmand %vm163_vm1, %vm125_vm7 }
  0x3f   :  { %129 = vst [vmem:[#allocation2 + $0xc] sm:$0x1] %v128_v22  ;;  %6111 = vmatpush3.bf16.msra.mxu1 %v6188_v18  ;;  %132 = vst [vmem:[#allocation2 + $0x10] sm:$0x8] %v131_v28  ;;  %v134_v30 = vsel %vm6710_vm9, 0, %v133_v29  ;;  %v6197_v60 = vld [vmem:[#allocation5 + $0x60] sm:$0xff]  }
  0x40   :  { %6112 = vmatprep.subr.bf16.mxu1 %v6557_v0  ;;  %135 = vst [vmem:[#allocation2 + $0x1c] sm:$0x1] %v134_v30  ;;  %v6195_v42 = vld [vmem:[#allocation5 + $0x68] ss:$0 sps:$4 sm:$0xff]   ;;  %v6200_v25 = vld [vmem:[#allocation5 + $0x50] sm:$0xff]   ;;  %vm156_vm8 = vcmask 130055  }
  0x41   :  { %6091 = vmatpush3.bf16.msra.mxu0 %v6185_v17  ;;  %v584_v48 = vsel %vm289_vm3, %v6195_v42, 0  ;;  %138 = vst.msk [vmem:[#allocation3 + $0x8] sm:$0xf] %vm136_vm14, %v6558_v1  ;;  %140 = vst.msk [vmem:[#allocation3 + $0x18] sm:$0xf] %vm136_vm14, %v6558_v1  ;;  %v6215_v42 = vld [vmem:[#allocation7 + $0x28] sm:$0xff]  }
  0x42   :  { %6092 = vmatprep.subr.bf16.mxu0 %v6557_v0  ;;  %144 = vst.msk [vmem:[#allocation3 + $0x38] sm:$0xf] %vm136_vm14, %v6558_v1  ;;  %139 = vst.msk [vmem:[#allocation3 + $0x10] sm:$0xf] %vm136_vm14, %v6558_v1  ;;  %vm7802_vm9 = vsmask.f32 7966 }
  0x43   :  { %6113 = vmatpush3.bf16.msra.mxu1 %v6190_v24  ;;  %146 = vst.msk [vmem:[#allocation3 + $0x4] sm:$0xf] %vm145_vm15, %v6558_v1  ;;  %147 = vst.msk [vmem:[#allocation3 + $0xc] sm:$0xf] %vm145_vm15, %v6558_v1 }
  0x44   :  { %6114 = vmatprep.subr.bf16.mxu1 %v6557_v0  ;;  %149 = vst.msk [vmem:[#allocation3 + $0x1c] sm:$0xf] %vm145_vm15, %v6558_v1  ;;  %153 = vst.msk [vmem:[#allocation3 + $0x3c] sm:$0xf] %vm145_vm15, %v6558_v1 }
  0x45   :  { %6093 = vmatpush3.bf16.msra.mxu0 %v6187_v23  ;;  %v211_v40 = vld [vmem:[#allocation2] sm:$0x8]  ;;  %141 = vst.msk [vmem:[#allocation3 + $0x20] sm:$0xf] %vm136_vm14, %v6558_v1  ;;  %142 = vst.msk [vmem:[#allocation3 + $0x28] sm:$0xf] %vm136_vm14, %v6558_v1 }
  0x46   :  { %6094 = vmatprep.subr.bf16.mxu0 %v6557_v0  ;;  %v6732_v32 = vld [vmem:[#allocation2 + $0xc] sm:$0xff]   ;;  %143 = vst.msk [vmem:[#allocation3 + $0x30] sm:$0xf] %vm136_vm14, %v6558_v1  ;;  %vm6815_vm3 = vmand %vm154_vm0, %vm7803_vm5 }
  0x47   :  { %6115 = vmatpush3.bf16.msra.mxu1 %v6194_v27  ;;  %v6207_v33 = vld [vmem:[#allocation2 + $0x1c] ss:$0 sps:$4 sm:$0x11]   ;;  %v527_v34 = vshll.u32 %v6732_v32, 16  ;;  %v215_v41 = vld [vmem:[#allocation2 + $0x10] sm:$0xf] }
  0x48   :  { %6116 = vmatprep.subr.bf16.mxu1 %v6557_v0  ;;  %v543_v35 = vshll.u32 %v6207_v33, 16  ;;  %v214_v44 = vld [vmem:[#allocation2 + $0xc] sm:$0xf]  ;;  %v531_v59 = vshrl.u32 %v6732_v32, 16  ;;  %148 = vst.msk [vmem:[#allocation3 + $0x14] sm:$0xf] %vm145_vm15, %v6558_v1 }
  0x49   :  { %6095 = vmatpush3.bf16.msra.mxu0 %v6189_v26  ;;  %v5395_v61 = vcombine.low %v214_v44, %v215_v41  ;;  %v529_v63 = vrot.slane %v527_v34, 1  ;;  %v6203_v27 = vld [vmem:[#allocation5 + $0x48] sm:$0xff]   ;;  %150 = vst.msk [vmem:[#allocation3 + $0x24] sm:$0xf] %vm145_vm15, %v6558_v1  ;;  %151 = vst.msk [vmem:[#allocation3 + $0x2c] sm:$0xf] %vm145_vm15, %v6558_v1 }
  0x4a   :  { %6130 = vmatprep.subr.bf16.mxu0 %v6557_v0  ;;  %v545_v2 = vrot.slane %v543_v35, 1  ;;  %152 = vst.msk [vmem:[#allocation3 + $0x34] sm:$0xf] %vm145_vm15, %v6558_v1 }
  0x4b   :  { %6117 = vmatpush3.bf16.msra.mxu1 %v6196_v31  ;;  %v533_v34 = vor.u32 %v531_v59, %v529_v63 }
  0x4c   :  { %843 = vmatprep.subr.bf16.mxu1 %v6558_v1 }
  0xa7   :  { %v189_v36 = vpop.permute.xlu0 %188  ;;  %v204_v37 = vpop.permute.xlu1 %203 }
  0xa8   :  { %195 = vst.msk [vmem:[#allocation2 + $0x4] sm:$0xf] %vm194_vm10, %v189_v36  ;;  %209 = vst.msk [vmem:[#allocation2 + $0x14] sm:$0xf] %vm194_vm10, %v204_v37 }
  0xab   :  { %v191_v38 = vpop.permute.xlu0 %190 }
  0xac   :  { %v206_v39 = vpop.permute.xlu1 %205  ;;  %196 = vst.msk [vmem:[#allocation2 + $0x8] sm:$0xf] %vm194_vm10, %v191_v38  ;;  %v6208_v38 = vld [vmem:[#allocation7 + $0x80] sm:$0xff]  }
  0xad   :  { %210 = vst.msk [vmem:[#allocation2 + $0x18] sm:$0xf] %vm194_vm10, %v206_v39  ;;  %v6211_v39 = vld [vmem:[#allocation7 + $0x38] sm:$0xff]   ;;  %vm6834_vm10 = vmand %vm156_vm8, %vm7802_vm9  ;;  %vm686_vm8 = vcmask 64516  }
  0xaf   :  { %v212_v43 = vld [vmem:[#allocation2 + $0x4] sm:$0xf]  ;;  %v6736_v45 = vld [vmem:[#allocation2 + $0x14] sm:$0xf] }
  0xb0   :  { %v5405_v46 = vcombine.low %v211_v40, %v212_v43  ;;  %v5407_v47 = vcombine.low %v215_v41, %v6736_v45  ;;  %v6213_v40 = vld [vmem:[#allocation7 + $0x30] sm:$0xff]  }
  0xb1   :  { %v6210_v41 = vld [vmem:[#allocation7 + $0x70] sm:$0xff]  }
  0xb2   :  { %v355_v49 = vshrl.u32 %v5405_v46, 16  ;;  %v358_v50 = vshll.u32 %v5405_v46, 16  ;;  %v372_v51 = vshrl.u32 %v5407_v47, 16  ;;  %v375_v56 = vshll.u32 %v5407_v47, 16 }
  0xb3   :  { %v213_v52 = vld [vmem:[#allocation2 + $0x8] sm:$0xf] }
  0xb4   :  { %v217_v53 = vld [vmem:[#allocation2 + $0x18] sm:$0xf]  ;;  %v5394_v54 = vcombine.low %v212_v43, %v213_v52  ;;  %v5406_v55 = vcombine.low %v213_v52, %v214_v44  ;;  %v6204_v57 = vld [vmem:[#allocation2 + $0x4] sm:$0xff]   ;;  %v357_v3 = vrot.slane %v355_v49, 3  ;;  %v360_v4 = vrot.slane %v358_v50, 4  ;;  %v6214_v44 = vld [vmem:[#allocation7 + $0x60] sm:$0xff]  }
  0xb5   :  { %v6740_v58 = vld [vmem:[#allocation2 + $0x14] sm:$0xff]   ;;  %v5408_v62 = vcombine.low %v217_v53, %v217_v53  ;;  %v374_v7 = vrot.slane %v372_v51, 3  ;;  %v522_v10 = vshll.u32 %v6204_v57, 16  ;;  %v377_v13 = vrot.slane %v375_v56, 4 }
  0xb6   :  { %6097 = vmatmul.mubr.msk.bf16.vlgmr.msra.gmra.mxu0 %vm279_vm11, %v5394_v54  ;;  %v363_v5 = vshrl.u32 %v5406_v55, 16  ;;  %v366_v6 = vshll.u32 %v5406_v55, 16  ;;  %v535_v14 = vshll.u32 %v6740_v58, 16  ;;  %v520_v18 = vshrl.u32 %v6204_v57, 16  ;;  %v6212_v43 = vld [vmem:[#allocation7 + $0x68] sm:$0xff]  }
  0xb7   :  { %6131 = vmatpush3.bf16.msra.mxu0 %v584_v48  ;;  %6100 = vmatprep.mubr.msk.bf16.mxu0 %vm6559_vm2, %v6557_v0  ;;  %v381_v8 = vshrl.u32 %v5408_v62, 16  ;;  %v384_v9 = vshll.u32 %v5408_v62, 16  ;;  %v539_v19 = vshrl.u32 %v6740_v58, 16  ;;  %v361_v20 = vor.u32 %v360_v4, %v357_v3 }
  0xb8   :  { %6132 = vmatprep.subr.bf16.mxu0 %v6557_v0  ;;  %v365_v11 = vrot.slane %v363_v5, 3  ;;  %v368_v12 = vrot.slane %v366_v6, 4  ;;  %v524_v22 = vrot.slane %v522_v10, 1  ;;  %v537_v23 = vrot.slane %v535_v14, 1 }
  0xb9   :  { %v383_v16 = vrot.slane %v381_v8, 3  ;;  %v386_v17 = vrot.slane %v384_v9, 4  ;;  %v378_v26 = vor.u32 %v377_v13, %v374_v7  ;;  %v5396_v29 = vcombine.low %v6736_v45, %v217_v53  ;;  %v6216_v8 = vld [vmem:[#allocation7 + $0x58] sm:$0xff]   ;;  %v6217_v9 = vld [vmem:[#allocation7 + $0x20] sm:$0xff]  }
  0xba   :  { %v369_v21 = vor.u32 %v368_v12, %v365_v11  ;;  %v525_v31 = vor.u32 %v524_v22, %v520_v18  ;;  %v538_v35 = vsel %vm7819_vm13, %v533_v34, %v537_v23  ;;  %v541_v36 = vor.u32 %v539_v19, %v537_v23  ;;  %v6841_v12 = vld [vmem:[%s7789_s2] ss:$0 sm:$0xff]  ;;  %v160_v13 = vld [vmem:[#allocation3] sm:$0x88]  ;;  %s6560_s2 = smov 8  }
  0xbb   :  { %6133 = vmatpush3.bf16.msra.mxu0 %v6197_v60  ;;  %v387_v30 = vor.u32 %v386_v17, %v383_v16  ;;  %v6219_v22 = vld [vmem:[#allocation7 + $0x18] sm:$0xff]   ;;  %v6221_v34 = vld [vmem:[#allocation7 + $0x10] sm:$0xff]  }
  0xbc   :  { %v370_v24 = vsel %vm7804_vm12, %v361_v20, %v369_v21  ;;  %6134 = vmatprep.subr.bf16.mxu0 %v6557_v0  ;;  %v379_v28 = vsel %vm7804_vm12, %v369_v21, %v378_v26  ;;  %v530_v33 = vsel %vm7819_vm13, %v525_v31, %v529_v63  ;;  %v546_v37 = vsel %vm7819_vm13, %v541_v36, %v545_v2  ;;  %v6218_v21 = vld [vmem:[#allocation7 + $0x50] sm:$0xff]  }
  0xbd   :  { %6119 = vmatmul.mubr.msk.bf16.vlgmr.msra.gmra.mxu1 %vm279_vm11, %v370_v24  ;;  %v388_v32 = vsel %vm7804_vm12, %v378_v26, %v387_v30  ;;  %v169_v24 = vld [vmem:[#allocation3 + $0x18] sm:$0x11]  ;;  %v172_v30 = vld [vmem:[#allocation3 + $0x20] sm:$0x88] }
  0xbe   :  { %6101 = vmatmul.mubr.msk.bf16.gmra.mxu0 %vm279_vm11, %v5395_v61  ;;  %6122 = vmatprep.mubr.msk.bf16.mxu1 %vm6559_vm2, %v6557_v0 }
  0xbf   :  { %6135 = vmatpush3.bf16.msra.mxu0 %v6199_v15  ;;  %6104 = vmatprep.mubr.msk.bf16.mxu0 %vm6559_vm2, %v6557_v0 }
  0xc0   :  { %6136 = vmatprep.subr.bf16.mxu0 %v6557_v0  ;;  %844 = vmatpush1.bf16.msra.mxu1 %v6208_v38 }
  0xc1   :  { %845 = vmatprep.subr.bf16.mxu1 %v6558_v1 }
  0xc3   :  { %6137 = vmatpush3.bf16.msra.mxu0 %v6200_v25 }
  0xc4   :  { %6138 = vmatprep.subr.bf16.mxu0 %v6557_v0 }
  0xc5   :  { %6123 = vmatmul.mubr.msk.bf16.gmra.mxu1 %vm279_vm11, %v379_v28 }
  0xc6   :  { %6105 = vmatmul.mubr.msk.bf16.gmra.mxu0 %vm279_vm11, %v5396_v29  ;;  %6126 = vmatprep.mubr.msk.bf16.mxu1 %vm6559_vm2, %v6557_v0 }
  0xc7   :  { %6139 = vmatpush3.bf16.msra.mxu0 %v6203_v27  ;;  %6140 = vmatprep.mubr.msk.bf16.mxu0 %vm6559_vm2, %v6557_v0 }
  0xc8   :  { %1045 = vmatprep.subr.bf16.mxu0 %v6558_v1 }
  0xcd   :  { %6127 = vmatmul.mubr.msk.bf16.gmra.mxu1 %vm279_vm11, %v388_v32 }
  0xce   :  { %6141 = vmatmul.mubr.msk.bf16.vlgmr.msra.gmra.mxu0 %vm279_vm11, %v530_v33  ;;  %v6220_v33 = vld [vmem:[#allocation7 + $0x48] sm:$0xff]  }
  0xcf   :  { %6144 = vmatprep.mubr.msk.bf16.mxu0 %vm6559_vm2, %v6557_v0  ;;  %1046 = vmatpush1.bf16.msra.mxu0 %v6211_v39 }
  0xd0   :  { %1047 = vmatprep.subr.bf16.mxu0 %v6558_v1 }
  0xd3   :  { %1048 = vmatpush1.bf16.msra.mxu0 %v6213_v40  ;;  %v6222_v40 = vld [vmem:[#allocation7 + $0x88] sm:$0xff]  }
  0xd4   :  { %1049 = vmatprep.subr.bf16.mxu0 %v6558_v1 }
  0xd6   :  { %6145 = vmatmul.mubr.msk.bf16.gmra.mxu0 %vm279_vm11, %v538_v35 }
  0xd7   :  { %6148 = vmatprep.mubr.msk.bf16.mxu0 %vm6559_vm2, %v6557_v0  ;;  %v6209_v0 = vld [vmem:[#allocation7 + $0x78] sm:$0xff]   ;;  %1050 = vmatpush1.bf16.msra.mxu0 %v6215_v42  ;;  %vm165_vm2 = vcmask 126980  }
  0xd8   :  { %846 = vmatpush1.bf16.msra.mxu1 %v6209_v0  ;;  %1051 = vmatprep.subr.bf16.mxu0 %v6558_v1  ;;  %vm6827_vm6 = vmand %vm165_vm2, %vm7804_vm12 }
  0xd9   :  { %847 = vmatprep.subr.bf16.mxu1 %v6558_v1  ;;  %vm168_vm14 = vmor %vm6827_vm6, %vm6822_vm4  ;;  %vm7801_vm4 = vcmask 130048  }
  0xda   :  { %v170_v28 = vsel %vm168_vm14, 0, %v169_v24  ;;  %v6225_v24 = vld [vmem:[#allocation7 + $0xc8] sm:$0xff]  }
  0xdb   :  { %1052 = vmatpush1.bf16.msra.mxu0 %v6217_v9  ;;  %171 = vst [vmem:[#allocation3 + $0x18] sm:$0x11] %v170_v28 }
  0xdc   :  { %848 = vmatpush1.bf16.msra.mxu1 %v6210_v41  ;;  %1053 = vmatprep.subr.bf16.mxu0 %v6558_v1  ;;  %v6223_v41 = vld [vmem:[#allocation7 + $0x8] sm:$0xff]  }
  0xdd   :  { %849 = vmatprep.subr.bf16.mxu1 %v6558_v1 }
  0xde   :  { %6149 = vmatmul.mubr.msk.bf16.gmra.mxu0 %vm279_vm11, %v546_v37  ;;  %vm159_vm11 = vmor %vm6834_vm10, %vm6815_vm3  ;;  %vm685_vm3 = vcmask 1043520   ;;  %vm7817_vm10 = vcmask 64512  }
  0xdf   :  { %v161_v16 = vsel %vm159_vm11, 0, %v160_v13  ;;  %1054 = vmatpush1.bf16.msra.mxu0 %v6219_v22  ;;  %v173_v35 = vsel %vm159_vm11, 0, %v172_v30  ;;  %vm6891_vm11 = vmor %vm686_vm8, %vm685_vm3  ;;  %vm7805_vm3 = vcmask 61444  }
  0xe0   :  { %850 = vmatpush1.bf16.msra.mxu1 %v6212_v43  ;;  %162 = vst [vmem:[#allocation3] sm:$0x88] %v161_v16  ;;  %1055 = vmatprep.subr.bf16.mxu0 %v6558_v1  ;;  %174 = vst [vmem:[#allocation3 + $0x20] sm:$0x88] %v173_v35 }
  0xe1   :  { %851 = vmatprep.subr.bf16.mxu1 %v6558_v1 }
  0xe3   :  { %1056 = vmatpush1.bf16.msra.mxu0 %v6221_v34 }
  0xe4   :  { %852 = vmatpush1.bf16.msra.mxu1 %v6214_v44  ;;  %1057 = vmatprep.subr.bf16.mxu0 %v6558_v1 }
  0xe5   :  { %853 = vmatprep.subr.bf16.mxu1 %v6558_v1 }
  0xe7   :  { %1058 = vmatpush1.bf16.msra.mxu0 %v6223_v41  ;;  %v708_v10 = vld [vmem:[#allocation3] sm:$0x88] }
  0xe8   :  { %854 = vmatpush1.bf16.msra.mxu1 %v6216_v8  ;;  %1059 = vmatprep.subr.bf16.mxu0 %v6558_v1 }
  0xe9   :  { %855 = vmatprep.subr.bf16.mxu1 %v6558_v1 }
  0xec   :  { %856 = vmatpush1.bf16.msra.mxu1 %v6218_v21 }
  0xed   :  { %857 = vmatprep.subr.bf16.mxu1 %v6558_v1 }
  0xf0   :  { %858 = vmatpush1.bf16.msra.mxu1 %v6220_v33 }
  0xf1   :  { %873 = vmatprep.subr.bf16.mxu1 %v6558_v1 }
  0xf4   :  { %874 = vmatpush2.bf16.msra.mxu1 %v6222_v40 }
  0xf5   :  { %1277 = vmatprep.subr.bf16.mxu1 %v6558_v1 }
 0x176   :  { %v327_v45 = vpop.f32.mrf.mxu0 }
 0x178   :  { %v6098_v46 = vpop.f32.mrf.mxu0 }
 0x179   :  { %v6224_v46 = vld [vmem:[#allocation7] sm:$0xff]  }
 0x17a   :  { %v330_v47 = vpop.f32.mrf.mxu0  ;;  %1060 = vmatpush1.bf16.msra.mxu0 %v6224_v46 }
 0x17b   :  { %1075 = vmatprep.subr.bf16.mxu0 %v6558_v1 }
 0x17c   :  { %v6099_v48 = vpop.f32.mrf.mxu0 }
 0x17d   :  { %v462_v49 = vpop.f32.mrf.mxu1 }
 0x17e   :  { %v335_v50 = vpop.f32.mrf.mxu0  ;;  %v463_v6 = vadd.f32 %v462_v49, %v327_v45 }
 0x17f   :  { %v6120_v51 = vpop.f32.mrf.mxu1 }
 0x180   :  { %v6102_v52 = vpop.f32.mrf.mxu0 }
 0x181   :  { %v465_v53 = vpop.f32.mrf.mxu1  ;;  %v6226_v52 = vld [vmem:[#allocation7 + $0x40] sm:$0xff]  }
 0x182   :  { %v337_v54 = vpop.f32.mrf.mxu0  ;;  %v466_v18 = vadd.f32 %v465_v53, %v330_v47  ;;  %1076 = vmatpush2.bf16.msra.mxu0 %v6226_v52 }
 0x183   :  { %v6121_v55 = vpop.f32.mrf.mxu1 }
 0x184   :  { %v6103_v56 = vpop.f32.mrf.mxu0 }
 0x185   :  { %v470_v57 = vpop.f32.mrf.mxu1 }
 0x186   :  { %v6812_v58 = vpop.f32.mrf.mxu0 }
 0x187   :  { %v6124_v59 = vpop.f32.mrf.mxu1 }
 0x188   :  { %v6106_v60 = vpop.f32.mrf.mxu0 }
 0x189   :  { %v472_v61 = vpop.f32.mrf.mxu1  ;;  %v175_v60 = vld [vmem:[#allocation3 + $0x38] sm:$0x11] }
 0x18a   :  { %v6819_v63 = vpop.f32.mrf.mxu0  ;;  %v176_v62 = vsel %vm168_vm14, 0, %v175_v60 }
 0x18b   :  { %v6125_v3 = vpop.f32.mrf.mxu1  ;;  %177 = vst [vmem:[#allocation3 + $0x38] sm:$0x11] %v176_v62 }
 0x18c   :  { %v6107_v5 = vpop.f32.mrf.mxu0 }
 0x18d   :  { %v6831_v7 = vpop.f32.mrf.mxu1 }
 0x18e   :  { %v620_v11 = vpop.f32.mrf.mxu0  ;;  %v477_v45 = vadd.f32 %v6831_v7, %v6812_v58 }
 0x18f   :  { %v641_v14 = vadd.f32 %v620_v11, %v463_v6  ;;  %v6128_v15 = vpop.f32.mrf.mxu1  ;;  %v7832_v6 = vmov 0 }
 0x190   :  { %v6142_v17 = vpop.f32.mrf.mxu0  ;;  %v7833_v6 = vsel %vm6891_vm11, 4294967295, %v7832_v6 }
 0x191   :  { %v652_v19 = vadd.f32 %v6841_v12, %v641_v14  ;;  %v479_v20 = vpop.f32.mrf.mxu1  ;;  %v711_v14 = vld [vmem:[#allocation3 + $0x18] sm:$0xff]  ;;  %v712_v17 = vld [vmem:[#allocation3 + $0x20] sm:$0xff] }
 0x192   :  { %v623_v23 = vpop.f32.mrf.mxu0  ;;  %v480_v50 = vadd.f32 %v479_v20, %v6819_v63  ;;  %v6903_v28 = vcombine.high %v711_v14, %v712_v17 }
 0x193   :  { %v656_v25 = vmul.f32 0.01, %v652_v19  ;;  %v642_v26 = vadd.f32 %v623_v23, %v466_v18  ;;  %v6129_v27 = vpop.f32.mrf.mxu1  ;;  %vm654_vm15 = vcmp.ge.f32.partialorder %v652_v19, 0.0 }
 0x194   :  { %v6143_v29 = vpop.f32.mrf.mxu0 }
 0x195   :  { %v653_v31 = vadd.f32 %v6841_v12, %v642_v26  ;;  %v658_v32 = vsel %vm654_vm15, %v652_v19, %v656_v25 }
 0x196   :  { %v628_v36 = vpop.f32.mrf.mxu0  ;;  %v5862_v37 = vpack.c.bf16 %v658_v32, %v658_v32 }
 0x197   :  { %v657_v38 = vmul.f32 0.01, %v653_v31  ;;  %vm655_vm0 = vcmp.ge.f32.partialorder %v653_v31, 0.0 }
 0x198   :  { %v6146_v39 = vpop.f32.mrf.mxu0  ;;  %674 = vrot.lane.b32.xlu0 %v5862_v37, %s6560_s2 }
 0x199   :  { %v659_v0 = vsel %vm655_vm0, %v653_v31, %v657_v38  ;;  %v6227_v39 = vld [vmem:[#allocation7 + $0xc0] sm:$0xff]  }
 0x19a   :  { %v630_v42 = vpop.f32.mrf.mxu0  ;;  %v5863_v43 = vpack.c.bf16 %v659_v0, %v659_v0 }
 0x19c   :  { %v6147_v44 = vpop.f32.mrf.mxu0  ;;  %676 = vrot.lane.b32.xlu1 %v5863_v43, %s6560_s2 }
 0x19e   :  { %v634_v47 = vpop.f32.mrf.mxu0 }
 0x19f   :  { %v643_v48 = vadd.f32 %v634_v47, %v477_v45 }
 0x1a0   :  { %v6150_v49 = vpop.f32.mrf.mxu0 }
 0x1a1   :  { %v660_v51 = vadd.f32 %v6841_v12, %v643_v48 }
 0x1a2   :  { %v637_v53 = vpop.f32.mrf.mxu0 }
 0x1a3   :  { %v664_v54 = vmul.f32 0.01, %v660_v51  ;;  %v644_v55 = vadd.f32 %v637_v53, %v480_v50  ;;  %vm662_vm1 = vcmp.ge.f32.partialorder %v660_v51, 0.0  ;;  %v6920_v53 = vcombine.low %v711_v14, %v712_v17 }
 0x1a4   :  { %v6151_v56 = vpop.f32.mrf.mxu0 }
 0x1a5   :  { %v661_v57 = vadd.f32 %v6841_v12, %v644_v55  ;;  %v666_v58 = vsel %vm662_vm1, %v660_v51, %v664_v54  ;;  %v6228_v51 = vld [vmem:[#allocation7 + $0xb8] sm:$0xff]   ;;  %v1175_v55 = vshll.u32 %v6903_v28, 16  ;;  %vm3259_vm1 = vcmask 261120  }
 0x1a6   :  { %v5864_v59 = vpack.c.bf16 %v666_v58, %v666_v58  ;;  %v6229_v58 = vld [vmem:[#allocation7 + $0xb0] sm:$0xff]  }
 0x1a7   :  { %v665_v61 = vmul.f32 0.01, %v661_v57  ;;  %vm663_vm2 = vcmp.ge.f32.partialorder %v661_v57, 0.0  ;;  %v1177_v62 = vrot.slane %v1175_v55, 1 }
 0x1a8   :  { %696 = vrot.lane.b32.xlu0 %v5864_v59, %s6560_s2 }
 0x1a9   :  { %v667_v63 = vsel %vm663_vm2, %v661_v57, %v665_v61  ;;  %vm3600_vm2 = vcmask 1040448  }
 0x1aa   :  { %v5865_v3 = vpack.c.bf16 %v667_v63, %v667_v63  ;;  %vm3601_vm8 = vmand %vm3600_vm2, %vm125_vm7  ;;  %vm7809_vm7 = vcmask 1041473  }
 0x1ac   :  { %698 = vrot.lane.b32.xlu1 %v5865_v3, %s6560_s2 }
 0x20a   :  { %v675_v5 = vpop.permute.xlu0 %674 }
 0x20b   :  { %v678_v4 = vrot.slane %v675_v5, 4 }
 0x20d   :  { %v681_v2 = vsel %vm7817_vm10, %v678_v4, %v675_v5 }
 0x20e   :  { %688 = vst.msk [vmem:[#allocation3 + $0x8] sm:$0xff] %vm6891_vm11, %v681_v2  ;;  %v677_v7 = vpop.permute.xlu1 %676 }
 0x20f   :  { %v679_v8 = vrot.slane %v677_v7, 4 }
 0x211   :  { %v682_v9 = vsel %vm7817_vm10, %v679_v8, %v677_v7 }
 0x212   :  { %689 = vst.msk [vmem:[#allocation3 + $0x10] sm:$0xff] %vm6891_vm11, %v682_v9  ;;  %v6230_v9 = vld [vmem:[#allocation7 + $0xa8] sm:$0xff]  }
 0x215   :  { %v709_v11 = vld [vmem:[#allocation3 + $0x8] sm:$0xff] }
 0x216   :  { %v5452_v12 = vcombine.low %v708_v10, %v709_v11  ;;  %v5453_v13 = vcombine.high %v708_v10, %v709_v11 }
 0x218   :  { %v927_v15 = vshrl.u32 %v5453_v13, 16  ;;  %v930_v16 = vshll.u32 %v5453_v13, 16  ;;  %v910_v18 = vshrl.u32 %v5452_v12, 16  ;;  %v913_v20 = vshll.u32 %v5452_v12, 16 }
 0x219   :  { %v710_v19 = vld [vmem:[#allocation3 + $0x10] sm:$0xff] }
 0x21a   :  { %v697_v21 = vpop.permute.xlu0 %696  ;;  %v5435_v22 = vcombine.high %v709_v11, %v710_v19  ;;  %v6901_v23 = vcombine.low %v709_v11, %v710_v19  ;;  %v5455_v25 = vcombine.high %v710_v19, %v711_v14  ;;  %v929_v27 = vrot.slane %v927_v15, 3 }
 0x21b   :  { %v700_v26 = vrot.slane %v697_v21, 4  ;;  %v5454_v29 = vcombine.low %v710_v19, %v711_v14  ;;  %v932_v30 = vrot.slane %v930_v16, 4  ;;  %v912_v33 = vrot.slane %v910_v18, 3 }
 0x21c   :  { %5449 = vmatprep.mubr.msk.bf16.mxu1 %vm7801_vm4, %v5435_v22  ;;  %v935_v31 = vshrl.u32 %v5455_v25, 16  ;;  %v938_v32 = vshll.u32 %v5455_v25, 16  ;;  %v915_v35 = vrot.slane %v913_v20, 4  ;;  %v1170_v44 = vshll.u32 %v5435_v22, 16 }
 0x21d   :  { %v702_v34 = vsel %vm7817_vm10, %v700_v26, %v697_v21  ;;  %876 = vmatmul.mubr.bf16.vlgmr.msra.gmra.mxu1 %v6901_v23  ;;  %v918_v36 = vshrl.u32 %v5454_v29, 16  ;;  %v921_v37 = vshll.u32 %v5454_v29, 16  ;;  %v933_v45 = vor.u32 %v932_v30, %v929_v27 }
 0x21e   :  { %706 = vst.msk [vmem:[#allocation3 + $0x28] sm:$0xff] %vm6891_vm11, %v702_v34  ;;  %1278 = vmatpush1.bf16.msra.mxu1 %v6225_v24  ;;  %v699_v38 = vpop.permute.xlu1 %698  ;;  %v937_v0 = vrot.slane %v935_v31, 3  ;;  %v940_v40 = vrot.slane %v938_v32, 4  ;;  %5450 = vmatprep.mubr.msk.bf16.mxu1 %vm7801_vm4, %v6903_v28  ;;  %v916_v48 = vor.u32 %v915_v35, %v912_v33  ;;  %v1172_v54 = vrot.slane %v1170_v44, 1  ;;  %v6231_v24 = vld [vmem:[#allocation7 + $0xa0] sm:$0xff]   ;;  %v6233_v33 = vld [vmem:[#allocation7 + $0x98] sm:$0xff]  }
 0x21f   :  { %v701_v41 = vrot.slane %v699_v38, 4  ;;  %1279 = vmatprep.subr.bf16.mxu1 %v6558_v1  ;;  %v920_v42 = vrot.slane %v918_v36, 3  ;;  %v923_v43 = vrot.slane %v921_v37, 4  ;;  %v1168_v57 = vshrl.u32 %v5435_v22, 16  ;;  %v6235_v37 = vld [vmem:[#allocation7 + $0x90] sm:$0xff]  }
 0x220   :  { %v941_v46 = vor.u32 %v940_v40, %v937_v0  ;;  %v1158_v36 = vshll.u32 %v6901_v23, 16  ;;  %v1163_v0 = vshll.u32 %v6920_v53, 16  ;;  %v1187_v40 = vshrl.u32 %v6903_v28, 16  ;;  %v1106_v44 = vld [vmem:[#allocation3 + $0x38] sm:$0x11] }
 0x221   :  { %v703_v47 = vsel %vm7817_vm10, %v701_v41, %v699_v38  ;;  %v924_v49 = vor.u32 %v923_v43, %v920_v42  ;;  %v1173_v61 = vor.u32 %v1172_v54, %v1168_v57  ;;  %v6236_v42 = vld [vmem:[#allocation7 + $0xd0] sm:$0xff]   ;;  %v1156_v43 = vshrl.u32 %v6901_v23, 16 }
 0x222   :  { %707 = vst.msk [vmem:[#allocation3 + $0x30] sm:$0xff] %vm6891_vm11, %v703_v47  ;;  %1280 = vmatpush1.bf16.msra.mxu1 %v6227_v39  ;;  %v942_v50 = vsel %vm7804_vm12, %v933_v45, %v941_v46  ;;  %v1160_v39 = vrot.slane %v1158_v36, 1  ;;  %v1189_v47 = vor.u32 %v1187_v40, %v1177_v62  ;;  %v5478_v57 = vcombine.low %v1106_v44, %v1106_v44  ;;  %v6269_v36 = vld [vmem:[#allocation10 + $0xc0] sm:$0xff]  }
 0x223   :  { %5469 = vmatprep.mubr.msk.bf16.mxu0 %vm7801_vm4, %v942_v50  ;;  %v925_v52 = vsel %vm7804_vm12, %v916_v48, %v924_v49  ;;  %1281 = vmatprep.subr.bf16.mxu1 %v6558_v1  ;;  %v1178_v16 = vsel %vm7819_vm13, %v1173_v61, %v1177_v62  ;;  %vm3663_vm11 = vsmask.f32 7958 }
 0x224   :  { %1078 = vmatmul.mubr.bf16.vlgmr.msra.gmra.mxu0 %v925_v52  ;;  %v1161_v45 = vor.u32 %v1160_v39, %v1156_v43  ;;  %v1199_v61 = vshll.u32 %v5478_v57, 16  ;;  %v6271_v39 = vld [vmem:[#allocation10 + $0x178] sm:$0xff]  }
 0x225   :  { %v713_v56 = vld [vmem:[#allocation3 + $0x28] sm:$0xff]  ;;  %884 = vmatmul.mubr.bf16.gmra.mxu1 %v6920_v53 }
 0x226   :  { %1282 = vmatpush1.bf16.msra.mxu1 %v6228_v51  ;;  %v5457_v59 = vcombine.high %v712_v17, %v713_v56  ;;  %v5456_v60 = vcombine.low %v712_v17, %v713_v56  ;;  %v1179_v51 = vshrl.u32 %v6920_v53, 16 }
 0x227   :  { %1283 = vmatprep.subr.bf16.mxu1 %v6558_v1 }
 0x228   :  { %v953_v63 = vshrl.u32 %v5457_v59, 16  ;;  %v956_v3 = vshll.u32 %v5457_v59, 16  ;;  %v944_v5 = vshrl.u32 %v5456_v60, 16  ;;  %v947_v4 = vshll.u32 %v5456_v60, 16 }
 0x229   :  { %v714_v2 = vld [vmem:[#allocation3 + $0x30] sm:$0xff] }
 0x22a   :  { %1284 = vmatpush1.bf16.msra.mxu1 %v6229_v58  ;;  %v6925_v7 = vcombine.high %v713_v56, %v714_v2  ;;  %v6927_v8 = vcombine.low %v713_v56, %v714_v2  ;;  %v955_v10 = vrot.slane %v953_v63, 3  ;;  %v958_v11 = vrot.slane %v956_v3, 4 }
 0x22b   :  { %1285 = vmatprep.subr.bf16.mxu1 %v6558_v1  ;;  %v946_v12 = vrot.slane %v944_v5, 3  ;;  %v949_v13 = vrot.slane %v947_v4, 4  ;;  %v5459_v14 = vcombine.high %v714_v2, %v714_v2  ;;  %v5458_v15 = vcombine.low %v714_v2, %v714_v2  ;;  %v6239_v4 = vld [vmem:[#allocation10 + $0x78] sm:$0xff]  }
 0x22c   :  { %5451 = vmatprep.mubr.msk.bf16.mxu1 %vm7801_vm4, %v6925_v7  ;;  %v959_v17 = vor.u32 %v958_v11, %v955_v10  ;;  %v1191_v41 = vshll.u32 %v6925_v7, 16  ;;  %v1183_v28 = vshll.u32 %v6927_v8, 16  ;;  %v1203_v23 = vshrl.u32 %v6925_v7, 16  ;;  %v6240_v2 = vld [vmem:[#allocation10 + $0x38] sm:$0xff]   ;;  %5910 = vmatprep.subr.bf16.mxu0 %v6239_v4  ;;  %v6243_v10 = vld [vmem:[#allocation10 + $0x70] sm:$0xff]  }
 0x22d   :  { %890 = vmatmul.mubr.bf16.gmra.mxu1 %v6927_v8  ;;  %v950_v18 = vor.u32 %v949_v13, %v946_v12  ;;  %v971_v19 = vshrl.u32 %v5459_v14, 16  ;;  %v974_v20 = vshll.u32 %v5459_v14, 16  ;;  %v962_v21 = vshrl.u32 %v5458_v15, 16  ;;  %v6241_v7 = vld [vmem:[#allocation10 + $0xf8] sm:$0xff]   ;;  %5911 = vmatpush3.bf16.msra.mxu0 %v6240_v2  ;;  %v6244_v11 = vld [vmem:[#allocation10 + $0x30] sm:$0xff]   ;;  %v6248_v14 = vld [vmem:[#allocation10 + $0x28] sm:$0xff]  }
 0x22e   :  { %1286 = vmatpush1.bf16.msra.mxu1 %v6230_v9  ;;  %5489 = vmatprep.mubr.msk.bf16.mxu1 %vm7801_vm4, %v1178_v16  ;;  %v960_v22 = vsel %vm7804_vm12, %v941_v46, %v959_v17  ;;  %v965_v25 = vshll.u32 %v5458_v15, 16  ;;  %v1165_v46 = vrot.slane %v1163_v0, 1  ;;  %v1193_v48 = vrot.slane %v1191_v41, 1  ;;  %v6242_v9 = vld [vmem:[#allocation10 + $0xb8] sm:$0xff]   ;;  %v6245_v12 = vld [vmem:[#allocation10 + $0xf0] sm:$0xff]   ;;  %v6249_v15 = vld [vmem:[#allocation10 + $0xe8] sm:$0xff]  }
 0x22f   :  { %5470 = vmatprep.mubr.msk.bf16.mxu0 %vm7801_vm4, %v960_v22  ;;  %v951_v26 = vsel %vm7804_vm12, %v924_v49, %v950_v18  ;;  %1287 = vmatprep.subr.bf16.mxu1 %v6558_v1  ;;  %v973_v27 = vrot.slane %v971_v19, 3  ;;  %v976_v29 = vrot.slane %v974_v20, 4  ;;  %v964_v30 = vrot.slane %v962_v21, 3  ;;  %v6246_v13 = vld [vmem:[#allocation10 + $0xb0] sm:$0xff]   ;;  %v6250_v16 = vld [vmem:[#allocation10 + $0xa8] sm:$0xff]   ;;  %v6253_v19 = vld [vmem:[#allocation10 + $0xe0] sm:$0xff]  }
 0x230   :  { %1086 = vmatmul.mubr.bf16.gmra.mxu0 %v951_v26  ;;  %v967_v31 = vrot.slane %v965_v25, 4  ;;  %v5479_v49 = vcombine.high %v1106_v44, %v1106_v44  ;;  %v1166_v50 = vsel %vm7819_vm13, %v1161_v45, %v1165_v46  ;;  %v1194_v52 = vsel %vm7819_vm13, %v1189_v47, %v1193_v48  ;;  %5912 = vmatprep.subr.bf16.mxu0 %v6243_v10  ;;  %v6254_v20 = vld [vmem:[#allocation10 + $0xa0] sm:$0xff]   ;;  %v6255_v21 = vld [vmem:[#allocation10 + $0x58] sm:$0xff]   ;;  %v6259_v26 = vld [vmem:[#allocation10 + $0x50] sm:$0xff]  }
 0x231   :  { %v977_v32 = vor.u32 %v976_v29, %v973_v27  ;;  %v1181_v55 = vor.u32 %v1179_v51, %v1165_v46  ;;  %v1185_v56 = vrot.slane %v1183_v28, 1  ;;  %v1205_v58 = vor.u32 %v1203_v23, %v1193_v48  ;;  %5913 = vmatpush3.bf16.msra.mxu0 %v6244_v11  ;;  %v6256_v22 = vld [vmem:[#allocation10 + $0x18] sm:$0xff]   ;;  %v6260_v27 = vld [vmem:[#allocation10 + $0x10] sm:$0xff]   ;;  %v6968_v2 = vld [vmem:[%s7791_s4] ss:$0 sm:$0xff] }
 0x232   :  { %1288 = vmatpush1.bf16.msra.mxu1 %v6231_v24  ;;  %v968_v35 = vor.u32 %v967_v31, %v964_v30  ;;  %v1207_v54 = vshll.u32 %v5479_v49, 16  ;;  %v1195_v62 = vshrl.u32 %v6927_v8, 16  ;;  %v1201_v3 = vrot.slane %v1199_v61, 1  ;;  %v6247_v8 = vld [vmem:[#allocation10 + $0x68] sm:$0xff]   ;;  %v6257_v24 = vld [vmem:[#allocation10 + $0xd8] sm:$0xff]   ;;  %v6261_v29 = vld [vmem:[#allocation10 + $0xd0] sm:$0xff]  }
 0x233   :  { %v978_v34 = vsel %vm7804_vm12, %v959_v17, %v977_v32  ;;  %1289 = vmatprep.subr.bf16.mxu1 %v6558_v1  ;;  %v1186_v60 = vsel %vm7819_vm13, %v1181_v55, %v1185_v56  ;;  %5914 = vmatprep.subr.bf16.mxu0 %v6247_v8  ;;  %v6251_v17 = vld [vmem:[#allocation10 + $0x60] sm:$0xff]   ;;  %v6258_v25 = vld [vmem:[#allocation10 + $0x98] sm:$0xff]   ;;  %v6262_v30 = vld [vmem:[#allocation10 + $0x90] sm:$0xff]  }
 0x234   :  { %5471 = vmatprep.mubr.msk.bf16.mxu0 %vm7801_vm4, %v978_v34  ;;  %v969_v38 = vsel %vm7804_vm12, %v950_v18, %v968_v35  ;;  %v1209_v59 = vrot.slane %v1207_v54, 1  ;;  %v1197_v63 = vor.u32 %v1195_v62, %v1185_v56  ;;  %v6252_v18 = vld [vmem:[#allocation10 + $0x20] sm:$0xff]   ;;  %v6263_v31 = vld [vmem:[#allocation10 + $0x48] sm:$0xff]   ;;  %v6274_v0 = vld [vmem:[#allocation10 + $0x1f8] sm:$0xff]  }
 0x235   :  { %5915 = vmatpush3.bf16.msra.mxu0 %v6248_v14  ;;  %v6264_v32 = vld [vmem:[#allocation10 + $0x8] sm:$0xff]   ;;  %v6267_v34 = vld [vmem:[#allocation10 + $0x40] sm:$0xff]  }
 0x236   :  { %1290 = vmatpush1.bf16.msra.mxu1 %v6233_v33  ;;  %v1210_v53 = vsel %vm7819_vm13, %v1205_v58, %v1209_v59  ;;  %v1202_v5 = vsel %vm7819_vm13, %v1197_v63, %v1201_v3  ;;  %5916 = vmatprep.subr.bf16.mxu0 %v6251_v17  ;;  %v6265_v33 = vld [vmem:[#allocation10 + $0xc8] sm:$0xff]   ;;  %v1364_v63 = vlaneseq }
 0x237   :  { %1291 = vmatprep.subr.bf16.mxu1 %v6558_v1  ;;  %v6266_v35 = vld [vmem:[#allocation10 + $0x88] sm:$0xff]  }
 0x238   :  { %1092 = vmatmul.mubr.bf16.gmra.mxu0 %v969_v38  ;;  %v6270_v38 = vld [vmem:[#allocation10 + $0x80] sm:$0xff]  }
 0x239   :  { %5917 = vmatpush3.bf16.msra.mxu0 %v6252_v18 }
 0x23a   :  { %1292 = vmatpush1.bf16.msra.mxu1 %v6235_v37  ;;  %5918 = vmatprep.subr.bf16.mxu0 %v6255_v21  ;;  %v6268_v37 = vld [vmem:[#allocation10] sm:$0xff]  }
 0x23b   :  { %1307 = vmatprep.subr.bf16.mxu1 %v6558_v1 }
 0x23d   :  { %5919 = vmatpush3.bf16.msra.mxu0 %v6256_v22 }
 0x23e   :  { %1308 = vmatpush2.bf16.msra.mxu1 %v6236_v42  ;;  %5920 = vmatprep.subr.bf16.mxu0 %v6259_v26 }
 0x23f   :  { %5932 = vmatprep.subr.bf16.mxu1 %v6241_v7 }
 0x241   :  { %1310 = vmatmul.mubr.bf16.vlgmr.msra.gmra.mxu1 %v1166_v50  ;;  %5921 = vmatpush3.bf16.msra.mxu0 %v6260_v27 }
 0x242   :  { %5490 = vmatprep.mubr.msk.bf16.mxu1 %vm7801_vm4, %v1194_v52  ;;  %5933 = vmatpush3.bf16.msra.mxu1 %v6242_v9  ;;  %v6970_v9 = vshrl.u32 %v1364_v63, 7 }
 0x243   :  { %5934 = vmatprep.subr.bf16.mxu1 %v6245_v12  ;;  %5922 = vmatprep.subr.bf16.mxu0 %v6263_v31 }
 0x245   :  { %5923 = vmatpush3.bf16.msra.mxu0 %v6264_v32 }
 0x246   :  { %5935 = vmatpush3.bf16.msra.mxu1 %v6246_v13  ;;  %5924 = vmatprep.subr.bf16.mxu0 %v6267_v34 }
 0x247   :  { %5936 = vmatprep.subr.bf16.mxu1 %v6249_v15 }
 0x249   :  { %1318 = vmatmul.mubr.bf16.gmra.mxu1 %v1186_v60  ;;  %5925 = vmatpush3.bf16.msra.mxu0 %v6268_v37 }
 0x24a   :  { %5491 = vmatprep.mubr.msk.bf16.mxu1 %vm7801_vm4, %v1210_v53  ;;  %5937 = vmatpush3.bf16.msra.mxu1 %v6250_v16  ;;  %v6561_v53 = vmov 1983009808  }
 0x24b   :  { %5938 = vmatprep.subr.bf16.mxu1 %v6253_v19  ;;  %5954 = vmatprep.subr.bf16.mxu0 %v6271_v39  ;;  %v1362_v62 = vunpack.c.l.s4 %v6561_v53 }
 0x24d   :  { %v1363_v7 = vunpack.c.0.s8 %v1362_v62 }
 0x24e   :  { %5939 = vmatpush3.bf16.msra.mxu1 %v6254_v20 }
 0x24f   :  { %5940 = vmatprep.subr.bf16.mxu1 %v6257_v24  ;;  %v6974_v8 = vsub.s32 %v1363_v7, %v6970_v9 }
 0x251   :  { %1324 = vmatmul.mubr.bf16.gmra.mxu1 %v1202_v5 }
 0x252   :  { %5941 = vmatpush3.bf16.msra.mxu1 %v6258_v25 }
 0x253   :  { %5942 = vmatprep.subr.bf16.mxu1 %v6261_v29 }
 0x256   :  { %5943 = vmatpush3.bf16.msra.mxu1 %v6262_v30 }
 0x257   :  { %5944 = vmatprep.subr.bf16.mxu1 %v6265_v33 }
 0x25a   :  { %5945 = vmatpush3.bf16.msra.mxu1 %v6266_v35 }
 0x25b   :  { %5946 = vmatprep.subr.bf16.mxu1 %v6269_v36 }
 0x25e   :  { %5947 = vmatpush3.bf16.msra.mxu1 %v6270_v38 }
 0x25f   :  { %5976 = vmatprep.subr.bf16.mxu1 %v6274_v0 }
 0x2dd   :  { %v877_v40 = vpop.f32.mrf.mxu1 }
 0x2df   :  { %v879_v41 = vpop.f32.mrf.mxu1 }
 0x2e1   :  { %v880_v42 = vpop.f32.mrf.mxu1 }
 0x2e3   :  { %v882_v43 = vpop.f32.mrf.mxu1 }
 0x2e4   :  { %v1079_v44 = vpop.f32.mrf.mxu0 }
 0x2e5   :  { %v885_v45 = vpop.f32.mrf.mxu1  ;;  %v1080_v5 = vadd.f32 %v1079_v44, %v877_v40 }
 0x2e6   :  { %v1081_v46 = vpop.f32.mrf.mxu0 }
 0x2e7   :  { %v886_v47 = vpop.f32.mrf.mxu1 }
 0x2e8   :  { %v1082_v48 = vpop.f32.mrf.mxu0 }
 0x2e9   :  { %v887_v49 = vpop.f32.mrf.mxu1  ;;  %v1083_v12 = vadd.f32 %v1082_v48, %v880_v42 }
 0x2ea   :  { %v1084_v50 = vpop.f32.mrf.mxu0 }
 0x2eb   :  { %v888_v51 = vpop.f32.mrf.mxu1 }
 0x2ed   :  { %v891_v28 = vpop.f32.mrf.mxu1 }
 0x2ef   :  { %v893_v52 = vpop.f32.mrf.mxu1 }
 0x2f0   :  { %v1087_v54 = vpop.f32.mrf.mxu0 }
 0x2f1   :  { %v6961_v23 = vpop.f32.mrf.mxu1 }
 0x2f2   :  { %v1088_v55 = vpop.f32.mrf.mxu0 }
 0x2f3   :  { %v896_v56 = vpop.f32.mrf.mxu1 }
 0x2f4   :  { %v1089_v57 = vpop.f32.mrf.mxu0 }
 0x2f6   :  { %v1090_v58 = vpop.f32.mrf.mxu0 }
 0x2f8   :  { %v1093_v59 = vpop.f32.mrf.mxu0 }
 0x2f9   :  { %v1094_v40 = vadd.f32 %v1093_v59, %v891_v28 }
 0x2fa   :  { %v1095_v60 = vpop.f32.mrf.mxu0 }
 0x2fc   :  { %v6963_v61 = vpop.f32.mrf.mxu0 }
 0x2fd   :  { %v1097_v48 = vadd.f32 %v6963_v61, %v6961_v23 }
 0x2fe   :  { %v1098_v3 = vpop.f32.mrf.mxu0 }
 0x301   :  { %v1311_v4 = vpop.f32.mrf.mxu1 }
 0x302   :  { %v1332_v10 = vadd.f32 %v1311_v4, %v1080_v5 }
 0x303   :  { %v1313_v11 = vpop.f32.mrf.mxu1 }
 0x304   :  { %v1343_v13 = vadd.f32 %v6968_v2, %v1332_v10 }
 0x305   :  { %v1314_v14 = vpop.f32.mrf.mxu1 }
 0x306   :  { %vm1345_vm6 = vcmp.ge.f32.partialorder %v1343_v13, 0.0  ;;  %v1347_v15 = vmul.f32 0.01, %v1343_v13  ;;  %v1333_v16 = vadd.f32 %v1314_v14, %v1083_v12 }
 0x307   :  { %v1316_v17 = vpop.f32.mrf.mxu1 }
 0x308   :  { %v1349_v18 = vsel %vm1345_vm6, %v1343_v13, %v1347_v15  ;;  %v1344_v19 = vadd.f32 %v6968_v2, %v1333_v16  ;;  %vm3603_vm6 = vmand %vm7805_vm3, %vm7804_vm12  ;;  %vm3639_vm12 = vsmask.f32 1280  ;;  %vm3642_vm3 = vsmask.f32 5376 }
 0x309   :  { %1359 = vst [vmem:[#allocation4] sm:$0x1] %v1349_v18  ;;  %v1367_v20 = vrot.slane %v1349_v18, %v6974_v8  ;;  %v1379_v21 = vcombine.high %v1349_v18, %v1349_v18  ;;  %v1319_v22 = vpop.f32.mrf.mxu1  ;;  %vm7344_vm4 = vmor %vm3603_vm6, %vm3601_vm8  ;;  %vm7808_vm6 = vcmask 62469  }
 0x30a   :  { %vm1346_vm14 = vcmp.ge.f32.partialorder %v1344_v19, 0.0  ;;  %v1348_v24 = vmul.f32 0.01, %v1344_v19 }
 0x30b   :  { %v5493_v25 = vrot.slane %v1367_v20, 9  ;;  %v1372_v26 = vcombine.high %v1367_v20, %v1367_v20  ;;  %v1386_v27 = vrot.slane %v1379_v21, %v6974_v8  ;;  %5495 = vst.sshfl [vmem:[#allocation4 + $0x8] sm:$0x1 pattern:$0x76325410] %v1379_v21  ;;  %v1320_v29 = vpop.f32.mrf.mxu1 }
 0x30c   :  { %v1350_v30 = vsel %vm1346_vm14, %v1344_v19, %v1348_v24  ;;  %vm7807_vm14 = vcmask 1042498  }
 0x30d   :  { %1371 = vst [vmem:[#allocation4 + $0x2] sm:$0x1] %v5493_v25  ;;  %1374 = vst [vmem:[#allocation4 + $0x4] sm:$0x1] %v1372_v26  ;;  %v5494_v31 = vrot.slane %v1372_v26, 9  ;;  %v5496_v32 = vrot.slane %v1386_v27, 9  ;;  %v1393_v33 = vcombine.high %v1386_v27, %v1386_v27  ;;  %v1408_v34 = vrot.slane %v1350_v30, %v6974_v8  ;;  %v1321_v35 = vpop.f32.mrf.mxu1 }
 0x30e   :  { %1400 = vst [vmem:[#allocation4 + $0x10] sm:$0x1] %v1350_v30  ;;  %v1420_v36 = vcombine.high %v1350_v30, %v1350_v30  ;;  %v6272_v26 = vld [vmem:[#allocation10 + $0x138] sm:$0xff]   ;;  %v6276_v35 = vld [vmem:[#allocation10 + $0x170] sm:$0xff]  }
 0x30f   :  { %1378 = vst [vmem:[#allocation4 + $0x6] sm:$0x1] %v5494_v31  ;;  %1392 = vst [vmem:[#allocation4 + $0xa] sm:$0x1] %v5496_v32  ;;  %v5497_v37 = vrot.slane %v1393_v33, 9  ;;  %v5498_v38 = vrot.slane %v1408_v34, 9  ;;  %v1413_v39 = vcombine.high %v1408_v34, %v1408_v34  ;;  %v1322_v0 = vpop.f32.mrf.mxu1 }
 0x310   :  { %1395 = vst [vmem:[#allocation4 + $0xc] sm:$0x1] %v1393_v33  ;;  %v1427_v41 = vrot.slane %v1420_v36, %v6974_v8  ;;  %5500 = vst.sshfl [vmem:[#allocation4 + $0x18] sm:$0x1 pattern:$0x76325410] %v1420_v36 }
 0x311   :  { %1399 = vst [vmem:[#allocation4 + $0xe] sm:$0x1] %v5497_v37  ;;  %1412 = vst [vmem:[#allocation4 + $0x12] sm:$0x1] %v5498_v38  ;;  %v5499_v42 = vrot.slane %v1413_v39, 9  ;;  %v1325_v43 = vpop.f32.mrf.mxu1  ;;  %v6275_v34 = vld [vmem:[#allocation10 + $0x1b8] sm:$0xff]  }
 0x312   :  { %1415 = vst [vmem:[#allocation4 + $0x14] sm:$0x1] %v1413_v39  ;;  %v5501_v44 = vrot.slane %v1427_v41, 9  ;;  %v1434_v45 = vcombine.high %v1427_v41, %v1427_v41  ;;  %v1334_v46 = vadd.f32 %v1325_v43, %v1094_v40  ;;  %v6279_v38 = vld [vmem:[#allocation10 + $0x1f0] sm:$0xff]   ;;  %v6281_v40 = vld [vmem:[#allocation10 + $0x168] sm:$0xff]  }
 0x313   :  { %1419 = vst [vmem:[#allocation4 + $0x16] sm:$0x1] %v5499_v42  ;;  %v1327_v47 = vpop.f32.mrf.mxu1  ;;  %v6278_v39 = vld [vmem:[#allocation10 + $0x130] sm:$0xff]   ;;  %v6283_v42 = vld [vmem:[#allocation10 + $0x1e8] sm:$0xff]  }
 0x314   :  { %1433 = vst [vmem:[#allocation4 + $0x1a] sm:$0x1] %v5501_v44  ;;  %1436 = vst [vmem:[#allocation4 + $0x1c] sm:$0x1] %v1434_v45  ;;  %v5502_v49 = vrot.slane %v1434_v45, 9  ;;  %v1351_v50 = vadd.f32 %v6968_v2, %v1334_v46  ;;  %v6280_v41 = vld [vmem:[#allocation10 + $0x1b0] sm:$0xff]  }
 0x315   :  { %v1328_v51 = vpop.f32.mrf.mxu1  ;;  %v6282_v43 = vld [vmem:[#allocation10 + $0x128] sm:$0xff]   ;;  %v6285_v44 = vld [vmem:[#allocation10 + $0x160] sm:$0xff]  }
 0x316   :  { %1440 = vst [vmem:[#allocation4 + $0x1e] sm:$0x1] %v5502_v49  ;;  %vm1353_vm15 = vcmp.ge.f32.partialorder %v1351_v50, 0.0  ;;  %v1355_v28 = vmul.f32 0.01, %v1351_v50  ;;  %v1335_v52 = vadd.f32 %v1328_v51, %v1097_v48  ;;  %v6284_v45 = vld [vmem:[#allocation10 + $0x1a8] sm:$0xff]  }
 0x317   :  { %v1330_v54 = vpop.f32.mrf.mxu1  ;;  %v6287_v46 = vld [vmem:[#allocation10 + $0x1e0] sm:$0xff]   ;;  %v6289_v48 = vld [vmem:[#allocation10 + $0x158] sm:$0xff]  }
 0x318   :  { %v1357_v55 = vsel %vm1353_vm15, %v1351_v50, %v1355_v28  ;;  %v1352_v56 = vadd.f32 %v6968_v2, %v1335_v52  ;;  %v6286_v47 = vld [vmem:[#allocation10 + $0x120] sm:$0xff]   ;;  %v6291_v50 = vld [vmem:[#allocation10 + $0x1d8] sm:$0xff]   ;;  %v6293_v28 = vld [vmem:[#allocation10 + $0x150] sm:$0xff]   ;;  %vm3680_vm15 = vsmask.f32 2304 }
 0x319   :  { %1441 = vst [vmem:[#allocation4 + $0x1] sm:$0x1] %v1357_v55  ;;  %v1449_v57 = vrot.slane %v1357_v55, %v6974_v8  ;;  %v1461_v58 = vcombine.high %v1357_v55, %v1357_v55  ;;  %v6288_v49 = vld [vmem:[#allocation10 + $0x1a0] sm:$0xff]   ;;  %v6290_v51 = vld [vmem:[#allocation10 + $0x118] sm:$0xff]   ;;  %v6295_v54 = vld [vmem:[#allocation10 + $0x1d0] sm:$0xff]  }
 0x31a   :  { %vm1354_vm0 = vcmp.ge.f32.partialorder %v1352_v56, 0.0  ;;  %v1356_v23 = vmul.f32 0.01, %v1352_v56  ;;  %v6292_v52 = vld [vmem:[#allocation10 + $0x198] sm:$0xff]   ;;  %v6294_v55 = vld [vmem:[#allocation10 + $0x110] sm:$0xff]   ;;  %vm3681_vm9 = vmand %vm7807_vm14, %vm3680_vm15 }
 0x31b   :  { %v5503_v59 = vrot.slane %v1449_v57, 9  ;;  %v1454_v60 = vcombine.high %v1449_v57, %v1449_v57  ;;  %v1468_v61 = vrot.slane %v1461_v58, %v6974_v8  ;;  %5505 = vst.sshfl [vmem:[#allocation4 + $0x9] sm:$0x1 pattern:$0x76325410] %v1461_v58  ;;  %v6296_v58 = vld [vmem:[#allocation10 + $0x190] sm:$0xff]   ;;  %vm3640_vm15 = vmand %vm7809_vm7, %vm3639_vm12 }
 0x31c   :  { %v1358_v53 = vsel %vm1354_vm0, %v1352_v56, %v1356_v23  ;;  %v6297_v56 = vld [vmem:[#allocation10 + $0x148] sm:$0xff]   ;;  %vm7806_vm0 = vcmask 63494   ;;  %vm3620_vm12 = vsmask.f32 7938 }
 0x31d   :  { %1453 = vst [vmem:[#allocation4 + $0x3] sm:$0x1] %v5503_v59  ;;  %1456 = vst [vmem:[#allocation4 + $0x5] sm:$0x1] %v1454_v60  ;;  %v5504_v62 = vrot.slane %v1454_v60, 9  ;;  %v5506_v63 = vrot.slane %v1468_v61, 9  ;;  %v1475_v3 = vcombine.high %v1468_v61, %v1468_v61  ;;  %v1490_v5 = vrot.slane %v1358_v53, %v6974_v8 }
 0x31e   :  { %1482 = vst [vmem:[#allocation4 + $0x11] sm:$0x1] %v1358_v53  ;;  %v1502_v4 = vcombine.high %v1358_v53, %v1358_v53  ;;  %v6299_v23 = vld [vmem:[#allocation10 + $0x1c8] sm:$0xff]   ;;  %v6301_v61 = vld [vmem:[#allocation10 + $0x140] sm:$0xff]   ;;  %vm3621_vm7 = vmand %vm3600_vm2, %vm3620_vm12 }
 0x31f   :  { %1460 = vst [vmem:[#allocation4 + $0x7] sm:$0x1] %v5504_v62  ;;  %1474 = vst [vmem:[#allocation4 + $0xb] sm:$0x1] %v5506_v63  ;;  %v5507_v2 = vrot.slane %v1475_v3, 9  ;;  %v5508_v7 = vrot.slane %v1490_v5, 9  ;;  %v1495_v10 = vcombine.high %v1490_v5, %v1490_v5 }
 0x320   :  { %1477 = vst [vmem:[#allocation4 + $0xd] sm:$0x1] %v1475_v3  ;;  %v1509_v11 = vrot.slane %v1502_v4, %v6974_v8  ;;  %5510 = vst.sshfl [vmem:[#allocation4 + $0x19] sm:$0x1 pattern:$0x76325410] %v1502_v4 }
 0x321   :  { %1481 = vst [vmem:[#allocation4 + $0xf] sm:$0x1] %v5507_v2  ;;  %1494 = vst [vmem:[#allocation4 + $0x13] sm:$0x1] %v5508_v7  ;;  %v5509_v12 = vrot.slane %v1495_v10, 9  ;;  %v6298_v59 = vld [vmem:[#allocation10 + $0x108] sm:$0xff]  }
 0x322   :  { %1497 = vst [vmem:[#allocation4 + $0x15] sm:$0x1] %v1495_v10  ;;  %v5511_v13 = vrot.slane %v1509_v11, 9  ;;  %v1516_v14 = vcombine.high %v1509_v11, %v1509_v11  ;;  %v6300_v53 = vld [vmem:[#allocation10 + $0x188] sm:$0xff]   ;;  %v6303_v63 = vld [vmem:[#allocation10 + $0x1c0] sm:$0xff]   ;;  %v6305_v4 = vld [vmem:[#allocation10 + $0x278] sm:$0xff]  }
 0x323   :  { %1501 = vst [vmem:[#allocation4 + $0x17] sm:$0x1] %v5509_v12  ;;  %v6302_v3 = vld [vmem:[#allocation10 + $0x100] sm:$0xff]   ;;  %v6307_v10 = vld [vmem:[#allocation10 + $0x2f8] sm:$0xff]  }
 0x324   :  { %1515 = vst [vmem:[#allocation4 + $0x1b] sm:$0x1] %v5511_v13  ;;  %1518 = vst [vmem:[#allocation4 + $0x1d] sm:$0x1] %v1516_v14  ;;  %v5512_v15 = vrot.slane %v1516_v14, 9  ;;  %v6304_v2 = vld [vmem:[#allocation10 + $0x180] sm:$0xff]  }
 0x325   :  { %v6306_v11 = vld [vmem:[#allocation10 + $0x238] sm:$0xff]   ;;  %v6310_v14 = vld [vmem:[#allocation10 + $0x270] sm:$0xff]  }
 0x326   :  { %1522 = vst [vmem:[#allocation4 + $0x1f] sm:$0x1] %v5512_v15  ;;  %v1523_v16 = vld [vmem:[#allocation4] sm:$0xff] }
 0x327   :  { %v1538_v17 = vrot.slane %v1523_v16, %v6974_v8  ;;  %v1531_v18 = vcombine.high %v1523_v16, %v1523_v16  ;;  %v6308_v16 = vld [vmem:[#allocation10 + $0x2b8] sm:$0xff]  }
 0x328   :  { %v1524_v19 = vld [vmem:[#allocation4 + $0x8] sm:$0xff] }
 0x329   :  { %v1546_v20 = vcombine.high %v1538_v17, %v1538_v17  ;;  %v1545_v21 = vrot.slane %v1531_v18, %v6974_v8  ;;  %v6992_v22 = vrot.slane %v1524_v19, %v6974_v8  ;;  %v1548_v24 = vcombine.high %v1524_v19, %v1524_v19  ;;  %v6312_v18 = vld [vmem:[#allocation10 + $0x2f0] sm:$0xff]  }
 0x32a   :  { %v1615_v30 = vpack.c.bf16 %v1538_v17, %v1538_v17  ;;  %v1525_v57 = vld [vmem:[#allocation4 + $0x10] sm:$0xff] }
 0x32b   :  { %v1616_v25 = vpack.c.bf16 %v1546_v20, %v1546_v20  ;;  %v1547_v27 = vcombine.high %v1545_v21, %v1545_v21  ;;  %v1563_v29 = vcombine.high %v6992_v22, %v6992_v22  ;;  %v6997_v31 = vrot.slane %v1548_v24, %v6974_v8  ;;  %v6311_v20 = vld [vmem:[#allocation10 + $0x230] sm:$0xff]   ;;  %v6316_v24 = vld [vmem:[#allocation10 + $0x2e8] sm:$0xff]  }
 0x32c   :  { %v1617_v36 = vpack.c.bf16 %v1545_v21, %v1545_v21  ;;  %v1565_v60 = vcombine.high %v1525_v57, %v1525_v57  ;;  %v7002_v62 = vrot.slane %v1525_v57, %v6974_v8  ;;  %v1619_v13 = vpack.c.bf16 %v6992_v22, %v6992_v22  ;;  %v6314_v21 = vld [vmem:[#allocation10 + $0x268] sm:$0xff]   ;;  %v6313_v22 = vld [vmem:[#allocation10 + $0x2b0] sm:$0xff]  }
 0x32d   :  { %2694 = vmatprep.mubr.bf16.mxu0 %v1616_v25  ;;  %v1618_v32 = vpack.c.bf16 %v1547_v27, %v1547_v27  ;;  %v1620_v33 = vpack.c.bf16 %v1563_v29, %v1563_v29  ;;  %v1564_v37 = vcombine.high %v6997_v31, %v6997_v31  ;;  %v1621_v17 = vpack.c.bf16 %v6997_v31, %v6997_v31  ;;  %v6315_v25 = vld [vmem:[#allocation10 + $0x228] sm:$0xff]   ;;  %v6320_v29 = vld [vmem:[#allocation10 + $0x2e0] sm:$0xff]   ;;  %v6322_v31 = vld [vmem:[#allocation10 + $0x258] sm:$0xff]  }
 0x32e   :  { %2695 = vmatmul.mubr.bf16.vlgmr.msra.gmra.mxu0 %v1615_v30  ;;  %v7005_v5 = vrot.slane %v1565_v60, %v6974_v8  ;;  %v1580_v7 = vcombine.high %v7002_v62, %v7002_v62  ;;  %v6317_v27 = vld [vmem:[#allocation10 + $0x2a8] sm:$0xff]   ;;  %v6319_v30 = vld [vmem:[#allocation10 + $0x220] sm:$0xff]  }
 0x32f   :  { %5955 = vmatpush3.bf16.msra.mxu0 %v6272_v26  ;;  %2734 = vmatprep.mubr.bf16.mxu1 %v1618_v32  ;;  %v1622_v0 = vpack.c.bf16 %v1564_v37, %v1564_v37  ;;  %v6318_v26 = vld [vmem:[#allocation10 + $0x260] sm:$0xff]   ;;  %v6328_v37 = vld [vmem:[#allocation10 + $0x2d0] sm:$0xff]  }
 0x330   :  { %2774 = vmatprep.mubr.bf16.mxu0 %v1620_v33  ;;  %2735 = vmatmul.mubr.bf16.vlgmr.msra.gmra.mxu1 %v1617_v36  ;;  %v1581_v12 = vcombine.high %v7005_v5, %v7005_v5  ;;  %v1624_v15 = vpack.c.bf16 %v1580_v7, %v1580_v7  ;;  %v6321_v32 = vld [vmem:[#allocation10 + $0x2a0] sm:$0xff]   ;;  %v6324_v33 = vld [vmem:[#allocation10 + $0x2d8] sm:$0xff]  }
 0x331   :  { %5977 = vmatpush3.bf16.msra.mxu1 %v6275_v34  ;;  %5956 = vmatprep.subr.bf16.mxu0 %v6276_v35  ;;  %v6323_v34 = vld [vmem:[#allocation10 + $0x218] sm:$0xff]   ;;  %v6326_v35 = vld [vmem:[#allocation10 + $0x250] sm:$0xff]   ;;  %v6352_v7 = vld [vmem:[#allocation10 + $0x320] sm:$0xff]  }
 0x332   :  { %2814 = vmatprep.mubr.bf16.mxu1 %v1622_v0  ;;  %5978 = vmatprep.subr.bf16.mxu1 %v6279_v38  ;;  %v1626_v19 = vpack.c.bf16 %v1581_v12, %v1581_v12  ;;  %v6325_v36 = vld [vmem:[#allocation10 + $0x298] sm:$0xff]   ;;  %v6327_v38 = vld [vmem:[#allocation10 + $0x210] sm:$0xff]  }
 0x333   :  { %5957 = vmatpush3.bf16.msra.mxu0 %v6278_v39  ;;  %v6330_v39 = vld [vmem:[#allocation10 + $0x248] sm:$0xff]   ;;  %v1526_v0 = vld [vmem:[#allocation4 + $0x18] sm:$0xff] }
 0x334   :  { %5958 = vmatprep.subr.bf16.mxu0 %v6281_v40  ;;  %v6329_v40 = vld [vmem:[#allocation10 + $0x290] sm:$0xff]   ;;  %v6357_v12 = vld [vmem:[#allocation10 + $0x3d8] sm:$0xff]  }
 0x335   :  { %5979 = vmatpush3.bf16.msra.mxu1 %v6280_v41  ;;  %v6332_v41 = vld [vmem:[#allocation10 + $0x2c8] sm:$0xff]  }
 0x336   :  { %5980 = vmatprep.subr.bf16.mxu1 %v6283_v42  ;;  %v6331_v42 = vld [vmem:[#allocation10 + $0x208] sm:$0xff]  }
 0x337   :  { %5959 = vmatpush3.bf16.msra.mxu0 %v6282_v43  ;;  %v1582_v43 = vcombine.high %v1526_v0, %v1526_v0 }
 0x338   :  { %5960 = vmatprep.subr.bf16.mxu0 %v6285_v44  ;;  %v6334_v44 = vld [vmem:[#allocation10 + $0x240] sm:$0xff]  }
 0x339   :  { %5981 = vmatpush3.bf16.msra.mxu1 %v6284_v45  ;;  %v6333_v45 = vld [vmem:[#allocation10 + $0x288] sm:$0xff]  }
 0x33a   :  { %5982 = vmatprep.subr.bf16.mxu1 %v6287_v46  ;;  %v7016_v46 = vrot.slane %v1526_v0, %v6974_v8  ;;  %v2991_v0 = vld [vmem:[%s7798_s11 + $0x40] sm:$0xff] }
 0x33b   :  { %5961 = vmatpush3.bf16.msra.mxu0 %v6286_v47  ;;  %v6336_v47 = vld [vmem:[#allocation10 + $0x2c0] sm:$0xff]  }
 0x33c   :  { %5962 = vmatprep.subr.bf16.mxu0 %v6289_v48  ;;  %v6335_v48 = vld [vmem:[#allocation10 + $0x200] sm:$0xff]  }
 0x33d   :  { %5983 = vmatpush3.bf16.msra.mxu1 %v6288_v49  ;;  %v7019_v49 = vrot.slane %v1582_v43, %v6974_v8  ;;  %v6343_v8 = vld [vmem:[#allocation10 + $0x370] sm:$0xff]  }
 0x33e   :  { %5984 = vmatprep.subr.bf16.mxu1 %v6291_v50  ;;  %v6338_v50 = vld [vmem:[#allocation10 + $0x378] sm:$0xff]  }
 0x33f   :  { %5963 = vmatpush3.bf16.msra.mxu0 %v6290_v51  ;;  %v6337_v51 = vld [vmem:[#allocation10 + $0x280] sm:$0xff]  }
 0x340   :  { %5964 = vmatprep.subr.bf16.mxu0 %v6293_v28  ;;  %v1597_v28 = vcombine.high %v7016_v46, %v7016_v46 }
 0x341   :  { %5985 = vmatpush3.bf16.msra.mxu1 %v6292_v52  ;;  %v6340_v52 = vld [vmem:[#allocation10 + $0x3f8] sm:$0xff]  }
 0x342   :  { %5986 = vmatprep.subr.bf16.mxu1 %v6295_v54  ;;  %v6339_v54 = vld [vmem:[#allocation10 + $0x338] sm:$0xff]   ;;  %v1628_v57 = vpack.c.bf16 %v1597_v28, %v1597_v28 }
 0x343   :  { %5965 = vmatpush3.bf16.msra.mxu0 %v6294_v55  ;;  %v1598_v55 = vcombine.high %v7019_v49, %v7019_v49 }
 0x344   :  { %5966 = vmatprep.subr.bf16.mxu0 %v6297_v56  ;;  %v1623_v56 = vpack.c.bf16 %v7002_v62, %v7002_v62  ;;  %v6346_v62 = vld [vmem:[#allocation10 + $0x3b0] sm:$0xff]  }
 0x345   :  { %5987 = vmatpush3.bf16.msra.mxu1 %v6296_v58  ;;  %v6341_v58 = vld [vmem:[#allocation10 + $0x3b8] sm:$0xff]   ;;  %v1630_v60 = vpack.c.bf16 %v1598_v55, %v1598_v55  ;;  %v5513_v55 = vld [vmem:[%s7797_s10] ss:$0 sm:$0xff] }
 0x346   :  { %5988 = vmatprep.subr.bf16.mxu1 %v6299_v23  ;;  %v1625_v23 = vpack.c.bf16 %v7005_v5, %v7005_v5  ;;  %v6350_v5 = vld [vmem:[#allocation10 + $0x3a8] sm:$0xff]  }
 0x347   :  { %5967 = vmatpush3.bf16.msra.mxu0 %v6298_v59  ;;  %v6345_v59 = vld [vmem:[#allocation10 + $0x3f0] sm:$0xff]  }
 0x348   :  { %5968 = vmatprep.subr.bf16.mxu0 %v6301_v61  ;;  %v6344_v61 = vld [vmem:[#allocation10 + $0x330] sm:$0xff]  }
 0x349   :  { %5989 = vmatpush3.bf16.msra.mxu1 %v6300_v53  ;;  %v6347_v53 = vld [vmem:[#allocation10 + $0x368] sm:$0xff]  }
 0x34a   :  { %5990 = vmatprep.subr.bf16.mxu1 %v6303_v63  ;;  %v6349_v63 = vld [vmem:[#allocation10 + $0x3e8] sm:$0xff]  }
 0x34b   :  { %5969 = vmatpush3.bf16.msra.mxu0 %v6302_v3  ;;  %v6348_v3 = vld [vmem:[#allocation10 + $0x328] sm:$0xff]  }
 0x34c   :  { %5998 = vmatprep.subr.bf16.mxu0 %v6305_v4  ;;  %v6351_v4 = vld [vmem:[#allocation10 + $0x360] sm:$0xff]  }
 0x34d   :  { %5991 = vmatpush3.bf16.msra.mxu1 %v6304_v2  ;;  %v6353_v2 = vld [vmem:[#allocation10 + $0x3e0] sm:$0xff]  }
 0x34e   :  { %2775 = vmatmul.mubr.bf16.vlgmr.msra.gmra.mxu0 %v1619_v13  ;;  %6020 = vmatprep.subr.bf16.mxu1 %v6307_v10  ;;  %v6355_v10 = vld [vmem:[#allocation10 + $0x358] sm:$0xff]  }
 0x34f   :  { %5999 = vmatpush3.bf16.msra.mxu0 %v6306_v11  ;;  %2854 = vmatprep.mubr.bf16.mxu0 %v1624_v15  ;;  %v6354_v11 = vld [vmem:[#allocation10 + $0x3a0] sm:$0xff]   ;;  %v6356_v13 = vld [vmem:[#allocation10 + $0x318] sm:$0xff]  }
 0x350   :  { %2815 = vmatmul.mubr.bf16.vlgmr.msra.gmra.mxu1 %v1621_v17  ;;  %6000 = vmatprep.subr.bf16.mxu0 %v6310_v14  ;;  %v6359_v14 = vld [vmem:[#allocation10 + $0x350] sm:$0xff]   ;;  %v6358_v15 = vld [vmem:[#allocation10 + $0x398] sm:$0xff]  }
 0x351   :  { %6021 = vmatpush3.bf16.msra.mxu1 %v6308_v16  ;;  %2894 = vmatprep.mubr.bf16.mxu1 %v1626_v19  ;;  %v6361_v16 = vld [vmem:[#allocation10 + $0x3d0] sm:$0xff]  }
 0x352   :  { %6022 = vmatprep.subr.bf16.mxu1 %v6312_v18  ;;  %v6360_v17 = vld [vmem:[#allocation10 + $0x310] sm:$0xff]   ;;  %v6363_v18 = vld [vmem:[#allocation10 + $0x348] sm:$0xff]  }
 0x353   :  { %6001 = vmatpush3.bf16.msra.mxu0 %v6311_v20  ;;  %v6362_v19 = vld [vmem:[#allocation10 + $0x390] sm:$0xff]   ;;  %v6365_v20 = vld [vmem:[#allocation10 + $0x3c8] sm:$0xff]  }
 0x354   :  { %6002 = vmatprep.subr.bf16.mxu0 %v6314_v21  ;;  %v6364_v21 = vld [vmem:[#allocation10 + $0x308] sm:$0xff]  }
 0x355   :  { %6023 = vmatpush3.bf16.msra.mxu1 %v6313_v22  ;;  %v6367_v22 = vld [vmem:[#allocation10 + $0x340] sm:$0xff]  }
 0x356   :  { %6024 = vmatprep.subr.bf16.mxu1 %v6316_v24  ;;  %v6366_v24 = vld [vmem:[#allocation10 + $0x388] sm:$0xff]  }
 0x357   :  { %6003 = vmatpush3.bf16.msra.mxu0 %v6315_v25  ;;  %v6369_v25 = vld [vmem:[#allocation10 + $0x3c0] sm:$0xff]  }
 0x358   :  { %6004 = vmatprep.subr.bf16.mxu0 %v6318_v26  ;;  %v6368_v26 = vld [vmem:[#allocation10 + $0x300] sm:$0xff]  }
 0x359   :  { %6025 = vmatpush3.bf16.msra.mxu1 %v6317_v27  ;;  %v6370_v27 = vld [vmem:[#allocation10 + $0x380] sm:$0xff]  }
 0x35a   :  { %6026 = vmatprep.subr.bf16.mxu1 %v6320_v29  ;;  %v1627_v29 = vpack.c.bf16 %v7016_v46, %v7016_v46  ;;  %v7062_v46 = vld [vmem:[%s7798_s11 + $0x88] sm:$0xff] }
 0x35b   :  { %6005 = vmatpush3.bf16.msra.mxu0 %v6319_v30  ;;  %v1629_v30 = vpack.c.bf16 %v7019_v49, %v7019_v49 }
 0x35c   :  { %6006 = vmatprep.subr.bf16.mxu0 %v6322_v31  ;;  %v2999_v31 = vld [vmem:[%s7798_s11 + $0x80] sm:$0xff] }
 0x35d   :  { %6027 = vmatpush3.bf16.msra.mxu1 %v6321_v32  ;;  %v3007_v32 = vld [vmem:[%s7798_s11 + $0xc0] sm:$0xff] }
 0x35e   :  { %6028 = vmatprep.subr.bf16.mxu1 %v6324_v33  ;;  %v3001_v33 = vld [vmem:[%s7798_s11 + $0x90] sm:$0xff] }
 0x35f   :  { %6007 = vmatpush3.bf16.msra.mxu0 %v6323_v34  ;;  %v5659_v34 = vcombine.high %v2999_v31, %v3007_v32 }
 0x360   :  { %6008 = vmatprep.subr.bf16.mxu0 %v6326_v35  ;;  %v3009_v35 = vld [vmem:[%s7798_s11 + $0xd0] sm:$0xff] }
 0x361   :  { %6029 = vmatpush3.bf16.msra.mxu1 %v6325_v36  ;;  %v5658_v36 = vcombine.low %v2999_v31, %v3007_v32 }
 0x362   :  { %6030 = vmatprep.subr.bf16.mxu1 %v6328_v37  ;;  %v5662_v37 = vcombine.low %v3001_v33, %v3009_v35 }
 0x363   :  { %6009 = vmatpush3.bf16.msra.mxu0 %v6327_v38  ;;  %v5663_v38 = vcombine.high %v3001_v33, %v3009_v35 }
 0x364   :  { %6010 = vmatprep.subr.bf16.mxu0 %v6330_v39  ;;  %v2983_v39 = vld [vmem:[%s7798_s11] sm:$0xff] }
 0x365   :  { %6031 = vmatpush3.bf16.msra.mxu1 %v6329_v40  ;;  %v2985_v40 = vld [vmem:[%s7798_s11 + $0x10] sm:$0xff]  ;;  %v5642_v43 = vcombine.low %v2983_v39, %v2991_v0 }
 0x366   :  { %6032 = vmatprep.subr.bf16.mxu1 %v6332_v41  ;;  %v5643_v41 = vcombine.high %v2983_v39, %v2991_v0  ;;  %v2984_v39 = vld [vmem:[%s7798_s11 + $0x8] sm:$0xff] }
 0x367   :  { %6011 = vmatpush3.bf16.msra.mxu0 %v6331_v42  ;;  %v2993_v42 = vld [vmem:[%s7798_s11 + $0x50] sm:$0xff] }
 0x368   :  { %6012 = vmatprep.subr.bf16.mxu0 %v6334_v44  ;;  %v5646_v44 = vcombine.low %v2985_v40, %v2993_v42 }
 0x369   :  { %6033 = vmatpush3.bf16.msra.mxu1 %v6333_v45  ;;  %v5647_v45 = vcombine.high %v2985_v40, %v2993_v42  ;;  %v2987_v42 = vld [vmem:[%s7798_s11 + $0x20] sm:$0xff] }
 0x36a   :  { %6034 = vmatprep.subr.bf16.mxu1 %v6336_v47  ;;  %v7067_v47 = vld [vmem:[%s7798_s11 + $0xc8] sm:$0xff] }
 0x36b   :  { %6013 = vmatpush3.bf16.msra.mxu0 %v6335_v48  ;;  %v5660_v48 = vcombine.low %v7062_v46, %v7067_v47  ;;  %v5661_v49 = vcombine.high %v7062_v46, %v7067_v47  ;;  %v2994_v46 = vld [vmem:[%s7798_s11 + $0x58] sm:$0xff]  ;;  %v2989_v47 = vld [vmem:[%s7798_s11 + $0x30] sm:$0xff] }
 0x36c   :  { %6042 = vmatprep.subr.bf16.mxu0 %v6338_v50  ;;  %v7076_v50 = vld [vmem:[%s7798_s11 + $0xa0] sm:$0xff] }
 0x36d   :  { %6035 = vmatpush3.bf16.msra.mxu1 %v6337_v51  ;;  %v7081_v51 = vld [vmem:[%s7798_s11 + $0xe0] sm:$0xff] }
 0x36e   :  { %2855 = vmatmul.mubr.bf16.vlgmr.msra.gmra.mxu0 %v1623_v56  ;;  %6064 = vmatprep.subr.bf16.mxu1 %v6340_v52  ;;  %v5666_v28 = vcombine.low %v7076_v50, %v7081_v51  ;;  %v5667_v52 = vcombine.high %v7076_v50, %v7081_v51 }
 0x36f   :  { %6043 = vmatpush3.bf16.msra.mxu0 %v6339_v54  ;;  %2934 = vmatprep.mubr.bf16.mxu0 %v1628_v57 }
 0x370   :  { %2895 = vmatmul.mubr.bf16.vlgmr.msra.gmra.mxu1 %v1625_v23  ;;  %6044 = vmatprep.subr.bf16.mxu0 %v6343_v8 }
 0x371   :  { %6065 = vmatpush3.bf16.msra.mxu1 %v6341_v58  ;;  %2974 = vmatprep.mubr.bf16.mxu1 %v1630_v60 }
 0x372   :  { %6066 = vmatprep.subr.bf16.mxu1 %v6345_v59 }
 0x373   :  { %6045 = vmatpush3.bf16.msra.mxu0 %v6344_v61 }
 0x374   :  { %6046 = vmatprep.subr.bf16.mxu0 %v6347_v53 }
 0x375   :  { %6067 = vmatpush3.bf16.msra.mxu1 %v6346_v62 }
 0x376   :  { %6068 = vmatprep.subr.bf16.mxu1 %v6349_v63 }
 0x377   :  { %6047 = vmatpush3.bf16.msra.mxu0 %v6348_v3 }
 0x378   :  { %6048 = vmatprep.subr.bf16.mxu0 %v6351_v4 }
 0x379   :  { %6069 = vmatpush3.bf16.msra.mxu1 %v6350_v5 }
 0x37a   :  { %6070 = vmatprep.subr.bf16.mxu1 %v6353_v2 }
 0x37b   :  { %6049 = vmatpush3.bf16.msra.mxu0 %v6352_v7 }
 0x37c   :  { %6050 = vmatprep.subr.bf16.mxu0 %v6355_v10 }
 0x37d   :  { %6071 = vmatpush3.bf16.msra.mxu1 %v6354_v11 }
 0x37e   :  { %6072 = vmatprep.subr.bf16.mxu1 %v6357_v12 }
 0x37f   :  { %6051 = vmatpush3.bf16.msra.mxu0 %v6356_v13 }
 0x380   :  { %6052 = vmatprep.subr.bf16.mxu0 %v6359_v14 }
 0x381   :  { %6073 = vmatpush3.bf16.msra.mxu1 %v6358_v15 }
 0x382   :  { %6074 = vmatprep.subr.bf16.mxu1 %v6361_v16 }
 0x383   :  { %6053 = vmatpush3.bf16.msra.mxu0 %v6360_v17 }
 0x384   :  { %6054 = vmatprep.subr.bf16.mxu0 %v6363_v18 }
 0x385   :  { %6075 = vmatpush3.bf16.msra.mxu1 %v6362_v19 }
 0x386   :  { %6076 = vmatprep.subr.bf16.mxu1 %v6365_v20 }
 0x387   :  { %6055 = vmatpush3.bf16.msra.mxu0 %v6364_v21 }
 0x388   :  { %6056 = vmatprep.subr.bf16.mxu0 %v6367_v22 }
 0x389   :  { %6077 = vmatpush3.bf16.msra.mxu1 %v6366_v24 }
 0x38a   :  { %6078 = vmatprep.subr.bf16.mxu1 %v6369_v25 }
 0x38b   :  { %6057 = vmatpush3.bf16.msra.mxu0 %v6368_v26 }
 0x38c   :  { %3275 = vmatprep.subr.bf16.mxu0 %v5659_v34 }
 0x38d   :  { %6079 = vmatpush3.bf16.msra.mxu1 %v6370_v27 }
 0x38e   :  { %2935 = vmatmul.mubr.bf16.vlgmr.msra.gmra.mxu0 %v1627_v29  ;;  %3357 = vmatprep.subr.bf16.mxu1 %v5663_v38 }
 0x38f   :  { %3295 = vmatprep.mubr.bf16.mxu0 %v6558_v1  ;;  %3276 = vmatpush1.bf16.msra.mxu0 %v5658_v36 }
 0x390   :  { %2975 = vmatmul.mubr.bf16.vlgmr.msra.gmra.mxu1 %v1629_v30  ;;  %3277 = vmatprep.subr.bf16.mxu0 %v5643_v41  ;;  %v2992_v41 = vld [vmem:[%s7798_s11 + $0x48] sm:$0xff] }
 0x391   :  { %3377 = vmatprep.mubr.bf16.mxu1 %v6558_v1  ;;  %3358 = vmatpush1.bf16.msra.mxu1 %v5662_v37 }
 0x392   :  { %3359 = vmatprep.subr.bf16.mxu1 %v5647_v45 }
 0x393   :  { %3278 = vmatpush1.bf16.msra.mxu0 %v5642_v43  ;;  %v2995_v43 = vld [vmem:[%s7798_s11 + $0x60] sm:$0xff] }
 0x394   :  { %3316 = vmatprep.subr.bf16.mxu0 %v5661_v49 }
 0x395   :  { %3360 = vmatpush1.bf16.msra.mxu1 %v5646_v44 }
 0x396   :  { %3439 = vmatprep.subr.bf16.mxu1 %v5667_v52  ;;  %v5645_v52 = vcombine.high %v2984_v39, %v2992_v41 }
 0x3ee   :  { %v5926_v54 = vpop.f32.mrf.mxu0 }
 0x3f0   :  { %v5927_v56 = vpop.f32.mrf.mxu0  ;;  %v5948_v8 = vpop.f32.mrf.mxu1 }
 0x3f1   :  { %v5928_v57 = vadd.f32 %v5927_v56, %v5926_v54  ;;  %v5651_v54 = vcombine.high %v2987_v42, %v2995_v43  ;;  %v3010_v56 = vld [vmem:[%s7798_s11 + $0xd8] sm:$0xff] }
 0x3f2   :  { %v5929_v58 = vpop.f32.mrf.mxu0  ;;  %v5949_v23 = vpop.f32.mrf.mxu1 }
 0x3f3   :  { %v2697_v59 = vadd.f32 %v5928_v57, %v5513_v55  ;;  %v5950_v60 = vadd.f32 %v5949_v23, %v5948_v8  ;;  %v3002_v55 = vld [vmem:[%s7798_s11 + $0x98] sm:$0xff]  ;;  %v3005_v8 = vld [vmem:[%s7798_s11 + $0xb0] sm:$0xff]  ;;  %v5644_v58 = vcombine.low %v2984_v39, %v2992_v41  ;;  %v5650_v23 = vcombine.low %v2987_v42, %v2995_v43 }
 0x3f4   :  { %v5930_v61 = vpop.f32.mrf.mxu0  ;;  %v5951_v53 = vpop.f32.mrf.mxu1  ;;  %v3013_v57 = vld [vmem:[%s7798_s11 + $0xf0] sm:$0xff]  ;;  %v5664_v50 = vcombine.low %v3002_v55, %v3010_v56  ;;  %v3033_v39 = vsub.s32 3, %v6970_v9 }
 0x3f5   :  { %v2737_v62 = vadd.f32 %v5950_v60, %v2697_v59  ;;  %v5665_v59 = vcombine.high %v3002_v55, %v3010_v56  ;;  %v5671_v60 = vcombine.high %v3005_v8, %v3013_v57  ;;  %v2986_v61 = vld [vmem:[%s7798_s11 + $0x18] sm:$0xff]  ;;  %v5670_v51 = vcombine.low %v3005_v8, %v3013_v57 }
 0x3f6   :  { %v5952_v63 = vpop.f32.mrf.mxu1 }
 0x3f7   :  { %v3012_v63 = vld [vmem:[%s7798_s11 + $0xe8] sm:$0xff] }
 0x40e   :  { %v5970_v3 = vpop.f32.mrf.mxu0 }
 0x410   :  { %v5971_v4 = vpop.f32.mrf.mxu0  ;;  %v5992_v5 = vpop.f32.mrf.mxu1 }
 0x411   :  { %v5972_v21 = vadd.f32 %v5971_v4, %v5970_v3  ;;  %v5648_v3 = vcombine.low %v2986_v61, %v2994_v46 }
 0x412   :  { %v5973_v2 = vpop.f32.mrf.mxu0  ;;  %v5993_v7 = vpop.f32.mrf.mxu1 }
 0x413   :  { %v2777_v22 = vadd.f32 %v5972_v21, %v2737_v62  ;;  %v5994_v24 = vadd.f32 %v5993_v7, %v5992_v5  ;;  %v3004_v62 = vld [vmem:[%s7798_s11 + $0xa8] sm:$0xff]  ;;  %v3021_v21 = vsub.s32 0, %v6970_v9 }
 0x414   :  { %v5974_v10 = vpop.f32.mrf.mxu0  ;;  %v5995_v11 = vpop.f32.mrf.mxu1  ;;  %v5669_v5 = vcombine.high %v3004_v62, %v3012_v63  ;;  %v2988_v2 = vld [vmem:[%s7798_s11 + $0x28] sm:$0xff] }
 0x415   :  { %v2817_v26 = vadd.f32 %v5994_v24, %v2777_v22  ;;  %v2996_v7 = vld [vmem:[%s7798_s11 + $0x68] sm:$0xff]  ;;  %v5668_v10 = vcombine.low %v3004_v62, %v3012_v63  ;;  %v3037_v22 = vsub.s32 4, %v6970_v9  ;;  %v3015_v24 = vld [vmem:[%s7799_s12] sm:$0xff] }
 0x416   :  { %v5996_v12 = vpop.f32.mrf.mxu1  ;;  %v5653_v11 = vcombine.high %v2988_v2, %v2996_v7 }
 0x417   :  { %v3006_v12 = vld [vmem:[%s7798_s11 + $0xb8] sm:$0xff] }
 0x42e   :  { %v6014_v13 = vpop.f32.mrf.mxu0 }
 0x430   :  { %v6015_v14 = vpop.f32.mrf.mxu0  ;;  %v6036_v15 = vpop.f32.mrf.mxu1 }
 0x431   :  { %v6016_v25 = vadd.f32 %v6015_v14, %v6014_v13  ;;  %v3014_v13 = vld [vmem:[%s7798_s11 + $0xf8] sm:$0xff]  ;;  %v5652_v14 = vcombine.low %v2988_v2, %v2996_v7 }
 0x432   :  { %v6017_v16 = vpop.f32.mrf.mxu0  ;;  %v6037_v17 = vpop.f32.mrf.mxu1 }
 0x433   :  { %v2857_v27 = vadd.f32 %v6016_v25, %v2817_v26  ;;  %v6038_v29 = vadd.f32 %v6037_v17, %v6036_v15  ;;  %v5673_v15 = vcombine.high %v3006_v12, %v3014_v13  ;;  %v2990_v16 = vld [vmem:[%s7798_s11 + $0x38] sm:$0xff]  ;;  %v3022_v25 = vrot.slane %v3015_v24, %v3021_v21 }
 0x434   :  { %v6018_v18 = vpop.f32.mrf.mxu0  ;;  %v6039_v19 = vpop.f32.mrf.mxu1  ;;  %v2998_v17 = vld [vmem:[%s7798_s11 + $0x78] sm:$0xff]  ;;  %v3038_v26 = vrot.slane %v3015_v24, %v3037_v22 }
 0x435   :  { %v2897_v33 = vadd.f32 %v6038_v29, %v2857_v27  ;;  %v5672_v18 = vcombine.low %v3006_v12, %v3014_v13  ;;  %v5657_v19 = vcombine.high %v2990_v16, %v2998_v17 }
 0x436   :  { %v6040_v20 = vpop.f32.mrf.mxu1 }
 0x437   :  { %v5656_v20 = vcombine.low %v2990_v16, %v2998_v17 }
 0x44e   :  { %v6058_v30 = vpop.f32.mrf.mxu0 }
 0x450   :  { %v6059_v31 = vpop.f32.mrf.mxu0  ;;  %v6080_v32 = vpop.f32.mrf.mxu1 }
 0x451   :  { %v6060_v34 = vadd.f32 %v6059_v31, %v6058_v30 }
 0x452   :  { %v6061_v35 = vpop.f32.mrf.mxu0  ;;  %v6081_v36 = vpop.f32.mrf.mxu1 }
 0x453   :  { %v2937_v37 = vadd.f32 %v6060_v34, %v2897_v33  ;;  %v6082_v38 = vadd.f32 %v6081_v36, %v6080_v32  ;;  %v3029_v32 = vsub.s32 2, %v6970_v9  ;;  %v3025_v33 = vsub.s32 1, %v6970_v9  ;;  %v7192_v36 = vld [vmem:[%s7799_s12 + $0x8] sm:$0xff] }
 0x454   :  { %v6062_v0 = vpop.f32.mrf.mxu0  ;;  %v6083_v40 = vpop.f32.mrf.mxu1  ;;  %v3054_v42 = vrot.slane %v7192_v36, %v3021_v21 }
 0x455   :  { %v2977_v44 = vadd.f32 %v6082_v38, %v2937_v37  ;;  %v3030_v41 = vrot.slane %v3015_v24, %v3029_v32  ;;  %v3026_v43 = vrot.slane %v3015_v24, %v3025_v33 }
 0x456   :  { %v6084_v45 = vpop.f32.mrf.mxu1 }
 0x457   :  { %v7102_v49 = vpack.c.bf16 %v2977_v44, %v2977_v44  ;;  %v3041_v44 = vsub.s32 5, %v6970_v9 }
 0x459   :  { %5674 = vmatmul.mubr.msk.bf16.vlgmr.msra.gmra.mxu0 %vm3259_vm1, %v7102_v49  ;;  %5676 = vmatmul.mubr.msk.bf16.vlgmr.msra.gmra.mxu1 %vm3259_vm1, %v7102_v49 }
 0x45a   :  { %3317 = vmatpush1.bf16.msra.mxu0 %v5660_v48  ;;  %3440 = vmatpush1.bf16.msra.mxu1 %v5666_v28  ;;  %v2997_v48 = vld [vmem:[%s7798_s11 + $0x70] sm:$0xff]  ;;  %v5649_v28 = vcombine.high %v2986_v61, %v2994_v46 }
 0x45b   :  { %3318 = vmatprep.subr.bf16.mxu0 %v5645_v52  ;;  %3441 = vmatprep.subr.bf16.mxu1 %v5651_v54  ;;  %v5655_v53 = vcombine.high %v2989_v47, %v2997_v48  ;;  %v5654_v4 = vcombine.low %v2989_v47, %v2997_v48  ;;  %v3034_v54 = vrot.slane %v3015_v24, %v3033_v39 }
 0x45c   :  { %3336 = vmatprep.mubr.bf16.mxu0 %v6558_v1  ;;  %3459 = vmatprep.mubr.bf16.mxu1 %v6558_v1 }
 0x45e   :  { %3319 = vmatpush1.bf16.msra.mxu0 %v5644_v58  ;;  %3442 = vmatpush1.bf16.msra.mxu1 %v5650_v23  ;;  %v3045_v58 = vsub.s32 6, %v6970_v9 }
 0x45f   :  { %3398 = vmatprep.subr.bf16.mxu0 %v5665_v59  ;;  %3521 = vmatprep.subr.bf16.mxu1 %v5671_v60  ;;  %v3042_v59 = vrot.slane %v3015_v24, %v3041_v44 }
 0x460   :  { %v3046_v63 = vrot.slane %v3015_v24, %v3045_v58 }
 0x461   :  { %5675 = vmatmul.mubr.msk.bf16.vlgmr.msra.gmra.mxu0 %vm3259_vm1, %v7102_v49  ;;  %5678 = vmatmul.mubr.msk.bf16.vlgmr.msra.gmra.mxu1 %vm3259_vm1, %v7102_v49 }
 0x462   :  { %3399 = vmatpush1.bf16.msra.mxu0 %v5664_v50  ;;  %3522 = vmatpush1.bf16.msra.mxu1 %v5670_v51  ;;  %v3049_v50 = vsub.s32 7, %v6970_v9 }
 0x463   :  { %3400 = vmatprep.subr.bf16.mxu0 %v5649_v28  ;;  %3523 = vmatprep.subr.bf16.mxu1 %v5655_v53 }
 0x464   :  { %3418 = vmatprep.mubr.bf16.mxu0 %v6558_v1  ;;  %3541 = vmatprep.mubr.bf16.mxu1 %v6558_v1 }
 0x466   :  { %3401 = vmatpush1.bf16.msra.mxu0 %v5648_v3  ;;  %3524 = vmatpush1.bf16.msra.mxu1 %v5654_v4  ;;  %v3070_v3 = vrot.slane %v7192_v36, %v3037_v22 }
 0x467   :  { %3480 = vmatprep.subr.bf16.mxu0 %v5669_v5  ;;  %4164 = vmatprep.subr.bf16.mxu1 %v6558_v1 }
 0x469   :  { %5677 = vmatmul.mubr.msk.bf16.vlgmr.msra.gmra.mxu0 %vm3259_vm1, %v7102_v49  ;;  %5680 = vmatmul.mubr.msk.bf16.vlgmr.msra.gmra.mxu1 %vm3259_vm1, %v7102_v49 }
 0x46a   :  { %3481 = vmatpush1.bf16.msra.mxu0 %v5668_v10  ;;  %3500 = vmatprep.mubr.bf16.mxu0 %v6558_v1 }
 0x46b   :  { %3482 = vmatprep.subr.bf16.mxu0 %v5653_v11  ;;  %v3050_v11 = vrot.slane %v3015_v24, %v3049_v50 }
 0x46e   :  { %3483 = vmatpush1.bf16.msra.mxu0 %v5652_v14  ;;  %v6371_v14 = vld [vmem:[#allocation9 + $0x80] sm:$0xff]  }
 0x46f   :  { %3562 = vmatprep.subr.bf16.mxu0 %v5673_v15  ;;  %4165 = vmatpush1.bf16.msra.mxu1 %v6371_v14 }
 0x470   :  { %4166 = vmatprep.subr.bf16.mxu1 %v6558_v1 }
 0x471   :  { %5679 = vmatmul.mubr.msk.bf16.vlgmr.msra.gmra.mxu0 %vm3259_vm1, %v7102_v49 }
 0x472   :  { %3563 = vmatpush1.bf16.msra.mxu0 %v5672_v18  ;;  %3582 = vmatprep.mubr.bf16.mxu0 %v6558_v1 }
 0x473   :  { %3564 = vmatprep.subr.bf16.mxu0 %v5657_v19 }
 0x476   :  { %3565 = vmatpush1.bf16.msra.mxu0 %v5656_v20 }
 0x477   :  { %4366 = vmatprep.subr.bf16.mxu0 %v6558_v1 }
 0x479   :  { %5681 = vmatmul.mubr.msk.bf16.vlgmr.msra.gmra.mxu0 %vm3259_vm1, %v7102_v49  ;;  %vm3683_vm1 = vsmask.f32 6400 }
 0x47a   :  { %vm3684_vm5 = vmand %vm7806_vm0, %vm3683_vm1  ;;  %vm7818_vm0 = vcmask 64519  }
 0x47b   :  { %vm7353_vm8 = vmor %vm3684_vm5, %vm3681_vm9  ;;  %vm7812_vm5 = vcmask 1043523   ;;  %vm3721_vm9 = vsmask.f32 3328 }
 0x47c   :  { %vm3643_vm1 = vmand %vm7808_vm6, %vm3642_vm3  ;;  %vm3622_vm6 = vsmask.f32 7954 }
 0x47d   :  { %vm7363_vm14 = vmor %vm3643_vm1, %vm3640_vm15  ;;  %vm3661_vm1 = vsmask.f32 7942 }
 0x47e   :  { %vm7370_vm3 = vmand %vm7812_vm5, %vm3721_vm9  ;;  %vm7842_vm9 = vcmask 61444  }
 0x47f   :  { %vm3724_vm15 = vmand %vm7818_vm0, %vm7819_vm13 }
 0x480   :  { %vm3623_vm5 = vmand %vm7842_vm9, %vm3622_vm6  ;;  %vm3704_vm6 = vsmask.f32 7962 }
 0x481   :  { %vm7389_vm2 = vmor %vm3623_vm5, %vm3621_vm7  ;;  %vm7855_vm7 = vsmask.f32 7950  ;;  %vm7856_vm5 = vcmask 1043523  }
 0x519   :  { %v3297_v27 = vpop.f32.mrf.mxu0  ;;  %v3379_v29 = vpop.f32.mrf.mxu1 }
 0x51a   :  { %v3298_v30 = vadd.f32 %v3297_v27, %v3022_v25  ;;  %v3380_v31 = vadd.f32 %v3379_v29, %v3038_v26 }
 0x51b   :  { %v3299_v34 = vpop.f32.mrf.mxu0  ;;  %v3381_v35 = vpop.f32.mrf.mxu1 }
 0x51c   :  { %v7194_v37 = vpack.c.bf16 %v3298_v30, %v3298_v30  ;;  %v7196_v38 = vpack.c.bf16 %v3380_v31, %v3380_v31  ;;  %v3300_v23 = vadd.f32 %v3299_v34, %v3026_v43  ;;  %v3382_v5 = vadd.f32 %v3381_v35, %v3042_v59  ;;  %v6372_v30 = vld [vmem:[#allocation9 + $0x78] sm:$0xff]  }
 0x51d   :  { %v3301_v0 = vpop.f32.mrf.mxu0  ;;  %v3383_v40 = vpop.f32.mrf.mxu1  ;;  %v3058_v31 = vrot.slane %v7192_v36, %v3025_v33  ;;  %v3062_v35 = vrot.slane %v7192_v36, %v3029_v32  ;;  %4167 = vmatpush1.bf16.msra.mxu1 %v6372_v30  ;;  %v3066_v33 = vrot.slane %v7192_v36, %v3033_v39 }
 0x51e   :  { %3595 = vrot.lane.b32.xlu0 %v7194_v37, %s6560_s2  ;;  %v3673_v52 = vrot.slane %v7196_v38, 6  ;;  %v7227_v4 = vpack.c.bf16 %v3300_v23, %v3300_v23  ;;  %v7234_v19 = vpack.c.bf16 %v3382_v5, %v3382_v5  ;;  %4168 = vmatprep.subr.bf16.mxu1 %v6558_v1  ;;  %v3863_v59 = vshrl.u32 %v7194_v37, 16 }
 0x51f   :  { %v3302_v45 = vpop.f32.mrf.mxu0  ;;  %v3384_v49 = vpop.f32.mrf.mxu1 }
 0x520   :  { %v3613_v18 = vshll.u32 %v7227_v4, 16  ;;  %v3694_v0 = vshll.u32 %v7234_v19, 16  ;;  %v6373_v49 = vld [vmem:[#allocation9 + $0x70] sm:$0xff]  }
 0x521   :  { %v3338_v55 = vpop.f32.mrf.mxu0  ;;  %v3461_v56 = vpop.f32.mrf.mxu1  ;;  %4169 = vmatpush1.bf16.msra.mxu1 %v6373_v49 }
 0x522   :  { %v3339_v8 = vadd.f32 %v3338_v55, %v3030_v41  ;;  %v3462_v57 = vadd.f32 %v3461_v56, %v3054_v42  ;;  %3674 = vrot.lane.b32.xlu0 %v3673_v52, %s6560_s2  ;;  %v6374_v52 = vld [vmem:[#allocation9 + $0x38] sm:$0xff]   ;;  %v3696_v56 = vrot.slane %v3694_v0, 6  ;;  %4170 = vmatprep.subr.bf16.mxu1 %v6558_v1 }
 0x523   :  { %v3340_v60 = vpop.f32.mrf.mxu0  ;;  %v3463_v61 = vpop.f32.mrf.mxu1  ;;  %4367 = vmatpush1.bf16.msra.mxu0 %v6374_v52 }
 0x524   :  { %v7214_v46 = vpack.c.bf16 %v3339_v8, %v3339_v8  ;;  %v7216_v47 = vpack.c.bf16 %v3462_v57, %v3462_v57  ;;  %v3341_v48 = vadd.f32 %v3340_v60, %v3034_v54  ;;  %v3464_v54 = vadd.f32 %v3463_v61, %v3058_v31  ;;  %4368 = vmatprep.subr.bf16.mxu0 %v6558_v1 }
 0x525   :  { %v3342_v51 = vpop.f32.mrf.mxu0  ;;  %v3465_v28 = vpop.f32.mrf.mxu1  ;;  %v3074_v57 = vrot.slane %v7192_v36, %v3041_v44 }
 0x526   :  { %v3632_v53 = vrot.slane %v7214_v46, 7  ;;  %v7220_v62 = vpack.c.bf16 %v3341_v48, %v3341_v48  ;;  %3752 = vrot.lane.b32.xlu0 %v7216_v47, %s6560_s2  ;;  %v6375_v51 = vld [vmem:[#allocation9 + $0x68] sm:$0xff]   ;;  %v6376_v28 = vld [vmem:[#allocation9 + $0x30] sm:$0xff]  }
 0x527   :  { %v3343_v2 = vpop.f32.mrf.mxu0  ;;  %v3466_v7 = vpop.f32.mrf.mxu1  ;;  %4171 = vmatpush1.bf16.msra.mxu1 %v6375_v51  ;;  %4369 = vmatpush1.bf16.msra.mxu0 %v6376_v28  ;;  %v3605_v51 = vld [vmem:[#allocation3 + $0x8] sm:$0x11] }
 0x528   :  { %v3653_v10 = vshll.u32 %v7220_v62, 16  ;;  %3633 = vrot.lane.b32.xlu1 %v3632_v53, %s6560_s2  ;;  %v7268_v53 = vpack.c.bf16 %v3464_v54, %v3464_v54  ;;  %v3082_v2 = vrot.slane %v7192_v36, %v3049_v50  ;;  %4172 = vmatprep.subr.bf16.mxu1 %v6558_v1 }
 0x529   :  { %v3420_v12 = vpop.f32.mrf.mxu0  ;;  %v3543_v13 = vpop.f32.mrf.mxu1  ;;  %4370 = vmatprep.subr.bf16.mxu0 %v6558_v1 }
 0x52a   :  { %v3655_v15 = vrot.slane %v3653_v10, 7  ;;  %v3421_v16 = vadd.f32 %v3420_v12, %v3046_v63  ;;  %v3544_v17 = vadd.f32 %v3543_v13, %v3070_v3  ;;  %v3078_v63 = vrot.slane %v7192_v36, %v3045_v58  ;;  %v6377_v58 = vld [vmem:[#allocation9 + $0x60] sm:$0xff]  }
 0x52b   :  { %v3422_v20 = vpop.f32.mrf.mxu0  ;;  %v3545_v21 = vpop.f32.mrf.mxu1  ;;  %v3765_v12 = vshll.u32 %v7268_v53, 16  ;;  %v3905_v36 = vshrl.u32 %v7196_v38, 16  ;;  %4173 = vmatpush1.bf16.msra.mxu1 %v6377_v58 }
 0x52c   :  { %v7236_v22 = vpack.c.bf16 %v3421_v16, %v3421_v16  ;;  %v3423_v25 = vadd.f32 %v3422_v20, %v3050_v11  ;;  %v7239_v26 = vpack.c.bf16 %v3544_v17, %v3544_v17  ;;  %v6163_v29 = vpack.i.bf16 %v3655_v15, %v3613_v18  ;;  %v6378_v11 = vld [vmem:[#allocation9 + $0x28] sm:$0xff]   ;;  %4174 = vmatprep.subr.bf16.mxu1 %v6558_v1  ;;  %v6379_v20 = vld [vmem:[#allocation9 + $0x58] sm:$0xff]  }
 0x52d   :  { %v3424_v24 = vpop.f32.mrf.mxu0  ;;  %v3547_v27 = vpop.f32.mrf.mxu1  ;;  %v3546_v3 = vadd.f32 %v3545_v21, %v3074_v57  ;;  %4371 = vmatpush1.bf16.msra.mxu0 %v6378_v11  ;;  %v6380_v21 = vld [vmem:[#allocation9 + $0x20] sm:$0xff]   ;;  %v3916_v57 = vrot.slane %v7234_v19, 6  ;;  %v3757_v11 = vld [vmem:[#allocation3 + $0x10] sm:$0x11] }
 0x52e   :  { %v3714_v34 = vrot.slane %v7236_v22, 5  ;;  %v7249_v40 = vpack.c.bf16 %v3423_v25, %v3423_v25  ;;  %6164 = vrot.lane.b32.xlu0 %v6163_v29, %s6560_s2  ;;  %v3808_v43 = vrot.slane %v7239_v26, 6  ;;  %4372 = vmatprep.subr.bf16.mxu0 %v6558_v1  ;;  %v3884_v25 = vshrl.u32 %v7214_v46, 16  ;;  %v6382_v46 = vld [vmem:[#allocation9 + $0x18] sm:$0xff]  }
 0x52f   :  { %v3425_v41 = vpop.f32.mrf.mxu0  ;;  %v3548_v42 = vpop.f32.mrf.mxu1  ;;  %v7285_v15 = vpack.c.bf16 %v3546_v3, %v3546_v3  ;;  %v3907_v29 = vrot.slane %v3905_v36, 6  ;;  %4175 = vmatpush1.bf16.msra.mxu1 %v6379_v20  ;;  %v3645_v36 = vld [vmem:[#allocation3 + $0x8] sm:$0x22] }
 0x530   :  { %3715 = vrot.lane.b32.xlu1 %v3714_v34, %s6560_s2  ;;  %v3734_v32 = vshll.u32 %v7249_v40, 16  ;;  %4176 = vmatprep.subr.bf16.mxu1 %v6558_v1  ;;  %v6381_v34 = vld [vmem:[#allocation9 + $0x50] sm:$0xff]   ;;  %v3947_v41 = vshrl.u32 %v7216_v47, 16  ;;  %v3989_v42 = vshrl.u32 %v7239_v26, 16  ;;  %v6385_v47 = vld [vmem:[#allocation9 + $0x88] sm:$0xff]   ;;  %v3937_v19 = vrot.slane %v7249_v40, 5 }
 0x531   :  { %v3502_v45 = vpop.f32.mrf.mxu0  ;;  %v3822_v30 = vshll.u32 %v7285_v15, 16  ;;  %4373 = vmatpush1.bf16.msra.mxu0 %v6380_v21  ;;  %v6386_v26 = vld [vmem:[#allocation9 + $0x8] sm:$0xff]   ;;  %v7834_v40 = vmov 0 }
 0x532   :  { %v3503_v55 = vadd.f32 %v3502_v45, %v3062_v35  ;;  %v3736_v8 = vrot.slane %v3734_v32, 5  ;;  %3809 = vrot.lane.b32.xlu0 %v3808_v43, %s6560_s2  ;;  %v3886_v35 = vrot.slane %v3884_v25, 7  ;;  %4374 = vmatprep.subr.bf16.mxu0 %v6558_v1  ;;  %v6383_v43 = vld [vmem:[#allocation9 + $0x48] sm:$0xff]   ;;  %v6384_v32 = vld [vmem:[#allocation9 + $0x10] sm:$0xff]   ;;  %v3926_v45 = vshrl.u32 %v7236_v22, 16  ;;  %v6388_v22 = vld [vmem:[#allocation9] sm:$0xff]  }
 0x533   :  { %v3504_v39 = vpop.f32.mrf.mxu0  ;;  %4177 = vmatpush1.bf16.msra.mxu1 %v6381_v34  ;;  %v3991_v52 = vrot.slane %v3989_v42, 6  ;;  %v7835_v40 = vsel %vm7344_vm4, 4294967295, %v7834_v40 }
 0x534   :  { %v3505_v23 = vadd.f32 %v3504_v39, %v3066_v33  ;;  %v7265_v60 = vpack.c.bf16 %v3503_v55, %v3503_v55  ;;  %v6168_v48 = vpack.i.bf16 %v3736_v8, %v3696_v56  ;;  %v3824_v33 = vrot.slane %v3822_v30, 6  ;;  %4178 = vmatprep.subr.bf16.mxu1 %v6558_v1  ;;  %v6391_v39 = vld [vmem:[#allocation9 + $0x40] sm:$0xff]  }
 0x535   :  { %v3506_v61 = vpop.f32.mrf.mxu0  ;;  %4375 = vmatpush1.bf16.msra.mxu0 %v6382_v46  ;;  %v3928_v54 = vrot.slane %v3926_v45, 5 }
 0x536   :  { %v7270_v44 = vpack.c.bf16 %v3505_v23, %v3505_v23  ;;  %6169 = vrot.lane.b32.xlu1 %v6168_v48, %s6560_s2  ;;  %3867 = vrot.lane.b32.xlu0 %v3863_v59, %s6560_s2  ;;  %v3779_v7 = vrot.slane %v7265_v60, 7  ;;  %v3968_v55 = vshrl.u32 %v7265_v60, 16  ;;  %v3895_v59 = vrot.slane %v7220_v62, 7 }
 0x537   :  { %v3507_v37 = vpop.f32.mrf.mxu0  ;;  %4376 = vmatprep.subr.bf16.mxu0 %v6558_v1  ;;  %4179 = vmatpush1.bf16.msra.mxu1 %v6383_v43 }
 0x538   :  { %v3793_v5 = vshll.u32 %v7270_v44, 16  ;;  %4194 = vmatprep.subr.bf16.mxu1 %v6558_v1  ;;  %v3970_v56 = vrot.slane %v3968_v55, 7  ;;  %v3979_v60 = vrot.slane %v7270_v44, 7  ;;  %v3686_v37 = vld [vmem:[#allocation3 + $0x8] sm:$0x44] }
 0x539   :  { %v3584_v10 = vpop.f32.mrf.mxu0  ;;  %4377 = vmatpush1.bf16.msra.mxu0 %v6384_v32 }
 0x53a   :  { %v3795_v13 = vrot.slane %v3793_v5, 7  ;;  %v3585_v14 = vadd.f32 %v3584_v10, %v3078_v63  ;;  %3780 = vrot.lane.b32.xlu1 %v3779_v7, %s6560_s2  ;;  %4378 = vmatprep.subr.bf16.mxu0 %v6558_v1  ;;  %v7836_v63 = vmov 0 }
 0x53b   :  { %v3586_v9 = vpop.f32.mrf.mxu0  ;;  %4195 = vmatpush2.bf16.msra.mxu1 %v6385_v47  ;;  %v7837_v63 = vsel %vm7353_vm8, 4294967295, %v7836_v63  ;;  %v3814_v47 = vld [vmem:[#allocation3 + $0x10] sm:$0x44] }
 0x53c   :  { %v7289_v50 = vpack.c.bf16 %v3585_v14, %v3585_v14  ;;  %v3587_v16 = vadd.f32 %v3586_v9, %v3082_v2  ;;  %v6173_v17 = vpack.i.bf16 %v3795_v13, %v3765_v12  ;;  %4598 = vmatprep.subr.bf16.mxu1 %v6558_v1  ;;  %v7840_v9 = vmov 0 }
 0x53d   :  { %v3588_v18 = vpop.f32.mrf.mxu0  ;;  %4379 = vmatpush1.bf16.msra.mxu0 %v6386_v26  ;;  %v7841_v9 = vsel %vm7370_vm3, 4294967295, %v7840_v9  ;;  %vm7844_vm3 = vcmask 62469  }
 0x53e   :  { %v3837_v24 = vrot.slane %v7289_v50, 5  ;;  %v7295_v27 = vpack.c.bf16 %v3587_v16, %v3587_v16  ;;  %6174 = vrot.lane.b32.xlu0 %v6173_v17, %s6560_s2  ;;  %v4010_v8 = vshrl.u32 %v7289_v50, 16  ;;  %4380 = vmatprep.subr.bf16.mxu0 %v6558_v1  ;;  %vm7845_vm0 = vnez %v7841_v9 }
 0x53f   :  { %v3589_v38 = vpop.f32.mrf.mxu0  ;;  %vm7385_vm13 = vmor %vm3724_vm15, %vm7845_vm0  ;;  %vm3702_vm0 = vsmask.f32 7946 }
 0x540   :  { %v3851_v31 = vshll.u32 %v7295_v27, 16  ;;  %3838 = vrot.lane.b32.xlu1 %v3837_v24, %s6560_s2  ;;  %v4012_v23 = vrot.slane %v4010_v8, 5  ;;  %v4021_v62 = vrot.slane %v7295_v27, 5  ;;  %vm7402_vm15 = vmand %vm7856_vm5, %vm7855_vm7  ;;  %vm7868_vm7 = vcmask 63494  }
 0x541   :  { %4381 = vmatpush1.bf16.msra.mxu0 %v6388_v22  ;;  %vm3705_vm5 = vmand %vm7868_vm7, %vm3704_vm6 }
 0x542   :  { %v3853_v0 = vrot.slane %v3851_v31, 5  ;;  %3908 = vrot.lane.b32.xlu0 %v3907_v29, %s6560_s2  ;;  %4396 = vmatprep.subr.bf16.mxu0 %v6558_v1  ;;  %v3726_v31 = vld [vmem:[#allocation3 + $0x8] sm:$0x88] }
 0x544   :  { %3887 = vrot.lane.b32.xlu1 %v3886_v35, %s6560_s2  ;;  %v6178_v49 = vpack.i.bf16 %v3853_v0, %v3824_v33 }
 0x545   :  { %4397 = vmatpush2.bf16.msra.mxu0 %v6391_v39 }
 0x546   :  { %3951 = vrot.lane.b32.xlu0 %v3947_v41, %s6560_s2  ;;  %4850 = vmatprep.subr.bf16.mxu0 %v6558_v1 }
 0x548   :  { %6179 = vrot.lane.b32.xlu1 %v6178_v49, %s6560_s2 }
 0x54a   :  { %3992 = vrot.lane.b32.xlu0 %v3991_v52, %s6560_s2 }
 0x54c   :  { %3929 = vrot.lane.b32.xlu1 %v3928_v54, %s6560_s2 }
 0x54e   :  { %3875 = vrot.lane.b32.xlu0 %v7227_v4, %s6560_s2  ;;  %v4000_v4 = vrot.slane %v7285_v15, 6 }
 0x550   :  { %3971 = vrot.lane.b32.xlu1 %v3970_v56, %s6560_s2 }
 0x552   :  { %3917 = vrot.lane.b32.xlu0 %v3916_v57, %s6560_s2 }
 0x554   :  { %4013 = vrot.lane.b32.xlu1 %v4012_v23, %s6560_s2 }
 0x556   :  { %3959 = vrot.lane.b32.xlu0 %v7268_v53, %s6560_s2 }
 0x558   :  { %3896 = vrot.lane.b32.xlu1 %v3895_v59, %s6560_s2 }
 0x55a   :  { %4001 = vrot.lane.b32.xlu0 %v4000_v4, %s6560_s2 }
 0x55c   :  { %3938 = vrot.lane.b32.xlu1 %v3937_v19, %s6560_s2  ;;  %v3872_v19 = vld [vmem:[#allocation3 + $0x28] sm:$0x11] }
 0x560   :  { %3980 = vrot.lane.b32.xlu1 %v3979_v60, %s6560_s2 }
 0x564   :  { %4022 = vrot.lane.b32.xlu1 %v4021_v62, %s6560_s2 }
 0x590   :  { %v3596_v61 = vpop.permute.xlu0 %3595 }
 0x591   :  { %v3597_v48 = vrot.slane %v3596_v61, 4 }
 0x593   :  { %v3598_v28 = vsel %vm7817_vm10, %v3597_v48, %v3596_v61 }
 0x594   :  { %v3606_v53 = vsel %vm7344_vm4, %v3598_v28, %v3605_v51  ;;  %v3675_v44 = vpop.permute.xlu0 %3674 }
 0x595   :  { %3607 = vst [vmem:[#allocation3 + $0x8] sm:$0x11] %v3606_v53  ;;  %v3676_v3 = vrot.slane %v3675_v44, 4 }
 0x597   :  { %v3677_v5 = vsel %vm7817_vm10, %v3676_v3, %v3675_v44 }
 0x598   :  { %v3687_v2 = vsel %vm7353_vm8, %v3677_v5, %v3686_v37  ;;  %v3753_v7 = vpop.permute.xlu0 %3752 }
 0x599   :  { %3688 = vst [vmem:[#allocation3 + $0x8] sm:$0x44] %v3687_v2  ;;  %v3754_v10 = vrot.slane %v3753_v7, 4  ;;  %v3785_v2 = vld [vmem:[#allocation3 + $0x10] sm:$0x22] }
 0x59a   :  { %v3634_v58 = vpop.permute.xlu1 %3633 }
 0x59b   :  { %v3755_v12 = vsel %vm7817_vm10, %v3754_v10, %v3753_v7  ;;  %v3635_v14 = vrot.slane %v3634_v58, 4 }
 0x59c   :  { %v3758_v15 = vsel %vm7344_vm4, %v3755_v12, %v3757_v11  ;;  %vm7843_vm4 = vcmask 1041473   ;;  %v3625_v43 = vld [vmem:[#allocation3 + $0x8] sm:$0x11] }
 0x59d   :  { %3759 = vst [vmem:[#allocation3 + $0x10] sm:$0x11] %v3758_v15  ;;  %v3636_v50 = vsel %vm7817_vm10, %v3635_v14, %v3634_v58  ;;  %vm3662_vm8 = vmand %vm7843_vm4, %vm3661_vm1 }
 0x59e   :  { %v3646_v16 = vsel %vm7363_vm14, %v3636_v50, %v3645_v36  ;;  %vm3664_vm10 = vmand %vm7844_vm3, %vm3663_vm11  ;;  %vm7852_vm11 = vcmask 64512  }
 0x59f   :  { %3647 = vst [vmem:[#allocation3 + $0x8] sm:$0x22] %v3646_v16  ;;  %vm7393_vm4 = vmor %vm3664_vm10, %vm3662_vm8  ;;  %vm7859_vm10 = vsmask.f32 7966  ;;  %vm7860_vm8 = vcmask 64519  }
 0x5a0   :  { %v6165_v17 = vpop.permute.xlu0 %6164  ;;  %vm7853_vm12 = vmmov %vm7852_vm11  ;;  %v3707_v3 = vld [vmem:[#allocation3 + $0x8] sm:$0x44] }
 0x5a1   :  { %v6167_v18 = vunpack.i.h.bf16 %v6165_v17  ;;  %v6166_v20 = vunpack.i.l.bf16 %v6165_v17  ;;  %vm7854_vm3 = vmmov %vm7852_vm11  ;;  %v3843_v17 = vld [vmem:[#allocation3 + $0x10] sm:$0x88] }
 0x5a2   :  { %v3716_v25 = vpop.permute.xlu1 %3715  ;;  %vm7410_vm1 = vmand %vm7860_vm8, %vm7859_vm10  ;;  %vm7874_vm8 = vnez %v7835_v40 }
 0x5a3   :  { %v3717_v24 = vrot.slane %v3716_v25, 4  ;;  %v3658_v38 = vrot.slane %v6167_v18, 4  ;;  %v3617_v29 = vrot.slane %v6166_v20, 4  ;;  %vm7863_vm9 = vmmov %vm7854_vm3 }
 0x5a4   :  { %v3810_v46 = vpop.permute.xlu0 %3809  ;;  %vm7871_vm10 = vmmov %vm7863_vm9 }
 0x5a5   :  { %v3718_v34 = vsel %vm7852_vm11, %v3717_v24, %v3716_v25  ;;  %v3659_v35 = vsel %vm7853_vm12, %v3658_v38, %v6167_v18  ;;  %v3618_v0 = vsel %vm7854_vm3, %v3617_v29, %v6166_v20  ;;  %v3811_v33 = vrot.slane %v3810_v46, 4  ;;  %v3772_v25 = vld [vmem:[#allocation3 + $0x10] sm:$0x11] }
 0x5a6   :  { %v3727_v42 = vsel %vm7385_vm13, %v3718_v34, %v3726_v31  ;;  %v3666_v32 = vld [vmem:[#allocation3 + $0x8] sm:$0x22]  ;;  %v3626_v49 = vsel %vm7389_vm2, %v3618_v0, %v3625_v43  ;;  %vm7864_vm11 = vcmask 1042498   ;;  %vm7867_vm3 = vnez %v7837_v63  ;;  %v3913_v31 = vld [vmem:[#allocation3 + $0x28] sm:$0x44] }
 0x5a7   :  { %3728 = vst [vmem:[#allocation3 + $0x8] sm:$0x88] %v3727_v42  ;;  %v3667_v52 = vsel %vm7393_vm4, %v3659_v35, %v3666_v32  ;;  %v3812_v26 = vsel %vm7863_vm9, %v3811_v33, %v3810_v46  ;;  %3627 = vst [vmem:[#allocation3 + $0x8] sm:$0x11] %v3626_v49  ;;  %v3892_v42 = vld [vmem:[#allocation3 + $0x28] sm:$0x22] }
 0x5a8   :  { %vm7421_vm12 = vmand %vm7864_vm11, %vm3702_vm0  ;;  %3668 = vst [vmem:[#allocation3 + $0x8] sm:$0x22] %v3667_v52  ;;  %v3815_v55 = vsel %vm7867_vm3, %v3812_v26, %v3814_v47  ;;  %v6170_v22 = vpop.permute.xlu1 %6169  ;;  %v3868_v56 = vpop.permute.xlu0 %3867  ;;  %v3956_v47 = vld [vmem:[#allocation3 + $0x30] sm:$0x11] }
 0x5a9   :  { %3816 = vst [vmem:[#allocation3 + $0x10] sm:$0x44] %v3815_v55  ;;  %v6172_v8 = vunpack.i.h.bf16 %v6170_v22  ;;  %v6171_v57 = vunpack.i.l.bf16 %v6170_v22  ;;  %v3869_v39 = vrot.slane %v3868_v56, 4  ;;  %vm7433_vm0 = vmor %vm7410_vm1, %vm7402_vm15 }
 0x5aa   :  { %vm7440_vm6 = vmor %vm3705_vm5, %vm7421_vm12 }
 0x5ab   :  { %v3739_v59 = vrot.slane %v6172_v8, 4  ;;  %v3699_v4 = vrot.slane %v6171_v57, 4  ;;  %v3870_v60 = vsel %vm7871_vm10, %v3869_v39, %v3868_v56  ;;  %vm7875_vm15 = vmmov %vm7863_vm9 }
 0x5ac   :  { %v3873_v61 = vsel %vm7874_vm8, %v3870_v60, %v3872_v19  ;;  %v3781_v48 = vpop.permute.xlu1 %3780  ;;  %vm7876_vm1 = vmmov %vm7863_vm9 }
 0x5ad   :  { %v3740_v28 = vsel %vm7875_vm15, %v3739_v59, %v6172_v8  ;;  %v3700_v53 = vsel %vm7876_vm1, %v3699_v4, %v6171_v57  ;;  %3874 = vst [vmem:[#allocation3 + $0x28] sm:$0x11] %v3873_v61  ;;  %v3782_v44 = vrot.slane %v3781_v48, 4  ;;  %vm7877_vm9 = vmmov %vm7876_vm1  ;;  %v3997_v4 = vld [vmem:[#allocation3 + $0x30] sm:$0x44] }
 0x5ae   :  { %v3745_v51 = vld [vmem:[#allocation3 + $0x8] sm:$0x88]  ;;  %v3708_v5 = vsel %vm7440_vm6, %v3700_v53, %v3707_v3  ;;  %vm7878_vm11 = vmmov %vm7876_vm1 }
 0x5af   :  { %v3746_v37 = vsel %vm7433_vm0, %v3740_v28, %v3745_v51  ;;  %v3783_v7 = vsel %vm7877_vm9, %v3782_v44, %v3781_v48  ;;  %3709 = vst [vmem:[#allocation3 + $0x8] sm:$0x44] %v3708_v5  ;;  %vm7879_vm12 = vmmov %vm7876_vm1  ;;  %v4030_v44 = vld [vmem:[#allocation3] sm:$0x88] }
 0x5b0   :  { %3747 = vst [vmem:[#allocation3 + $0x8] sm:$0x88] %v3746_v37  ;;  %v6175_v10 = vpop.permute.xlu0 %6174  ;;  %v3786_v58 = vsel %vm7363_vm14, %v3783_v7, %v3785_v2  ;;  %vm7880_vm7 = vmmov %vm7876_vm1  ;;  %v3830_v28 = vld [vmem:[#allocation3 + $0x10] sm:$0x44]  ;;  %v3934_v2 = vld [vmem:[#allocation3 + $0x28] sm:$0x88] }
 0x5b1   :  { %v6177_v11 = vunpack.i.h.bf16 %v6175_v10  ;;  %v6176_v12 = vunpack.i.l.bf16 %v6175_v10  ;;  %3787 = vst [vmem:[#allocation3 + $0x10] sm:$0x22] %v3786_v58  ;;  %vm7881_vm5 = vmmov %vm7876_vm1 }
 0x5b2   :  { %v3839_v14 = vpop.permute.xlu1 %3838  ;;  %vm7882_vm10 = vmmov %vm7876_vm1 }
 0x5b3   :  { %v3769_v15 = vrot.slane %v6176_v12, 4  ;;  %v3840_v9 = vrot.slane %v3839_v14, 4  ;;  %v3798_v50 = vrot.slane %v6177_v11, 4  ;;  %vm7883_vm15 = vmmov %vm7876_vm1 }
 0x5b4   :  { %v3909_v36 = vpop.permute.xlu0 %3908  ;;  %vm7884_vm9 = vmmov %vm7876_vm1 }
 0x5b5   :  { %v3770_v16 = vsel %vm7878_vm11, %v3769_v15, %v6176_v12  ;;  %v3841_v18 = vsel %vm7879_vm12, %v3840_v9, %v3839_v14  ;;  %v3910_v20 = vrot.slane %v3909_v36, 4  ;;  %v3799_v41 = vsel %vm7881_vm5, %v3798_v50, %v6177_v11  ;;  %vm7885_vm11 = vmmov %vm7876_vm1  ;;  %v3880_v14 = vld [vmem:[#allocation3 + $0x28] sm:$0x11] }
 0x5b6   :  { %v3844_v24 = vsel %vm7385_vm13, %v3841_v18, %v3843_v17  ;;  %v3888_v38 = vpop.permute.xlu1 %3887  ;;  %v3773_v29 = vsel %vm7389_vm2, %v3770_v16, %v3772_v25  ;;  %vm7887_vm12 = vmmov %vm7876_vm1  ;;  %v3976_v16 = vld [vmem:[#allocation3 + $0x30] sm:$0x22] }
 0x5b7   :  { %3845 = vst [vmem:[#allocation3 + $0x10] sm:$0x88] %v3844_v24  ;;  %v3911_v34 = vsel %vm7880_vm7, %v3910_v20, %v3909_v36  ;;  %v3889_v46 = vrot.slane %v3888_v38, 4  ;;  %3774 = vst [vmem:[#allocation3 + $0x10] sm:$0x11] %v3773_v29  ;;  %v4031_v53 = vld [vmem:[#allocation3 + $0x8] sm:$0xff] }
 0x5b8   :  { %v3914_v35 = vsel %vm7867_vm3, %v3911_v34, %v3913_v31  ;;  %v3952_v0 = vpop.permute.xlu0 %3951  ;;  %v3801_v32 = vld [vmem:[#allocation3 + $0x10] sm:$0x22]  ;;  %v5719_v12 = vcombine.high %v4030_v44, %v4031_v53  ;;  %v5718_v9 = vcombine.low %v4030_v44, %v4031_v53  ;;  %v7489_v20 = vld [vmem:[#allocation3 + $0x20] sm:$0xff]  ;;  %vm7889_vm7 = vmmov %vm7876_vm1 }
 0x5b9   :  { %3915 = vst [vmem:[#allocation3 + $0x28] sm:$0x44] %v3914_v35  ;;  %v3890_v33 = vsel %vm7882_vm10, %v3889_v46, %v3888_v38  ;;  %v3953_v43 = vrot.slane %v3952_v0, 4  ;;  %v3802_v52 = vsel %vm7393_vm4, %v3799_v41, %v3801_v32  ;;  %v7494_v46 = vld [vmem:[#allocation3 + $0x18] sm:$0xff]  ;;  %v4018_v32 = vld [vmem:[#allocation3 + $0x30] sm:$0x88]  ;;  %vm7891_vm5 = vmmov %vm7876_vm1 }
 0x5ba   :  { %v3893_v45 = vsel %vm7363_vm14, %v3890_v33, %v3892_v42  ;;  %v6180_v49 = vpop.permute.xlu1 %6179  ;;  %3803 = vst [vmem:[#allocation3 + $0x10] sm:$0x22] %v3802_v52  ;;  %v4248_v38 = vshrl.u32 %v5719_v12, 16  ;;  %v4251_v35 = vshll.u32 %v5719_v12, 16  ;;  %v7500_v13 = vcombine.high %v7494_v46, %v7489_v20 }
 0x5bb   :  { %3894 = vst [vmem:[#allocation3 + $0x28] sm:$0x22] %v3893_v45  ;;  %v3954_v26 = vsel %vm7883_vm15, %v3953_v43, %v3952_v0  ;;  %v6182_v54 = vunpack.i.h.bf16 %v6180_v49  ;;  %v6181_v55 = vunpack.i.l.bf16 %v6180_v49  ;;  %v4231_v0 = vshrl.u32 %v5718_v9, 16 }
 0x5bc   :  { %v3957_v22 = vsel %vm7874_vm8, %v3954_v26, %v3956_v47  ;;  %v3993_v56 = vpop.permute.xlu0 %3992  ;;  %vm7886_vm8 = vmmov %vm7876_vm1  ;;  %v4234_v43 = vshll.u32 %v5718_v9, 16  ;;  %v6390_v26 = vld [vmem:[#allocation9 + $0xc8] sm:$0xff]   ;;  %vm7892_vm10 = vcmask 130048   ;;  %v7536_v62 = vcombine.low %v7494_v46, %v7489_v20 }
 0x5bd   :  { %3958 = vst [vmem:[#allocation3 + $0x30] sm:$0x11] %v3957_v22  ;;  %v3856_v8 = vrot.slane %v6182_v54, 4  ;;  %v3827_v57 = vrot.slane %v6181_v55, 4  ;;  %v3994_v39 = vrot.slane %v3993_v56, 4  ;;  %vm7894_vm15 = vmmov %vm7892_vm10 }
 0x5be   :  { %v3859_v59 = vld [vmem:[#allocation3 + $0x10] sm:$0x88]  ;;  %v3930_v19 = vpop.permute.xlu1 %3929 }
 0x5bf   :  { %v3857_v60 = vsel %vm7876_vm1, %v3856_v8, %v6182_v54  ;;  %v3828_v61 = vsel %vm7884_vm9, %v3827_v57, %v6181_v55  ;;  %v3995_v48 = vsel %vm7885_vm11, %v3994_v39, %v3993_v56  ;;  %v3931_v51 = vrot.slane %v3930_v19, 4 }
 0x5c0   :  { %v3860_v40 = vsel %vm7433_vm0, %v3857_v60, %v3859_v59  ;;  %v3998_v3 = vsel %vm7867_vm3, %v3995_v48, %v3997_v4  ;;  %v3876_v37 = vpop.permute.xlu0 %3875  ;;  %v3831_v5 = vsel %vm7440_vm6, %v3828_v61, %v3830_v28  ;;  %vm7888_vm3 = vmmov %vm7876_vm1  ;;  %v3922_v29 = vld [vmem:[#allocation3 + $0x28] sm:$0x44]  ;;  %v4250_v56 = vrot.slane %v4248_v38, 3 }
 0x5c1   :  { %3861 = vst [vmem:[#allocation3 + $0x10] sm:$0x88] %v3860_v40  ;;  %3999 = vst [vmem:[#allocation3 + $0x30] sm:$0x44] %v3998_v3  ;;  %v3932_v7 = vsel %vm7886_vm8, %v3931_v51, %v3930_v19  ;;  %v3877_v10 = vrot.slane %v3876_v37, 4  ;;  %v4253_v4 = vrot.slane %v4251_v35, 4 }
 0x5c2   :  { %3832 = vst [vmem:[#allocation3 + $0x10] sm:$0x44] %v3831_v5  ;;  %v3935_v58 = vsel %vm7385_vm13, %v3932_v7, %v3934_v2  ;;  %v3972_v11 = vpop.permute.xlu1 %3971  ;;  %v4233_v19 = vrot.slane %v4231_v0, 3  ;;  %v3901_v28 = vld [vmem:[#allocation3 + $0x28] sm:$0x22]  ;;  %v4236_v3 = vrot.slane %v4234_v43, 4  ;;  %vm7899_vm8 = vmmov %vm7876_vm1 }
 0x5c3   :  { %3936 = vst [vmem:[#allocation3 + $0x28] sm:$0x88] %v3935_v58  ;;  %v3878_v63 = vsel %vm7887_vm12, %v3877_v10, %v3876_v37  ;;  %v3973_v15 = vrot.slane %v3972_v11, 4  ;;  %v6392_v40 = vld [vmem:[#allocation9 + $0xc0] sm:$0xff]   ;;  %vm7896_vm9 = vsmask.f32 4352  ;;  %vm7900_vm12 = vmmov %vm7876_vm1 }
 0x5c4   :  { %v3881_v36 = vsel %vm7389_vm2, %v3878_v63, %v3880_v14  ;;  %v3918_v50 = vpop.permute.xlu0 %3917  ;;  %v3964_v57 = vld [vmem:[#allocation3 + $0x30] sm:$0x11]  ;;  %vm7898_vm11 = vmmov %vm7896_vm9 }
 0x5c5   :  { %3882 = vst [vmem:[#allocation3 + $0x28] sm:$0x11] %v3881_v36  ;;  %v3974_v17 = vsel %vm7888_vm3, %v3973_v15, %v3972_v11  ;;  %v3919_v18 = vrot.slane %v3918_v50, 4  ;;  %v4254_v15 = vor.u32 %v4253_v4, %v4250_v56  ;;  %v6399_v0 = vld [vmem:[#allocation9 + $0xb0] sm:$0xff]   ;;  %v4496_v56 = vshll.u32 %v7500_v13, 16 }
 0x5c6   :  { %v3977_v25 = vsel %vm7363_vm14, %v3974_v17, %v3976_v16  ;;  %v4014_v24 = vpop.permute.xlu1 %4013  ;;  %vm7890_vm14 = vmmov %vm7876_vm1  ;;  %v4237_v16 = vor.u32 %v4236_v3, %v4233_v19 }
 0x5c7   :  { %3978 = vst [vmem:[#allocation3 + $0x30] sm:$0x22] %v3977_v25  ;;  %v3920_v31 = vsel %vm7889_vm7, %v3919_v18, %v3918_v50  ;;  %v4015_v34 = vrot.slane %v4014_v24, 4  ;;  %v6397_v18 = vld [vmem:[#allocation9 + $0xb8] sm:$0xff]  }
 0x5c8   :  { %v3923_v41 = vsel %vm7440_vm6, %v3920_v31, %v3922_v29  ;;  %v3960_v42 = vpop.permute.xlu0 %3959  ;;  %v4006_v58 = vld [vmem:[#allocation3 + $0x30] sm:$0x44] }
 0x5c9   :  { %v4032_v33 = vld [vmem:[#allocation3 + $0x10] sm:$0xff]  ;;  %3924 = vst [vmem:[#allocation3 + $0x28] sm:$0x44] %v3923_v41  ;;  %v4016_v45 = vsel %vm7890_vm14, %v4015_v34, %v4014_v24  ;;  %v3961_v49 = vrot.slane %v3960_v42, 4  ;;  %vm7905_vm14 = vsmask.f32 7424 }
 0x5ca   :  { %v7503_v52 = vcombine.high %v4031_v53, %v4032_v33  ;;  %v7505_v47 = vcombine.low %v4031_v53, %v4032_v33  ;;  %v4019_v54 = vsel %vm7385_vm13, %v4016_v45, %v4018_v32  ;;  %v3897_v55 = vpop.permute.xlu1 %3896  ;;  %v5721_v22 = vcombine.high %v4032_v33, %v7494_v46  ;;  %vm7893_vm13 = vmmov %vm7876_vm1  ;;  %v3943_v36 = vld [vmem:[#allocation3 + $0x28] sm:$0x88] }
 0x5cb   :  { %v5720_v8 = vcombine.low %v4032_v33, %v7494_v46  ;;  %4020 = vst [vmem:[#allocation3 + $0x30] sm:$0x88] %v4019_v54  ;;  %v3962_v39 = vsel %vm7891_vm5, %v3961_v49, %v3960_v42  ;;  %v3898_v59 = vrot.slane %v3897_v55, 4  ;;  %v6401_v49 = vld [vmem:[#allocation9 + $0xa8] sm:$0xff]  }
 0x5cc   :  { %5715 = vmatprep.mubr.msk.bf16.mxu1 %vm7892_vm10, %v7503_v52  ;;  %v3965_v21 = vsel %vm7389_vm2, %v3962_v39, %v3964_v57  ;;  %v4002_v60 = vpop.permute.xlu0 %4001  ;;  %v4256_v61 = vshrl.u32 %v5721_v22, 16  ;;  %v4259_v48 = vshll.u32 %v5721_v22, 16  ;;  %vm7895_vm2 = vmmov %vm7876_vm1  ;;  %v4491_v43 = vshll.u32 %v7503_v52, 16 }
 0x5cd   :  { %4197 = vmatmul.mubr.bf16.vlgmr.msra.gmra.mxu1 %v7505_v47  ;;  %v4239_v51 = vshrl.u32 %v5720_v8, 16  ;;  %3966 = vst [vmem:[#allocation3 + $0x30] sm:$0x11] %v3965_v21  ;;  %v3899_v53 = vsel %vm7893_vm13, %v3898_v59, %v3897_v55  ;;  %v4003_v44 = vrot.slane %v4002_v60, 4  ;;  %v4242_v37 = vshll.u32 %v5720_v8, 16  ;;  %v6402_v8 = vld [vmem:[#allocation9 + $0xa0] sm:$0xff]  }
 0x5ce   :  { %4599 = vmatpush1.bf16.msra.mxu1 %v6390_v26  ;;  %5716 = vmatprep.mubr.msk.bf16.mxu1 %vm7894_vm15, %v7500_v13  ;;  %v3902_v27 = vsel %vm7393_vm4, %v3899_v53, %v3901_v28  ;;  %v3939_v5 = vpop.permute.xlu1 %3938  ;;  %v4258_v2 = vrot.slane %v4256_v61, 3  ;;  %v4261_v7 = vrot.slane %v4259_v48, 4  ;;  %v3985_v34 = vld [vmem:[#allocation3 + $0x30] sm:$0x22]  ;;  %v4493_v22 = vrot.slane %v4491_v43, 1 }
 0x5cf   :  { %4600 = vmatprep.subr.bf16.mxu1 %v6558_v1  ;;  %v4241_v10 = vrot.slane %v4239_v51, 3  ;;  %3903 = vst [vmem:[#allocation3 + $0x28] sm:$0x22] %v3902_v27  ;;  %v4004_v11 = vsel %vm7895_vm2, %v4003_v44, %v4002_v60  ;;  %v3940_v12 = vrot.slane %v3939_v5, 4  ;;  %v4244_v14 = vrot.slane %v4242_v37, 4  ;;  %v6404_v51 = vld [vmem:[#allocation9 + $0x98] sm:$0xff]   ;;  %vm7910_vm2 = vmmov %vm7905_vm14 }
 0x5d0   :  { %v4007_v63 = vsel %vm7440_vm6, %v4004_v11, %v4006_v58  ;;  %v7526_v9 = vor.u32 %v4261_v7, %v4258_v2  ;;  %vm7897_vm6 = vmmov %vm7892_vm10  ;;  %v4489_v23 = vshrl.u32 %v7503_v52, 16  ;;  %v7555_v44 = vrot.slane %v4496_v56, 1  ;;  %v6408_v58 = vld [vmem:[#allocation9 + $0x90] sm:$0xff]  }
 0x5d1   :  { %4008 = vst [vmem:[#allocation3 + $0x30] sm:$0x44] %v4007_v63  ;;  %v3941_v50 = vsel %vm7876_vm1, %v3940_v12, %v3939_v5  ;;  %v4245_v17 = vor.u32 %v4244_v14, %v4241_v10  ;;  %v4479_v3 = vshll.u32 %v7505_v47, 16  ;;  %vm7903_vm3 = vmmov %vm7897_vm6 }
 0x5d2   :  { %4601 = vmatpush1.bf16.msra.mxu1 %v6392_v40  ;;  %v3944_v25 = vsel %vm7433_vm0, %v3941_v50, %v3943_v36  ;;  %v3981_v24 = vpop.permute.xlu1 %3980  ;;  %v4263_v38 = vsel %vm7896_vm9, %v4254_v15, %v7526_v9  ;;  %v4027_v32 = vld [vmem:[#allocation3 + $0x30] sm:$0x88]  ;;  %v4494_v53 = vor.u32 %v4493_v22, %v4489_v23  ;;  %vm7904_vm7 = vmmov %vm7903_vm3  ;;  %v4508_v36 = vshrl.u32 %v7500_v13, 16 }
 0x5d3   :  { %4602 = vmatprep.subr.bf16.mxu1 %v6558_v1  ;;  %3945 = vst [vmem:[#allocation3 + $0x28] sm:$0x88] %v3944_v25  ;;  %v3982_v29 = vrot.slane %v3981_v24, 4  ;;  %5735 = vmatprep.mubr.msk.bf16.mxu0 %vm7897_vm6, %v4263_v38  ;;  %v4246_v31 = vsel %vm7898_vm11, %v4237_v16, %v4245_v17  ;;  %vm7906_vm5 = vmmov %vm7903_vm3  ;;  %v4481_v15 = vrot.slane %v4479_v3, 1  ;;  %v6410_v38 = vld [vmem:[#allocation9 + $0xd0] sm:$0xff]   ;;  %v6418_v3 = vld [vmem:[%s7794_s7 + $0x68] sm:$0xff]  }
 0x5d4   :  { %4399 = vmatmul.mubr.bf16.vlgmr.msra.gmra.mxu0 %v4246_v31  ;;  %v4499_v10 = vsel %vm7905_vm14, %v4494_v53, %v7555_v44  ;;  %v7577_v43 = vor.u32 %v4508_v36, %v7555_v44  ;;  %vm7909_vm15 = vmmov %vm7903_vm3  ;;  %v6416_v53 = vld [vmem:[%s7794_s7 + $0x70] sm:$0xff]   ;;  %vm7917_vm14 = vcmask 64512  }
 0x5d5   :  { %4205 = vmatmul.mubr.bf16.gmra.mxu1 %v7536_v62  ;;  %v3983_v35 = vsel %vm7899_vm8, %v3982_v29, %v3981_v24  ;;  %v4427_v24 = vld [vmem:[#allocation3 + $0x38] sm:$0x11]  ;;  %v4477_v29 = vshrl.u32 %v7505_v47, 16  ;;  %vm7911_vm1 = vmmov %vm7910_vm2 }
 0x5d6   :  { %4603 = vmatpush1.bf16.msra.mxu1 %v6397_v18  ;;  %v3986_v41 = vsel %vm7393_vm4, %v3983_v35, %v3985_v34  ;;  %v4023_v42 = vpop.permute.xlu1 %4022  ;;  %vm7901_vm4 = vmmov %vm7896_vm9  ;;  %v5744_v56 = vcombine.low %v4427_v24, %v4427_v24 }
 0x5d7   :  { %4604 = vmatprep.subr.bf16.mxu1 %v6558_v1  ;;  %3987 = vst [vmem:[#allocation3 + $0x30] sm:$0x22] %v3986_v41  ;;  %v4024_v33 = vrot.slane %v4023_v42, 4  ;;  %v4482_v35 = vor.u32 %v4481_v15, %v4477_v29  ;;  %v5745_v41 = vcombine.high %v4427_v24, %v4427_v24  ;;  %vm7912_vm9 = vmmov %vm7903_vm3 }
 0x5d8   :  { %vm7913_vm6 = vmmov %vm7911_vm1 }
 0x5d9   :  { %v4025_v45 = vsel %vm7900_vm12, %v4024_v33, %v4023_v42  ;;  %vm7914_vm11 = vmmov %vm7911_vm1 }
 0x5da   :  { %4605 = vmatpush1.bf16.msra.mxu1 %v6399_v0  ;;  %v4028_v26 = vsel %vm7433_vm0, %v4025_v45, %v4027_v32  ;;  %v4035_v54 = vld [vmem:[#allocation3 + $0x28] sm:$0xff]  ;;  %vm7902_vm0 = vmmov %vm7901_vm4  ;;  %v4500_v45 = vshrl.u32 %v7536_v62, 16 }
 0x5db   :  { %4606 = vmatprep.subr.bf16.mxu1 %v6558_v1  ;;  %4029 = vst [vmem:[#allocation3 + $0x30] sm:$0x88] %v4028_v26  ;;  %v5723_v30 = vcombine.high %v7489_v20, %v4035_v54  ;;  %v5722_v55 = vcombine.low %v7489_v20, %v4035_v54  ;;  %vm7907_vm10 = vmmov %vm7902_vm0 }
 0x5dc   :  { %vm7908_vm13 = vmmov %vm7902_vm0 }
 0x5dd   :  { %v4274_v57 = vshrl.u32 %v5723_v30, 16  ;;  %v4277_v39 = vshll.u32 %v5723_v30, 16  ;;  %v4265_v59 = vshrl.u32 %v5722_v55, 16  ;;  %v4268_v4 = vshll.u32 %v5722_v55, 16  ;;  %vm7915_vm8 = vmmov %vm7903_vm3 }
 0x5de   :  { %4607 = vmatpush1.bf16.msra.mxu1 %v6401_v49  ;;  %vm7916_vm12 = vmmov %vm7911_vm1 }
 0x5df   :  { %4608 = vmatprep.subr.bf16.mxu1 %v6558_v1  ;;  %v4276_v19 = vrot.slane %v4274_v57, 3  ;;  %v4279_v21 = vrot.slane %v4277_v39, 4  ;;  %v4267_v60 = vrot.slane %v4265_v59, 3  ;;  %v4270_v61 = vrot.slane %v4268_v4, 4 }
 0x5e0   :  { %v4520_v59 = vshll.u32 %v5744_v56, 16 }
 0x5e1   :  { %v4280_v48 = vor.u32 %v4279_v21, %v4276_v19  ;;  %v4271_v28 = vor.u32 %v4270_v61, %v4267_v60  ;;  %v6414_v61 = vld [vmem:[%s7794_s7 + $0x80] sm:$0xff]  }
 0x5e2   :  { %4609 = vmatpush1.bf16.msra.mxu1 %v6402_v8  ;;  %v4036_v40 = vld [vmem:[#allocation3 + $0x30] sm:$0xff]  ;;  %v4522_v21 = vrot.slane %v4520_v59, 1  ;;  %4851 = vmatpush1.bf16.msra.mxu0 %v6414_v61 }
 0x5e3   :  { %4610 = vmatprep.subr.bf16.mxu1 %v6558_v1  ;;  %v4281_v37 = vsel %vm7901_vm4, %v7526_v9, %v4280_v48  ;;  %v5705_v52 = vcombine.high %v4035_v54, %v4036_v40  ;;  %v4272_v27 = vsel %vm7902_vm0, %v4245_v17, %v4271_v28  ;;  %v5704_v5 = vcombine.low %v4035_v54, %v4036_v40 }
 0x5e4   :  { %5736 = vmatprep.mubr.msk.bf16.mxu0 %vm7903_vm3, %v4281_v37  ;;  %v5725_v2 = vcombine.high %v4036_v40, %v4036_v40  ;;  %v5724_v7 = vcombine.low %v4036_v40, %v4036_v40  ;;  %v4484_v9 = vshll.u32 %v7536_v62, 16  ;;  %v4528_v54 = vshll.u32 %v5745_v41, 16  ;;  %4852 = vmatprep.subr.bf16.mxu0 %v6558_v1  ;;  %v6421_v40 = vld [vmem:[%s7794_s7 + $0x28] sm:$0xff]   ;;  %v6420_v37 = vld [vmem:[%s7794_s7 + $0x60] sm:$0xff]   ;;  %v6422_v41 = vld [vmem:[%s7794_s7 + $0x58] sm:$0xff]  }
 0x5e5   :  { %5717 = vmatprep.mubr.msk.bf16.mxu1 %vm7904_vm7, %v5705_v52  ;;  %4407 = vmatmul.mubr.bf16.gmra.mxu0 %v4272_v27  ;;  %v4512_v50 = vshll.u32 %v5705_v52, 16  ;;  %v4504_v49 = vshll.u32 %v5704_v5, 16  ;;  %v4524_v30 = vshrl.u32 %v5705_v52, 16  ;;  %v4516_v23 = vshrl.u32 %v5704_v5, 16 }
 0x5e6   :  { %4611 = vmatpush1.bf16.msra.mxu1 %v6404_v51  ;;  %v4292_v11 = vshrl.u32 %v5725_v2, 16  ;;  %v4295_v12 = vshll.u32 %v5725_v2, 16  ;;  %v4283_v14 = vshrl.u32 %v5724_v7, 16  ;;  %v4286_v63 = vshll.u32 %v5724_v7, 16  ;;  %v6415_v51 = vld [vmem:[%s7794_s7 + $0x78] sm:$0xff]  }
 0x5e7   :  { %4211 = vmatmul.mubr.bf16.gmra.mxu1 %v5704_v5  ;;  %4612 = vmatprep.subr.bf16.mxu1 %v6558_v1  ;;  %v7572_v0 = vrot.slane %v4484_v9, 1  ;;  %v4514_v32 = vrot.slane %v4512_v50, 1  ;;  %v4506_v22 = vrot.slane %v4504_v49, 1  ;;  %v4530_v57 = vrot.slane %v4528_v54, 1 }
 0x5e8   :  { %5755 = vmatprep.mubr.msk.bf16.mxu1 %vm7906_vm5, %v4499_v10  ;;  %v4294_v16 = vrot.slane %v4292_v11, 3  ;;  %v4297_v17 = vrot.slane %v4295_v12, 4  ;;  %v4285_v18 = vrot.slane %v4283_v14, 3  ;;  %v4288_v25 = vrot.slane %v4286_v63, 4  ;;  %4853 = vmatpush1.bf16.msra.mxu0 %v6415_v51 }
 0x5e9   :  { %v4487_v47 = vsel %vm7910_vm2, %v4482_v35, %v7572_v0  ;;  %v4515_v26 = vsel %vm7911_vm1, %v7577_v43, %v4514_v32  ;;  %v7588_v55 = vor.u32 %v4500_v45, %v7572_v0  ;;  %v4526_v8 = vor.u32 %v4524_v30, %v4514_v32  ;;  %4854 = vmatprep.subr.bf16.mxu0 %v6558_v1  ;;  %v7630_v35 = vld [vmem:[%s7793_s6] ss:$0 sm:$0xff]  ;;  %v6424_v30 = vld [vmem:[%s7794_s7 + $0x50] sm:$0xff]   ;;  %vm7922_vm2 = vmmov %vm7915_vm8 }
 0x5ea   :  { %4613 = vmatpush1.bf16.msra.mxu1 %v6408_v58  ;;  %v4298_v31 = vor.u32 %v4297_v17, %v4294_v16  ;;  %v4289_v34 = vor.u32 %v4288_v25, %v4285_v18  ;;  %v4518_v19 = vor.u32 %v4516_v23, %v4506_v22  ;;  %v6427_v23 = vld [vmem:[%s7794_s7 + $0x10] sm:$0xff]   ;;  %vm7918_vm5 = vnez %v7833_v6 }
 0x5eb   :  { %4628 = vmatprep.subr.bf16.mxu1 %v6558_v1  ;;  %v4507_v39 = vsel %vm7913_vm6, %v7588_v55, %v4506_v22  ;;  %v4531_v4 = vsel %vm7914_vm11, %v4526_v8, %v4530_v57  ;;  %v6425_v22 = vld [vmem:[%s7794_s7 + $0x18] sm:$0xff]   ;;  %vm7925_vm6 = vmmov %vm7922_vm2 }
 0x5ec   :  { %v4299_v42 = vsel %vm7907_vm10, %v4280_v48, %v4298_v31  ;;  %v4290_v33 = vsel %vm7908_vm13, %v4271_v28, %v4289_v34  ;;  %v4523_v60 = vsel %vm7916_vm12, %v4518_v19, %v4522_v21  ;;  %v6417_v48 = vld [vmem:[%s7794_s7 + $0x38] sm:$0xff]   ;;  %v6419_v28 = vld [vmem:[%s7794_s7 + $0x30] sm:$0xff]   ;;  %4855 = vmatpush1.bf16.msra.mxu0 %v6416_v53  ;;  %vm7919_vm10 = vmmov %vm7917_vm14 }
 0x5ed   :  { %5737 = vmatprep.mubr.msk.bf16.mxu0 %vm7909_vm15, %v4299_v42  ;;  %4856 = vmatprep.subr.bf16.mxu0 %v6558_v1  ;;  %v6423_v42 = vld [vmem:[%s7794_s7 + $0x20] sm:$0xff]   ;;  %vm7920_vm13 = vmmov %vm7915_vm8 }
 0x5ee   :  { %4629 = vmatpush2.bf16.msra.mxu1 %v6410_v38  ;;  %4413 = vmatmul.mubr.bf16.gmra.mxu0 %v4290_v33  ;;  %vm7921_vm15 = vmmov %vm7919_vm10 }
 0x5ef   :  { %5052 = vmatprep.subr.bf16.mxu1 %v6558_v1  ;;  %vm7923_vm1 = vmmov %vm7919_vm10 }
 0x5f0   :  { %4857 = vmatpush1.bf16.msra.mxu0 %v6418_v3 }
 0x5f1   :  { %4631 = vmatmul.mubr.bf16.vlgmr.msra.gmra.mxu1 %v4487_v47  ;;  %4858 = vmatprep.subr.bf16.mxu0 %v6558_v1 }
 0x5f2   :  { %5756 = vmatprep.mubr.msk.bf16.mxu1 %vm7912_vm9, %v4515_v26  ;;  %5053 = vmatpush1.bf16.msra.mxu1 %v6417_v48  ;;  %v6428_v48 = vld [vmem:[%s7794_s7 + $0x88] sm:$0xff]   ;;  %vm7924_vm9 = vsmask.f32 4352 }
 0x5f3   :  { %5054 = vmatprep.subr.bf16.mxu1 %v6558_v1  ;;  %vm7926_vm11 = vmmov %vm7924_vm9 }
 0x5f4   :  { %4859 = vmatpush1.bf16.msra.mxu0 %v6420_v37 }
 0x5f5   :  { %4860 = vmatprep.subr.bf16.mxu0 %v6558_v1 }
 0x5f6   :  { %5055 = vmatpush1.bf16.msra.mxu1 %v6419_v28  ;;  %v6429_v28 = vld [vmem:[%s7794_s7 + $0x8] sm:$0xff]  }
 0x5f7   :  { %5056 = vmatprep.subr.bf16.mxu1 %v6558_v1 }
 0x5f8   :  { %4861 = vmatpush1.bf16.msra.mxu0 %v6422_v41 }
 0x5f9   :  { %4639 = vmatmul.mubr.bf16.gmra.mxu1 %v4507_v39  ;;  %4862 = vmatprep.subr.bf16.mxu0 %v6558_v1  ;;  %v6426_v39 = vld [vmem:[%s7794_s7 + $0x48] sm:$0xff]  }
 0x5fa   :  { %5757 = vmatprep.mubr.msk.bf16.mxu1 %vm7915_vm8, %v4531_v4  ;;  %5057 = vmatpush1.bf16.msra.mxu1 %v6421_v40  ;;  %vm7927_vm8 = vmmov %vm7922_vm2 }
 0x5fb   :  { %5058 = vmatprep.subr.bf16.mxu1 %v6558_v1 }
 0x5fc   :  { %4863 = vmatpush1.bf16.msra.mxu0 %v6424_v30 }
 0x5fd   :  { %4864 = vmatprep.subr.bf16.mxu0 %v6558_v1 }
 0x5fe   :  { %5059 = vmatpush1.bf16.msra.mxu1 %v6423_v42 }
 0x5ff   :  { %5060 = vmatprep.subr.bf16.mxu1 %v6558_v1 }
 0x600   :  { %4865 = vmatpush1.bf16.msra.mxu0 %v6426_v39 }
 0x601   :  { %4645 = vmatmul.mubr.bf16.gmra.mxu1 %v4523_v60  ;;  %4880 = vmatprep.subr.bf16.mxu0 %v6558_v1 }
 0x602   :  { %5061 = vmatpush1.bf16.msra.mxu1 %v6425_v22  ;;  %v6433_v22 = vld [vmem:[%s7794_s7 + $0xc8] sm:$0xff]  }
 0x603   :  { %5062 = vmatprep.subr.bf16.mxu1 %v6558_v1 }
 0x604   :  { %4881 = vmatpush2.bf16.msra.mxu0 %v6428_v48 }
 0x605   :  { %5284 = vmatprep.subr.bf16.mxu0 %v6558_v1 }
 0x606   :  { %5063 = vmatpush1.bf16.msra.mxu1 %v6427_v23 }
 0x607   :  { %5064 = vmatprep.subr.bf16.mxu1 %v6558_v1 }
 0x60a   :  { %5065 = vmatpush1.bf16.msra.mxu1 %v6429_v28 }
 0x60b   :  { %5066 = vmatprep.subr.bf16.mxu1 %v6558_v1 }
 0x68d   :  { %v4198_v52 = vpop.f32.mrf.mxu1 }
 0x68f   :  { %v4200_v27 = vpop.f32.mrf.mxu1 }
 0x690   :  { %v6432_v27 = vld [vmem:[%s7794_s7] sm:$0xff]  }
 0x691   :  { %v4201_v5 = vpop.f32.mrf.mxu1  ;;  %5067 = vmatpush1.bf16.msra.mxu1 %v6432_v27 }
 0x692   :  { %5082 = vmatprep.subr.bf16.mxu1 %v6558_v1 }
 0x693   :  { %v4203_v2 = vpop.f32.mrf.mxu1 }
 0x694   :  { %v4400_v7 = vpop.f32.mrf.mxu0 }
 0x695   :  { %v4206_v10 = vpop.f32.mrf.mxu1  ;;  %v4401_v29 = vadd.f32 %v4400_v7, %v4198_v52 }
 0x696   :  { %v4402_v58 = vpop.f32.mrf.mxu0 }
 0x697   :  { %v4207_v11 = vpop.f32.mrf.mxu1 }
 0x698   :  { %v4403_v12 = vpop.f32.mrf.mxu0  ;;  %v6434_v11 = vld [vmem:[%s7794_s7 + $0x40] sm:$0xff]  }
 0x699   :  { %v4208_v14 = vpop.f32.mrf.mxu1  ;;  %v4404_v45 = vadd.f32 %v4403_v12, %v4201_v5  ;;  %5083 = vmatpush2.bf16.msra.mxu1 %v6434_v11 }
 0x69a   :  { %v4405_v63 = vpop.f32.mrf.mxu0 }
 0x69b   :  { %v4209_v15 = vpop.f32.mrf.mxu1 }
 0x6a5   :  { %v4408_v9 = vpop.f32.mrf.mxu0 }
 0x6a7   :  { %v4212_v36 = vpop.f32.mrf.mxu1  ;;  %v4409_v50 = vpop.f32.mrf.mxu0 }
 0x6a9   :  { %v4214_v16 = vpop.f32.mrf.mxu1  ;;  %v4410_v17 = vpop.f32.mrf.mxu0 }
 0x6ab   :  { %v4215_v18 = vpop.f32.mrf.mxu1  ;;  %v4411_v25 = vpop.f32.mrf.mxu0 }
 0x6ad   :  { %v4217_v24 = vpop.f32.mrf.mxu1 }
 0x6ae   :  { %v4414_v38 = vpop.f32.mrf.mxu0 }
 0x6af   :  { %v4415_v37 = vadd.f32 %v4414_v38, %v4212_v36 }
 0x6b0   :  { %v4416_v31 = vpop.f32.mrf.mxu0 }
 0x6b1   :  { %v4632_v34 = vpop.f32.mrf.mxu1 }
 0x6b2   :  { %v4653_v33 = vadd.f32 %v4632_v34, %v4401_v29  ;;  %v4417_v32 = vpop.f32.mrf.mxu0  ;;  %v4716_v34 = vld [vmem:[#allocation3] sm:$0x88] }
 0x6b3   :  { %v4634_v47 = vpop.f32.mrf.mxu1  ;;  %v4418_v7 = vadd.f32 %v4417_v32, %v4215_v18 }
 0x6b4   :  { %v4664_v49 = vadd.f32 %v7630_v35, %v4653_v33  ;;  %v4419_v26 = vpop.f32.mrf.mxu0 }
 0x6b5   :  { %v4635_v54 = vpop.f32.mrf.mxu1 }
 0x6b6   :  { %v4668_v56 = vmul.f32 0.01, %v4664_v49  ;;  %v4654_v8 = vadd.f32 %v4635_v54, %v4404_v45  ;;  %vm4666_vm4 = vcmp.ge.f32.partialorder %v4664_v49, 0.0 }
 0x6b7   :  { %v4637_v57 = vpop.f32.mrf.mxu1 }
 0x6b8   :  { %v4665_v59 = vadd.f32 %v7630_v35, %v4654_v8  ;;  %v4670_v4 = vsel %vm4666_vm4, %v4664_v49, %v4668_v56  ;;  %vm7928_vm4 = vmmov %vm7922_vm2 }
 0x6b9   :  { %v4640_v19 = vpop.f32.mrf.mxu1  ;;  %v5882_v21 = vpack.c.bf16 %v4670_v4, %v4670_v4 }
 0x6ba   :  { %v4669_v60 = vmul.f32 0.01, %v4665_v59  ;;  %vm4667_vm0 = vcmp.ge.f32.partialorder %v4665_v59, 0.0 }
 0x6bb   :  { %4686 = vrot.lane.b32.xlu0 %v5882_v21, %s6560_s2  ;;  %v4641_v61 = vpop.f32.mrf.mxu1 }
 0x6bc   :  { %v4671_v51 = vsel %vm4667_vm0, %v4665_v59, %v4669_v60  ;;  %vm7929_vm0 = vmmov %vm7924_vm9 }
 0x6bd   :  { %v4642_v53 = vpop.f32.mrf.mxu1  ;;  %v5883_v40 = vpack.c.bf16 %v4671_v51, %v4671_v51 }
 0x6bf   :  { %4688 = vrot.lane.b32.xlu1 %v5883_v40, %s6560_s2  ;;  %v4643_v3 = vpop.f32.mrf.mxu1 }
 0x6c1   :  { %v4646_v52 = vpop.f32.mrf.mxu1 }
 0x6c2   :  { %v4655_v5 = vadd.f32 %v4646_v52, %v4415_v37 }
 0x6c3   :  { %v4648_v2 = vpop.f32.mrf.mxu1 }
 0x6c4   :  { %v4672_v10 = vadd.f32 %v7630_v35, %v4655_v5 }
 0x6c5   :  { %v4649_v58 = vpop.f32.mrf.mxu1 }
 0x6c6   :  { %v4676_v12 = vmul.f32 0.01, %v4672_v10  ;;  %v4656_v14 = vadd.f32 %v4649_v58, %v4418_v7  ;;  %vm4674_vm3 = vcmp.ge.f32.partialorder %v4672_v10, 0.0 }
 0x6c7   :  { %v4651_v63 = vpop.f32.mrf.mxu1 }
 0x6c8   :  { %v4673_v15 = vadd.f32 %v7630_v35, %v4656_v14  ;;  %v4678_v9 = vsel %vm4674_vm3, %v4672_v10, %v4676_v12  ;;  %v6437_v63 = vld [vmem:[%s7794_s7 + $0xb0] sm:$0xff]   ;;  %vm7930_vm3 = vmmov %vm7922_vm2 }
 0x6c9   :  { %v5884_v36 = vpack.c.bf16 %v4678_v9, %v4678_v9 }
 0x6ca   :  { %v4677_v50 = vmul.f32 0.01, %v4673_v15  ;;  %vm4675_vm7 = vcmp.ge.f32.partialorder %v4673_v15, 0.0 }
 0x6cb   :  { %4704 = vrot.lane.b32.xlu0 %v5884_v36, %s6560_s2 }
 0x6cc   :  { %v4679_v16 = vsel %vm4675_vm7, %v4673_v15, %v4677_v50  ;;  %vm7931_vm7 = vmmov %vm7929_vm0 }
 0x6cd   :  { %v5885_v17 = vpack.c.bf16 %v4679_v16, %v4679_v16 }
 0x6cf   :  { %4706 = vrot.lane.b32.xlu1 %v5885_v17, %s6560_s2 }
 0x72d   :  { %v4687_v18 = vpop.permute.xlu0 %4686 }
 0x72e   :  { %v4690_v25 = vrot.slane %v4687_v18, 4 }
 0x730   :  { %v4692_v24 = vsel %vm7917_vm14, %v4690_v25, %v4687_v18  ;;  %vm7932_vm14 = vmmov %vm7929_vm0 }
 0x731   :  { %4696 = vst.msk [vmem:[#allocation3 + $0x8] sm:$0xff] %vm7918_vm5, %v4692_v24  ;;  %v4689_v38 = vpop.permute.xlu1 %4688 }
 0x732   :  { %v4691_v29 = vrot.slane %v4689_v38, 4 }
 0x734   :  { %v4693_v31 = vsel %vm7919_vm10, %v4691_v29, %v4689_v38  ;;  %v6440_v38 = vld [vmem:[%s7794_s7 + $0xa8] sm:$0xff]   ;;  %vm7934_vm10 = vmmov %vm7929_vm0 }
 0x735   :  { %4697 = vst.msk [vmem:[#allocation3 + $0x10] sm:$0xff] %vm7918_vm5, %v4693_v31 }
 0x738   :  { %v4717_v35 = vld [vmem:[#allocation3 + $0x8] sm:$0xff] }
 0x739   :  { %v5799_v41 = vcombine.low %v4716_v34, %v4717_v35  ;;  %v5800_v42 = vcombine.high %v4716_v34, %v4717_v35 }
 0x73b   :  { %v4934_v33 = vshrl.u32 %v5800_v42, 16  ;;  %v4937_v32 = vshll.u32 %v5800_v42, 16  ;;  %v4917_v47 = vshrl.u32 %v5799_v41, 16  ;;  %v4920_v49 = vshll.u32 %v5799_v41, 16 }
 0x73c   :  { %v4718_v45 = vld [vmem:[#allocation3 + $0x10] sm:$0xff] }
 0x73d   :  { %v4705_v26 = vpop.permute.xlu0 %4704  ;;  %v5782_v54 = vcombine.high %v4717_v35, %v4718_v45  ;;  %v7685_v30 = vcombine.low %v4717_v35, %v4718_v45  ;;  %v5802_v56 = vcombine.high %v4718_v45, %v7494_v46  ;;  %v4936_v57 = vrot.slane %v4934_v33, 3 }
 0x73e   :  { %v4708_v8 = vrot.slane %v4705_v26, 4  ;;  %v5801_v39 = vcombine.low %v4718_v45, %v7494_v46  ;;  %v4939_v59 = vrot.slane %v4937_v32, 4  ;;  %v4919_v19 = vrot.slane %v4917_v47, 3  ;;  %v6435_v46 = vld [vmem:[%s7794_s7 + $0xc0] sm:$0xff]  }
 0x73f   :  { %5796 = vmatprep.mubr.msk.bf16.mxu0 %vm7920_vm13, %v5782_v54  ;;  %v4942_v4 = vshrl.u32 %v5802_v56, 16  ;;  %v4945_v23 = vshll.u32 %v5802_v56, 16  ;;  %v4922_v60 = vrot.slane %v4920_v49, 4  ;;  %v5177_v52 = vshll.u32 %v5782_v54, 16  ;;  %vm7935_vm13 = vmmov %vm7916_vm12 }
 0x740   :  { %v4710_v21 = vsel %vm7921_vm15, %v4708_v8, %v4705_v26  ;;  %4883 = vmatmul.mubr.bf16.vlgmr.msra.gmra.mxu0 %v7685_v30  ;;  %v4925_v61 = vshrl.u32 %v5801_v39, 16  ;;  %v4928_v48 = vshll.u32 %v5801_v39, 16  ;;  %v4940_v27 = vor.u32 %v4939_v59, %v4936_v57  ;;  %vm7936_vm15 = vmmov %vm7916_vm12 }
 0x741   :  { %4714 = vst.msk [vmem:[#allocation3 + $0x28] sm:$0xff] %vm7918_vm5, %v4710_v21  ;;  %5285 = vmatpush1.bf16.msra.mxu0 %v6433_v22  ;;  %v4707_v51 = vpop.permute.xlu1 %4706  ;;  %v4944_v28 = vrot.slane %v4942_v4, 3  ;;  %v4947_v53 = vrot.slane %v4945_v23, 4  ;;  %5797 = vmatprep.mubr.msk.bf16.mxu0 %vm7922_vm2, %v7500_v13  ;;  %v4923_v7 = vor.u32 %v4922_v60, %v4919_v19  ;;  %v6436_v13 = vld [vmem:[%s7794_s7 + $0xb8] sm:$0xff]   ;;  %v5179_v12 = vrot.slane %v5177_v52, 1  ;;  %v6445_v60 = vld [vmem:[%s7794_s7 + $0x90] sm:$0xff]  }
 0x742   :  { %v4709_v40 = vrot.slane %v4707_v51, 4  ;;  %5286 = vmatprep.subr.bf16.mxu0 %v6558_v1  ;;  %v4927_v3 = vrot.slane %v4925_v61, 3  ;;  %v4930_v37 = vrot.slane %v4928_v48, 4  ;;  %v5175_v6 = vshrl.u32 %v5782_v54, 16  ;;  %v6441_v54 = vld [vmem:[%s7794_s7 + $0xa0] sm:$0xff]   ;;  %v6443_v4 = vld [vmem:[%s7794_s7 + $0x98] sm:$0xff]  }
 0x743   :  { %v4948_v5 = vor.u32 %v4947_v53, %v4944_v28  ;;  %v5165_v21 = vshll.u32 %v7685_v30, 16  ;;  %v5163_v28 = vshrl.u32 %v7685_v30, 16  ;;  %v5113_v53 = vld [vmem:[#allocation3 + $0x38] sm:$0x11] }
 0x744   :  { %v4711_v2 = vsel %vm7923_vm1, %v4709_v40, %v4707_v51  ;;  %v4931_v10 = vor.u32 %v4930_v37, %v4927_v3  ;;  %v5180_v36 = vor.u32 %v5179_v12, %v5175_v6  ;;  %v5844_v37 = vcombine.high %v5113_v53, %v5113_v53  ;;  %vm7937_vm1 = vmmov %vm7916_vm12 }
 0x745   :  { %4715 = vst.msk [vmem:[#allocation3 + $0x30] sm:$0xff] %vm7918_vm5, %v4711_v2  ;;  %5287 = vmatpush1.bf16.msra.mxu0 %v6435_v46  ;;  %v4949_v58 = vsel %vm7924_vm9, %v4940_v27, %v4948_v5  ;;  %vm7933_vm5 = vmmov %vm7922_vm2  ;;  %v5167_v48 = vrot.slane %v5165_v21, 1  ;;  %v6446_v46 = vld [vmem:[%s7794_s7 + $0xd0] sm:$0xff]  }
 0x746   :  { %5816 = vmatprep.mubr.msk.bf16.mxu1 %vm7925_vm6, %v4949_v58  ;;  %v4932_v11 = vsel %vm7926_vm11, %v4923_v7, %v4931_v10  ;;  %5288 = vmatprep.subr.bf16.mxu0 %v6558_v1  ;;  %v5185_v42 = vsel %vm7916_vm12, %v5180_v36, %v7555_v44  ;;  %v5214_v2 = vshll.u32 %v5844_v37, 16  ;;  %vm7938_vm9 = vmmov %vm7937_vm1 }
 0x747   :  { %5085 = vmatmul.mubr.bf16.vlgmr.msra.gmra.mxu1 %v4932_v11  ;;  %v5168_v40 = vor.u32 %v5167_v48, %v5163_v28  ;;  %vm7939_vm6 = vmmov %vm7922_vm2 }
 0x748   :  { %4891 = vmatmul.mubr.bf16.gmra.mxu0 %v7536_v62  ;;  %v4721_v14 = vld [vmem:[#allocation3 + $0x28] sm:$0xff]  ;;  %v5216_v58 = vrot.slane %v5214_v2, 1  ;;  %vm7940_vm11 = vmmov %vm7937_vm1 }
 0x749   :  { %5289 = vmatpush1.bf16.msra.mxu0 %v6436_v13  ;;  %v5804_v15 = vcombine.high %v7489_v20, %v4721_v14  ;;  %v5803_v9 = vcombine.low %v7489_v20, %v4721_v14  ;;  %v5173_v52 = vsel %vm7935_vm13, %v5168_v40, %v7572_v0 }
 0x74a   :  { %5290 = vmatprep.subr.bf16.mxu0 %v6558_v1 }
 0x74b   :  { %v4960_v50 = vshrl.u32 %v5804_v15, 16  ;;  %v4963_v16 = vshll.u32 %v5804_v15, 16  ;;  %v4951_v17 = vshrl.u32 %v5803_v9, 16  ;;  %v4954_v18 = vshll.u32 %v5803_v9, 16 }
 0x74c   :  { %v4722_v25 = vld [vmem:[#allocation3 + $0x30] sm:$0xff] }
 0x74d   :  { %5291 = vmatpush1.bf16.msra.mxu0 %v6437_v63  ;;  %v7720_v62 = vcombine.high %v4721_v14, %v4722_v25  ;;  %v7722_v24 = vcombine.low %v4721_v14, %v4722_v25  ;;  %v4962_v29 = vrot.slane %v4960_v50, 3  ;;  %v4965_v31 = vrot.slane %v4963_v16, 4 }
 0x74e   :  { %5292 = vmatprep.subr.bf16.mxu0 %v6558_v1  ;;  %v4953_v20 = vrot.slane %v4951_v17, 3  ;;  %v4956_v34 = vrot.slane %v4954_v18, 4  ;;  %v5806_v35 = vcombine.high %v4722_v25, %v4722_v25  ;;  %v5805_v41 = vcombine.low %v4722_v25, %v4722_v25 }
 0x74f   :  { %5798 = vmatprep.mubr.msk.bf16.mxu0 %vm7927_vm8, %v7720_v62  ;;  %v4966_v33 = vor.u32 %v4965_v31, %v4962_v29  ;;  %v5198_v51 = vshll.u32 %v7720_v62, 16  ;;  %v5190_v27 = vshll.u32 %v7722_v24, 16  ;;  %v5210_v30 = vshrl.u32 %v7720_v62, 16 }
 0x750   :  { %4897 = vmatmul.mubr.bf16.gmra.mxu0 %v7722_v24  ;;  %v4957_v32 = vor.u32 %v4956_v34, %v4953_v20  ;;  %v4978_v47 = vshrl.u32 %v5806_v35, 16  ;;  %v4981_v45 = vshll.u32 %v5806_v35, 16  ;;  %v4969_v49 = vshrl.u32 %v5805_v41, 16 }
 0x751   :  { %5293 = vmatpush1.bf16.msra.mxu0 %v6440_v38  ;;  %5854 = vmatprep.mubr.msk.bf16.mxu0 %vm7928_vm4, %v5185_v42  ;;  %v4967_v26 = vsel %vm7929_vm0, %v4948_v5, %v4966_v33  ;;  %v4972_v22 = vshll.u32 %v5805_v41, 16  ;;  %v5200_v3 = vrot.slane %v5198_v51, 1  ;;  %v5192_v7 = vrot.slane %v5190_v27, 1 }
 0x752   :  { %5817 = vmatprep.mubr.msk.bf16.mxu1 %vm7930_vm3, %v4967_v26  ;;  %v4958_v44 = vsel %vm7931_vm7, %v4931_v10, %v4957_v32  ;;  %5294 = vmatprep.subr.bf16.mxu0 %v6558_v1  ;;  %v4980_v56 = vrot.slane %v4978_v47, 3  ;;  %v4983_v8 = vrot.slane %v4981_v45, 4  ;;  %v4971_v57 = vrot.slane %v4969_v49, 3 }
 0x753   :  { %5093 = vmatmul.mubr.bf16.gmra.mxu1 %v4958_v44  ;;  %v4974_v39 = vrot.slane %v4972_v22, 4  ;;  %v5201_v5 = vsel %vm7936_vm15, %v7577_v43, %v5200_v3  ;;  %v5212_v10 = vor.u32 %v5210_v30, %v5200_v3  ;;  %v5193_v13 = vsel %vm7937_vm1, %v7588_v55, %v5192_v7 }
 0x754   :  { %v4984_v59 = vor.u32 %v4983_v8, %v4980_v56  ;;  %v5202_v43 = vshrl.u32 %v7722_v24, 16  ;;  %vm5378_vm8 = vcmask 523264  }
 0x755   :  { %5295 = vmatpush1.bf16.msra.mxu0 %v6441_v54  ;;  %v4975_v19 = vor.u32 %v4974_v39, %v4971_v57  ;;  %v5217_v0 = vsel %vm7938_vm9, %v5212_v10, %v5216_v58  ;;  %v5857_v54 = vld [vmem:[%s7795_s8] ss:$0 sm:$0xff] }
 0x756   :  { %v4985_v23 = vsel %vm7932_vm14, %v4966_v33, %v4984_v59  ;;  %5296 = vmatprep.subr.bf16.mxu0 %v6558_v1  ;;  %v5204_v12 = vor.u32 %v5202_v43, %v5192_v7 }
 0x757   :  { %5818 = vmatprep.mubr.msk.bf16.mxu1 %vm7933_vm5, %v4985_v23  ;;  %v4976_v61 = vsel %vm7934_vm10, %v4957_v32, %v4975_v19 }
 0x759   :  { %5297 = vmatpush1.bf16.msra.mxu0 %v6443_v4 }
 0x75a   :  { %5298 = vmatprep.subr.bf16.mxu0 %v6558_v1 }
 0x75b   :  { %5099 = vmatmul.mubr.bf16.gmra.mxu1 %v4976_v61 }
 0x75d   :  { %5299 = vmatpush1.bf16.msra.mxu0 %v6445_v60 }
 0x75e   :  { %5314 = vmatprep.subr.bf16.mxu0 %v6558_v1  ;;  %v5843_v1 = vcombine.low %v5113_v53, %v5113_v53 }
 0x760   :  { %v5206_v11 = vshll.u32 %v5843_v1, 16 }
 0x761   :  { %5315 = vmatpush2.bf16.msra.mxu0 %v6446_v46 }
 0x762   :  { %v5208_v14 = vrot.slane %v5206_v11, 1 }
 0x764   :  { %5317 = vmatmul.mubr.bf16.vlgmr.msra.gmra.mxu0 %v5173_v52  ;;  %v5209_v6 = vsel %vm7940_vm11, %v5204_v12, %v5208_v14 }
 0x765   :  { %5855 = vmatprep.mubr.msk.bf16.mxu0 %vm7922_vm2, %v5201_v5 }
 0x76c   :  { %5325 = vmatmul.mubr.bf16.gmra.mxu0 %v5193_v13 }
 0x76d   :  { %5856 = vmatprep.mubr.msk.bf16.mxu0 %vm7939_vm6, %v5217_v0 }
 0x774   :  { %5331 = vmatmul.mubr.bf16.gmra.mxu0 %v5209_v6 }
 0x800   :  { %v4884_v63 = vpop.f32.mrf.mxu0 }
 0x802   :  { %v4886_v15 = vpop.f32.mrf.mxu0 }
 0x804   :  { %v4887_v9 = vpop.f32.mrf.mxu0 }
 0x806   :  { %v4889_v36 = vpop.f32.mrf.mxu0 }
 0x807   :  { %v5086_v50 = vpop.f32.mrf.mxu1 }
 0x808   :  { %v4892_v16 = vpop.f32.mrf.mxu0  ;;  %v5087_v49 = vadd.f32 %v5086_v50, %v4884_v63 }
 0x809   :  { %v5088_v55 = vpop.f32.mrf.mxu1 }
 0x80a   :  { %v4893_v17 = vpop.f32.mrf.mxu0 }
 0x80b   :  { %v5089_v18 = vpop.f32.mrf.mxu1 }
 0x80c   :  { %v4894_v25 = vpop.f32.mrf.mxu0  ;;  %v5090_v56 = vadd.f32 %v5089_v18, %v4887_v9 }
 0x80d   :  { %v5091_v62 = vpop.f32.mrf.mxu1 }
 0x80e   :  { %v4895_v38 = vpop.f32.mrf.mxu0 }
 0x810   :  { %v4898_v29 = vpop.f32.mrf.mxu0 }
 0x812   :  { %v4900_v31 = vpop.f32.mrf.mxu0 }
 0x813   :  { %v5094_v24 = vpop.f32.mrf.mxu1 }
 0x814   :  { %v4901_v20 = vpop.f32.mrf.mxu0 }
 0x815   :  { %v5095_v34 = vpop.f32.mrf.mxu1 }
 0x816   :  { %v4903_v35 = vpop.f32.mrf.mxu0 }
 0x817   :  { %v5096_v41 = vpop.f32.mrf.mxu1 }
 0x819   :  { %v5097_v42 = vpop.f32.mrf.mxu1 }
 0x81b   :  { %v5100_v33 = vpop.f32.mrf.mxu1 }
 0x81c   :  { %v5101_v28 = vadd.f32 %v5100_v33, %v4898_v29 }
 0x81d   :  { %v5102_v32 = vpop.f32.mrf.mxu1 }
 0x81f   :  { %v5103_v47 = vpop.f32.mrf.mxu1 }
 0x820   :  { %v5104_v37 = vadd.f32 %v5103_v47, %v4901_v20 }
 0x821   :  { %v5105_v45 = vpop.f32.mrf.mxu1 }
 0x824   :  { %v5318_v26 = vpop.f32.mrf.mxu0 }
 0x825   :  { %v5339_v22 = vadd.f32 %v5318_v26, %v5087_v49 }
 0x826   :  { %v5320_v44 = vpop.f32.mrf.mxu0 }
 0x827   :  { %v5350_v8 = vadd.f32 %v5857_v54, %v5339_v22 }
 0x828   :  { %v5321_v57 = vpop.f32.mrf.mxu0 }
 0x829   :  { %v5352_v39 = vsub.f32 0.0, %v5350_v8  ;;  %v5340_v59 = vadd.f32 %v5321_v57, %v5090_v56 }
 0x82a   :  { %v5323_v4 = vpop.f32.mrf.mxu0 }
 0x82b   :  { %v5354_v23 = vmul.f32 1.442695, %v5352_v39  ;;  %v5351_v19 = vadd.f32 %v5857_v54, %v5340_v59 }
 0x82c   :  { %v5326_v21 = vpop.f32.mrf.mxu0 }
 0x82d   :  { %6449 = vpow2.f32 %v5354_v23  ;;  %v5353_v60 = vsub.f32 0.0, %v5351_v19 }
 0x82e   :  { %v5327_v61 = vpop.f32.mrf.mxu0 }
 0x82f   :  { %v5356_v48 = vmul.f32 1.442695, %v5353_v60 }
 0x830   :  { %v5328_v51 = vpop.f32.mrf.mxu0 }
 0x831   :  { %6451 = vpow2.f32 %v5356_v48 }
 0x832   :  { %v5329_v46 = vpop.f32.mrf.mxu0 }
 0x834   :  { %v5332_v53 = vpop.f32.mrf.mxu0 }
 0x835   :  { %v5341_v40 = vadd.f32 %v5332_v53, %v5101_v28 }
 0x836   :  { %v5334_v3 = vpop.f32.mrf.mxu0 }
 0x837   :  { %v5364_v52 = vadd.f32 %v5857_v54, %v5341_v40 }
 0x838   :  { %v5335_v27 = vpop.f32.mrf.mxu0 }
 0x839   :  { %v5366_v5 = vsub.f32 0.0, %v5364_v52  ;;  %v5342_v2 = vadd.f32 %v5335_v27, %v5104_v37 }
 0x83a   :  { %v6450_v30 = vpop.eup %6449  ;;  %v5337_v7 = vpop.f32.mrf.mxu0 }
 0x83b   :  { %v5358_v1 = vadd.f32 1.0, %v6450_v30  ;;  %v5368_v10 = vmul.f32 1.442695, %v5366_v5  ;;  %v5365_v58 = vadd.f32 %v5857_v54, %v5342_v2 }
 0x83d   :  { %6453 = vrcp.f32 %v5358_v1  ;;  %v5367_v13 = vsub.f32 0.0, %v5365_v58 }
 0x83e   :  { %v6452_v11 = vpop.eup %6451  ;;  %6455 = vpow2.f32 %v5368_v10 }
 0x83f   :  { %v5359_v0 = vadd.f32 1.0, %v6452_v11  ;;  %v5370_v43 = vmul.f32 1.442695, %v5367_v13 }
 0x841   :  { %6457 = vrcp.f32 %v5359_v0 }
 0x842   :  { %6459 = vpow2.f32 %v5370_v43 }
 0x84a   :  { %v6454_v12 = vpop.eup %6453 }
 0x84b   :  { %v6456_v14 = vpop.eup %6455  ;;  %5379 = vst.msk [vmem:[%s7800_s13] sm:$0xff] %vm5378_vm8, %v6454_v12 }
 0x84c   :  { %v5372_v6 = vadd.f32 1.0, %v6456_v14 }
 0x84e   :  { %v6458_v63 = vpop.eup %6457  ;;  %6461 = vrcp.f32 %v5372_v6 }
 0x84f   :  { %v6460_v15 = vpop.eup %6459  ;;  %5380 = vst.msk [vmem:[%s7800_s13 + $0x8] sm:$0xff] %vm5378_vm8, %v6458_v63 }
 0x850   :  { %v5373_v9 = vadd.f32 1.0, %v6460_v15 }
 0x852   :  { %6463 = vrcp.f32 %v5373_v9 }
 0x85b   :  { %v6462_v36 = vpop.eup %6461 }
 0x85c   :  { %5381 = vst.msk [vmem:[%s7800_s13 + $0x10] sm:$0xff] %vm5378_vm8, %v6462_v36 }
 0x85f   :  { %v6464_v50 = vpop.eup %6463 }
 0x860   :  { %5382 = vst.msk [vmem:[%s7800_s13 + $0x18] sm:$0xff] %vm5378_vm8, %v6464_v50 }
 0x861   :  { %5387 = vsyncpa [#allocation6], 1 }
 0x862   :  { %5388 = vsyncpa [#allocation8], 1 }
 0x863   :  { %5389 = vsyncpa [#allocation11], 1 }

</bundles_post_ra>
